<compile_context>
chip_gen: v7x
topology: tpu7x:2x2x1
jax: 0.10.0
libtpu: 0.0.40
codegen_flags: <defaults>
</compile_context>

<pallas_src>
import functools

import jax
import jax.numpy as jnp
from jax.experimental import pallas as pl
from jax.experimental.pallas import tpu as pltpu

NUM_ACTIONS = 43
STATE_LEN = 1052
HIDDEN = 512
NUM_BLOCKS = 3

LANE = 128


def _round_up(n, m):
    return ((n + m - 1) // m) * m


STATE_PAD = _round_up(STATE_LEN, LANE)      # 1152
ACTIONS_PAD = _round_up(NUM_ACTIONS, LANE)  # 128
NUM_BIAS_ROWS = 2 + 2 * NUM_BLOCKS          # 8: b0, (b1,b2)*3, bf


def resnet_kernel(x_ref, w0_ref, wblk_ref, wf_ref, bias_ref, out_ref):
    """One batch tile per grid step; weights are VMEM-resident across steps.

    x_ref   : (TB, STATE_PAD)              bf16
    w0_ref  : (STATE_PAD, HIDDEN)          bf16
    wblk_ref: (2*NUM_BLOCKS, HIDDEN, HIDDEN) bf16   (w1_0, w2_0, w1_1, ...)
    wf_ref  : (HIDDEN, ACTIONS_PAD)        bf16
    bias_ref: (NUM_BIAS_ROWS, HIDDEN)      f32
    out_ref : (TB, ACTIONS_PAD)            f32
    """
    biases = bias_ref[...]  # (8, HIDDEN) f32, loaded once

    # initial_fc + ReLU   (bf16 MXU matmul, f32 accumulation)
    h = jnp.dot(x_ref[...], w0_ref[...], preferred_element_type=jnp.float32)
    h = jnp.maximum(h + biases[0:1, :], 0.0)

    # residual blocks: h = h + L2(relu(L1(h)))  (casts to bf16 only at dot inputs)
    for i in range(NUM_BLOCKS):
        w1 = wblk_ref[2 * i]
        w2 = wblk_ref[2 * i + 1]
        b1 = biases[1 + 2 * i: 2 + 2 * i, :]
        b2 = biases[2 + 2 * i: 3 + 2 * i, :]
        t = jnp.dot(h.astype(jnp.bfloat16), w1,
                    preferred_element_type=jnp.float32) + b1
        t = jnp.maximum(t, 0.0)
        t = jnp.dot(t.astype(jnp.bfloat16), w2,
                    preferred_element_type=jnp.float32) + b2
        h = h + t

    # final_fc + masked softmax over the first NUM_ACTIONS columns
    logits = jnp.dot(h.astype(jnp.bfloat16), wf_ref[...],
                     preferred_element_type=jnp.float32)
    logits = logits + biases[NUM_BIAS_ROWS - 1: NUM_BIAS_ROWS, :ACTIONS_PAD]
    col = jax.lax.broadcasted_iota(jnp.int32, logits.shape, 1)
    logits = jnp.where(col < NUM_ACTIONS, logits, -jnp.inf)
    m = jnp.max(logits, axis=-1, keepdims=True)
    e = jnp.exp(logits - m)
    s = jnp.sum(e, axis=-1, keepdims=True)
    inv = pl.reciprocal(s, approx=True)       # EUP slot (otherwise idle)
    inv = inv * (2.0 - s * inv)               # one Newton step -> f32 accuracy
    out_ref[...] = e * inv


def init_params(key):
    """Deterministic params mirroring the PyTorch _init_weights().

    Weights stored as [in, out]; kaiming_normal_(fan_in, relu) => std=sqrt(2/fan_in);
    all biases zero; final_fc weight/bias zero.
    """
    keys = jax.random.split(key, 1 + 2 * NUM_BLOCKS)
    params = {}
    params["w0"] = (jax.random.normal(keys[0], (STATE_LEN, HIDDEN), jnp.float32)
                    * jnp.sqrt(2.0 / STATE_LEN))
    params["b0"] = jnp.zeros((1, HIDDEN), jnp.float32)
    for i in range(NUM_BLOCKS):
        std = jnp.sqrt(2.0 / HIDDEN)
        params[f"blk{i}_w1"] = jax.random.normal(
            keys[1 + 2 * i], (HIDDEN, HIDDEN), jnp.float32) * std
        params[f"blk{i}_b1"] = jnp.zeros((1, HIDDEN), jnp.float32)
        params[f"blk{i}_w2"] = jax.random.normal(
            keys[2 + 2 * i], (HIDDEN, HIDDEN), jnp.float32) * std
        params[f"blk{i}_b2"] = jnp.zeros((1, HIDDEN), jnp.float32)
    params["wf"] = jnp.zeros((HIDDEN, NUM_ACTIONS), jnp.float32)
    params["bf"] = jnp.zeros((1, NUM_ACTIONS), jnp.float32)
    return params


def prepare_params(params):
    """One-time conversion to the padded / packed / bf16 kernel representation.

    Done once (outside the per-call forward) so no per-call weight padding or
    casting is re-materialized in HBM.
    """
    w0 = jnp.pad(params["w0"],
                 ((0, STATE_PAD - STATE_LEN), (0, 0))).astype(jnp.bfloat16)
    wblk = jnp.stack(
        [params[f"blk{i}_{n}"] for i in range(NUM_BLOCKS) for n in ("w1", "w2")],
        axis=0).astype(jnp.bfloat16)                      # (6, 512, 512)
    wf = jnp.pad(params["wf"],
                 ((0, 0), (0, ACTIONS_PAD - NUM_ACTIONS))).astype(jnp.bfloat16)
    bias_rows = [params["b0"]]
    for i in range(NUM_BLOCKS):
        bias_rows += [params[f"blk{i}_b1"], params[f"blk{i}_b2"]]
    bias_rows += [jnp.pad(params["bf"], ((0, 0), (0, HIDDEN - NUM_ACTIONS)))]
    biases = jnp.concatenate(bias_rows, axis=0).astype(jnp.float32)  # (8, 512)
    return {"w0": w0, "wblk": wblk, "wf": wf, "biases": biases}


@jax.jit
def resnet_forward(x, prepped):
    B = x.shape[0]

    # Batch tile: fill the MXU M dimension when the batch allows it, otherwise
    # a single small tile.  Multiple of 16 (bf16 sublane packing).
    TB = min(256, _round_up(max(B, 1), 16))
    B_pad = _round_up(B, TB)

    # Pad batch + unaligned feature dim; cast activations to bf16 for the MXU.
    x_pad = jnp.pad(x, ((0, B_pad - B), (0, STATE_PAD - STATE_LEN)))
    x_bf16 = x_pad.astype(jnp.bfloat16)

    grid = (B_pad // TB,)
    in_specs = [
        pl.BlockSpec((TB, STATE_PAD), lambda i: (i, 0)),                 # x tile
        pl.BlockSpec((STATE_PAD, HIDDEN), lambda i: (0, 0)),             # w0 (resident)
        pl.BlockSpec((2 * NUM_BLOCKS, HIDDEN, HIDDEN),
                     lambda i: (0, 0, 0)),                               # block ws
        pl.BlockSpec((HIDDEN, ACTIONS_PAD), lambda i: (0, 0)),           # wf
        pl.BlockSpec((NUM_BIAS_ROWS, HIDDEN), lambda i: (0, 0)),         # biases
    ]
    out_specs = pl.BlockSpec((TB, ACTIONS_PAD), lambda i: (i, 0))

    out_pad = pl.pallas_call(
        resnet_kernel,
        grid=grid,
        in_specs=in_specs,
        out_specs=out_specs,
        out_shape=jax.ShapeDtypeStruct((B_pad, ACTIONS_PAD), jnp.float32),
        compiler_params=pltpu.CompilerParams(
            dimension_semantics=("parallel",),
            vmem_limit_bytes=32 << 20,
        ),
    )(x_bf16, prepped["w0"], prepped["wblk"], prepped["wf"], prepped["biases"])

    return out_pad[:B, :NUM_ACTIONS]


def resnet_reference(x, params):
    """Pure-JAX reference matching the kernel's bf16-matmul / f32-accumulate math."""
    def mm(a, w):
        return jnp.dot(a.astype(jnp.bfloat16), w.astype(jnp.bfloat16),
                       preferred_element_type=jnp.float32)

    h = jnp.maximum(mm(x, params["w0"]) + params["b0"], 0.0)
    for i in range(NUM_BLOCKS):
        t = jnp.maximum(mm(h, params[f"blk{i}_w1"]) + params[f"blk{i}_b1"], 0.0)
        t = mm(t, params[f"blk{i}_w2"]) + params[f"blk{i}_b2"]
        h = h + t
    logits = mm(h, params["wf"]) + params["bf"]
    return jax.nn.softmax(logits, axis=-1)


if __name__ == "__main__":
    key = jax.random.PRNGKey(0)
    k_param, k_x, k_wf, k_bf = jax.random.split(key, 4)

    B = 8
    x = jax.random.normal(k_x, (B, STATE_LEN), jnp.float32)

    # --- Test 1: spec-faithful init (final_fc is zero => uniform softmax) ---
    params = init_params(k_param)
    prepped = prepare_params(params)
    out = jax.block_until_ready(resnet_forward(x, prepped))
    ref = resnet_reference(x, params)
    assert out.shape == (B, NUM_ACTIONS)
    assert jnp.allclose(out, ref, atol=1e-4, rtol=1e-3)
    assert jnp.allclose(jnp.sum(out, axis=-1), 1.0, atol=1e-4)

    # --- Test 2: non-trivial final_fc so the softmax path is exercised ---
    params2 = dict(params)
    params2["wf"] = jax.random.normal(k_wf, (HIDDEN, NUM_ACTIONS), jnp.float32) * 0.05
    params2["bf"] = jax.random.normal(k_bf, (1, NUM_ACTIONS), jnp.float32) * 0.05
    prepped2 = prepare_params(params2)
    out2 = jax.block_until_ready(resnet_forward(x, prepped2))
    ref2 = resnet_reference(x, params2)
    assert jnp.allclose(out2, ref2, atol=1e-4, rtol=1e-3)
    assert jnp.allclose(jnp.sum(out2, axis=-1), 1.0, atol=1e-4)

    print("KERNEL_OK")
</pallas_src>

<mosaic_0001>
module attributes {stable_mosaic.version = 11 : i64} {
  func.func @resnet_kernel(%arg0: i32, %arg1: memref<16x1152xbf16, #tpu.memory_space<vmem>>, %arg2: memref<1152x512xbf16, #tpu.memory_space<vmem>>, %arg3: memref<6x512x512xbf16, #tpu.memory_space<vmem>>, %arg4: memref<512x128xbf16, #tpu.memory_space<vmem>>, %arg5: memref<8x512xf32, #tpu.memory_space<vmem>>, %arg6: memref<16x128xf32, #tpu.memory_space<vmem>>) attributes {dimension_semantics = [#tpu.dimension_semantics<parallel>], iteration_bounds = array<i64: 1>, scalar_prefetch = 0 : i64, scratch_operands = 0 : i64, tpu.core_type = #tpu.core_type<tc>, window_params = [{transform_indices = @transform_0, window_bounds = array<i64: 16, 1152>}, {pipeline_mode = #tpu.pipeline_mode<synchronous>, transform_indices = @transform_1, window_bounds = array<i64: 1152, 512>}, {pipeline_mode = #tpu.pipeline_mode<synchronous>, transform_indices = @transform_2, window_bounds = array<i64: 6, 512, 512>}, {pipeline_mode = #tpu.pipeline_mode<synchronous>, transform_indices = @transform_3, window_bounds = array<i64: 512, 128>}, {pipeline_mode = #tpu.pipeline_mode<synchronous>, transform_indices = @transform_4, window_bounds = array<i64: 8, 512>}, {transform_indices = @transform_5, window_bounds = array<i64: 16, 128>}]} {
    %c0 = arith.constant 0 : index
    %c0_0 = arith.constant 0 : index
    %0 = vector.load %arg5[%c0, %c0_0] : memref<8x512xf32, #tpu.memory_space<vmem>>, vector<8x512xf32>
    %c0_1 = arith.constant 0 : index
    %c0_2 = arith.constant 0 : index
    %1 = vector.load %arg1[%c0_1, %c0_2] : memref<16x1152xbf16, #tpu.memory_space<vmem>>, vector<16x1152xbf16>
    %c0_3 = arith.constant 0 : index
    %c0_4 = arith.constant 0 : index
    %2 = vector.load %arg2[%c0_3, %c0_4] : memref<1152x512xbf16, #tpu.memory_space<vmem>>, vector<1152x512xbf16>
    %cst = arith.constant dense<0.000000e+00> : vector<16x512xf32>
    %3 = tpu.matmul %1, %2, %cst {dimension_numbers = #tpu.dot_dimension_numbers<[1], [0], [0], [1], [0, 0, 1, 1], [], []>} : vector<16x1152xbf16>, vector<1152x512xbf16>, vector<16x512xf32> -> vector<16x512xf32>
    %4 = vector.extract_strided_slice %0 {offsets = [0, 0], sizes = [1, 512], strides = [1, 1]} : vector<8x512xf32> to vector<1x512xf32>
    %5 = vector.broadcast %4 : vector<1x512xf32> to vector<16x512xf32>
    %6 = arith.addf %3, %5 : vector<16x512xf32>
    %cst_5 = arith.constant 0.000000e+00 : f32
    %7 = vector.broadcast %cst_5 : f32 to vector<16x512xf32>
    %8 = arith.maximumf %6, %7 : vector<16x512xf32>
    %c0_6 = arith.constant 0 : index
    %c0_7 = arith.constant 0 : index
    %c0_8 = arith.constant 0 : index
    %9 = vector.load %arg3[%c0_6, %c0_7, %c0_8] : memref<6x512x512xbf16, #tpu.memory_space<vmem>>, vector<1x512x512xbf16>
    %10 = vector.shape_cast %9 : vector<1x512x512xbf16> to vector<512x512xbf16>
    %c1 = arith.constant 1 : index
    %c0_9 = arith.constant 0 : index
    %c0_10 = arith.constant 0 : index
    %11 = vector.load %arg3[%c1, %c0_9, %c0_10] : memref<6x512x512xbf16, #tpu.memory_space<vmem>>, vector<1x512x512xbf16>
    %12 = vector.shape_cast %11 : vector<1x512x512xbf16> to vector<512x512xbf16>
    %13 = vector.extract_strided_slice %0 {offsets = [1, 0], sizes = [1, 512], strides = [1, 1]} : vector<8x512xf32> to vector<1x512xf32>
    %14 = vector.extract_strided_slice %0 {offsets = [2, 0], sizes = [1, 512], strides = [1, 1]} : vector<8x512xf32> to vector<1x512xf32>
    %15 = arith.truncf %8 : vector<16x512xf32> to vector<16x512xbf16>
    %cst_11 = arith.constant dense<0.000000e+00> : vector<16x512xf32>
    %16 = tpu.matmul %15, %10, %cst_11 {dimension_numbers = #tpu.dot_dimension_numbers<[1], [0], [0], [1], [0, 0, 1, 1], [], []>} : vector<16x512xbf16>, vector<512x512xbf16>, vector<16x512xf32> -> vector<16x512xf32>
    %17 = vector.broadcast %13 : vector<1x512xf32> to vector<16x512xf32>
    %18 = arith.addf %16, %17 : vector<16x512xf32>
    %cst_12 = arith.constant 0.000000e+00 : f32
    %19 = vector.broadcast %cst_12 : f32 to vector<16x512xf32>
    %20 = arith.maximumf %18, %19 : vector<16x512xf32>
    %21 = arith.truncf %20 : vector<16x512xf32> to vector<16x512xbf16>
    %cst_13 = arith.constant dense<0.000000e+00> : vector<16x512xf32>
    %22 = tpu.matmul %21, %12, %cst_13 {dimension_numbers = #tpu.dot_dimension_numbers<[1], [0], [0], [1], [0, 0, 1, 1], [], []>} : vector<16x512xbf16>, vector<512x512xbf16>, vector<16x512xf32> -> vector<16x512xf32>
    %23 = vector.broadcast %14 : vector<1x512xf32> to vector<16x512xf32>
    %24 = arith.addf %22, %23 : vector<16x512xf32>
    %25 = arith.addf %8, %24 : vector<16x512xf32>
    %c2 = arith.constant 2 : index
    %c0_14 = arith.constant 0 : index
    %c0_15 = arith.constant 0 : index
    %26 = vector.load %arg3[%c2, %c0_14, %c0_15] : memref<6x512x512xbf16, #tpu.memory_space<vmem>>, vector<1x512x512xbf16>
    %27 = vector.shape_cast %26 : vector<1x512x512xbf16> to vector<512x512xbf16>
    %c3 = arith.constant 3 : index
    %c0_16 = arith.constant 0 : index
    %c0_17 = arith.constant 0 : index
    %28 = vector.load %arg3[%c3, %c0_16, %c0_17] : memref<6x512x512xbf16, #tpu.memory_space<vmem>>, vector<1x512x512xbf16>
    %29 = vector.shape_cast %28 : vector<1x512x512xbf16> to vector<512x512xbf16>
    %30 = vector.extract_strided_slice %0 {offsets = [3, 0], sizes = [1, 512], strides = [1, 1]} : vector<8x512xf32> to vector<1x512xf32>
    %31 = vector.extract_strided_slice %0 {offsets = [4, 0], sizes = [1, 512], strides = [1, 1]} : vector<8x512xf32> to vector<1x512xf32>
    %32 = arith.truncf %25 : vector<16x512xf32> to vector<16x512xbf16>
    %cst_18 = arith.constant dense<0.000000e+00> : vector<16x512xf32>
    %33 = tpu.matmul %32, %27, %cst_18 {dimension_numbers = #tpu.dot_dimension_numbers<[1], [0], [0], [1], [0, 0, 1, 1], [], []>} : vector<16x512xbf16>, vector<512x512xbf16>, vector<16x512xf32> -> vector<16x512xf32>
    %34 = vector.broadcast %30 : vector<1x512xf32> to vector<16x512xf32>
    %35 = arith.addf %33, %34 : vector<16x512xf32>
    %cst_19 = arith.constant 0.000000e+00 : f32
    %36 = vector.broadcast %cst_19 : f32 to vector<16x512xf32>
    %37 = arith.maximumf %35, %36 : vector<16x512xf32>
    %38 = arith.truncf %37 : vector<16x512xf32> to vector<16x512xbf16>
    %cst_20 = arith.constant dense<0.000000e+00> : vector<16x512xf32>
    %39 = tpu.matmul %38, %29, %cst_20 {dimension_numbers = #tpu.dot_dimension_numbers<[1], [0], [0], [1], [0, 0, 1, 1], [], []>} : vector<16x512xbf16>, vector<512x512xbf16>, vector<16x512xf32> -> vector<16x512xf32>
    %40 = vector.broadcast %31 : vector<1x512xf32> to vector<16x512xf32>
    %41 = arith.addf %39, %40 : vector<16x512xf32>
    %42 = arith.addf %25, %41 : vector<16x512xf32>
    %c4 = arith.constant 4 : index
    %c0_21 = arith.constant 0 : index
    %c0_22 = arith.constant 0 : index
    %43 = vector.load %arg3[%c4, %c0_21, %c0_22] : memref<6x512x512xbf16, #tpu.memory_space<vmem>>, vector<1x512x512xbf16>
    %44 = vector.shape_cast %43 : vector<1x512x512xbf16> to vector<512x512xbf16>
    %c5 = arith.constant 5 : index
    %c0_23 = arith.constant 0 : index
    %c0_24 = arith.constant 0 : index
    %45 = vector.load %arg3[%c5, %c0_23, %c0_24] : memref<6x512x512xbf16, #tpu.memory_space<vmem>>, vector<1x512x512xbf16>
    %46 = vector.shape_cast %45 : vector<1x512x512xbf16> to vector<512x512xbf16>
    %47 = vector.extract_strided_slice %0 {offsets = [5, 0], sizes = [1, 512], strides = [1, 1]} : vector<8x512xf32> to vector<1x512xf32>
    %48 = vector.extract_strided_slice %0 {offsets = [6, 0], sizes = [1, 512], strides = [1, 1]} : vector<8x512xf32> to vector<1x512xf32>
    %49 = arith.truncf %42 : vector<16x512xf32> to vector<16x512xbf16>
    %cst_25 = arith.constant dense<0.000000e+00> : vector<16x512xf32>
    %50 = tpu.matmul %49, %44, %cst_25 {dimension_numbers = #tpu.dot_dimension_numbers<[1], [0], [0], [1], [0, 0, 1, 1], [], []>} : vector<16x512xbf16>, vector<512x512xbf16>, vector<16x512xf32> -> vector<16x512xf32>
    %51 = vector.broadcast %47 : vector<1x512xf32> to vector<16x512xf32>
    %52 = arith.addf %50, %51 : vector<16x512xf32>
    %cst_26 = arith.constant 0.000000e+00 : f32
    %53 = vector.broadcast %cst_26 : f32 to vector<16x512xf32>
    %54 = arith.maximumf %52, %53 : vector<16x512xf32>
    %55 = arith.truncf %54 : vector<16x512xf32> to vector<16x512xbf16>
    %cst_27 = arith.constant dense<0.000000e+00> : vector<16x512xf32>
    %56 = tpu.matmul %55, %46, %cst_27 {dimension_numbers = #tpu.dot_dimension_numbers<[1], [0], [0], [1], [0, 0, 1, 1], [], []>} : vector<16x512xbf16>, vector<512x512xbf16>, vector<16x512xf32> -> vector<16x512xf32>
    %57 = vector.broadcast %48 : vector<1x512xf32> to vector<16x512xf32>
    %58 = arith.addf %56, %57 : vector<16x512xf32>
    %59 = arith.addf %42, %58 : vector<16x512xf32>
    %60 = arith.truncf %59 : vector<16x512xf32> to vector<16x512xbf16>
    %c0_28 = arith.constant 0 : index
    %c0_29 = arith.constant 0 : index
    %61 = vector.load %arg4[%c0_28, %c0_29] : memref<512x128xbf16, #tpu.memory_space<vmem>>, vector<512x128xbf16>
    %cst_30 = arith.constant dense<0.000000e+00> : vector<16x128xf32>
    %62 = tpu.matmul %60, %61, %cst_30 {dimension_numbers = #tpu.dot_dimension_numbers<[1], [0], [0], [1], [0, 0, 1, 1], [], []>} : vector<16x512xbf16>, vector<512x128xbf16>, vector<16x128xf32> -> vector<16x128xf32>
    %63 = vector.extract_strided_slice %0 {offsets = [7, 0], sizes = [1, 128], strides = [1, 1]} : vector<8x512xf32> to vector<1x128xf32>
    %64 = vector.broadcast %63 : vector<1x128xf32> to vector<16x128xf32>
    %65 = arith.addf %62, %64 : vector<16x128xf32>
    %66 = tpu.iota {dimensions = array<i32: 1>} : vector<16x128xi32>
    %c43_i32 = arith.constant 43 : i32
    %67 = vector.broadcast %c43_i32 : i32 to vector<16x128xi32>
    %68 = arith.cmpi slt, %66, %67 : vector<16x128xi32>
    %cst_31 = arith.constant 0xFF800000 : f32
    %69 = vector.broadcast %cst_31 : f32 to vector<16x128xf32>
    %70 = arith.select %68, %65, %69 : vector<16x128xi1>, vector<16x128xf32>
    %cst_32 = arith.constant dense<0xFF800000> : vector<16xf32>
    %71 = vector.multi_reduction <maximumf>, %70, %cst_32 [1] : vector<16x128xf32> to vector<16xf32>
    %72 = vector.shape_cast %71 : vector<16xf32> to vector<16x1xf32>
    %73 = vector.broadcast %72 : vector<16x1xf32> to vector<16x128xf32>
    %74 = arith.subf %70, %73 : vector<16x128xf32>
    %75 = math.exp %74 : vector<16x128xf32>
    %cst_33 = arith.constant dense<0.000000e+00> : vector<16xf32>
    %76 = vector.multi_reduction <add>, %75, %cst_33 [1] : vector<16x128xf32> to vector<16xf32>
    %77 = vector.shape_cast %76 : vector<16xf32> to vector<16x1xf32>
    %78 = tpu.reciprocal %77 {approx = true} : vector<16x1xf32> -> vector<16x1xf32>
    %79 = arith.mulf %77, %78 : vector<16x1xf32>
    %cst_34 = arith.constant 2.000000e+00 : f32
    %80 = vector.broadcast %cst_34 : f32 to vector<16x1xf32>
    %81 = arith.subf %80, %79 : vector<16x1xf32>
    %82 = arith.mulf %78, %81 : vector<16x1xf32>
    %83 = vector.broadcast %82 : vector<16x1xf32> to vector<16x128xf32>
    %84 = arith.mulf %75, %83 : vector<16x128xf32>
    %c0_35 = arith.constant 0 : index
    %c0_36 = arith.constant 0 : index
    %85 = vector.load %arg6[%c0_35, %c0_36] : memref<16x128xf32, #tpu.memory_space<vmem>>, vector<16x128xf32>
    tpu.vector_store %arg6[%c0_35, %c0_36], %84 {strides = array<i32>} : memref<16x128xf32, #tpu.memory_space<vmem>>, vector<16x128xf32>,
    return
  }
  func.func @transform_0(%arg0: i32) -> (i32, i32) {
    %c0_i32 = arith.constant 0 : i32
    %c0_i32_0 = arith.constant 0 : i32
    return %arg0, %c0_i32 : i32, i32
  }
  func.func @transform_1(%arg0: i32) -> (i32, i32) {
    %c0_i32 = arith.constant 0 : i32
    %c0_i32_0 = arith.constant 0 : i32
    %c0_i32_1 = arith.constant 0 : i32
    return %c0_i32, %c0_i32_0 : i32, i32
  }
  func.func @transform_2(%arg0: i32) -> (i32, i32, i32) {
    %c0_i32 = arith.constant 0 : i32
    %c0_i32_0 = arith.constant 0 : i32
    %c0_i32_1 = arith.constant 0 : i32
    %c0_i32_2 = arith.constant 0 : i32
    return %c0_i32, %c0_i32_0, %c0_i32_1 : i32, i32, i32
  }
  func.func @transform_3(%arg0: i32) -> (i32, i32) {
    %c0_i32 = arith.constant 0 : i32
    %c0_i32_0 = arith.constant 0 : i32
    %c0_i32_1 = arith.constant 0 : i32
    return %c0_i32, %c0_i32_0 : i32, i32
  }
  func.func @transform_4(%arg0: i32) -> (i32, i32) {
    %c0_i32 = arith.constant 0 : i32
    %c0_i32_0 = arith.constant 0 : i32
    %c0_i32_1 = arith.constant 0 : i32
    return %c0_i32, %c0_i32_0 : i32, i32
  }
  func.func @transform_5(%arg0: i32) -> (i32, i32) {
    %c0_i32 = arith.constant 0 : i32
    %c0_i32_0 = arith.constant 0 : i32
    return %arg0, %c0_i32 : i32, i32
  }
}

</mosaic_0001>

<bundles_post_ra>
// kernel: resnet_forward.1
= control target key start
LH: loop header
LB: loop body
LE: loop exit
PB: predicated region body
PF: predicated region fallthrough
CT: control target
= control target key end

     0   :  { %10 = vsyncpa [#allocation3], 0  ;;  %s11897_s0 = inlined_call_operand.vmem [shape: bf16[16,1152], index: 0, kind: input, shape index: {}]   ;;  %s11898_s1 = inlined_call_operand.hbm [shape: bf16[1152,512], index: 1, kind: input, shape index: {}]   ;;  %s11899_s2 = inlined_call_operand.hbm [shape: bf16[6,512,512], index: 2, kind: input, shape index: {}]   ;;  %s11900_s3 = inlined_call_operand.hbm [shape: bf16[512,128], index: 3, kind: input, shape index: {}]   ;;  %s11901_s4 = inlined_call_operand.hbm [shape: f32[8,512], index: 4, kind: input, shape index: {}]   ;;  %s11902_s5 = inlined_call_operand.vmem [shape: f32[16,128], index: 5, kind: output, shape index: {}]  }
   0x1   :  { %11 = vsyncpa [#allocation5], 0 }
   0x2   :  { %12 = vsyncpa [#allocation8], 0  ;;  %s11541_s18 = smov [#allocation4]   ;;  %s11542_s20 = smov [#allocation2]  }
   0x3   :  { %s32_s19 = sshll.u32 %s11541_s18, 4  ;;  %s20_s21 = sshll.u32 %s11542_s20, 4  ;;  %s33_s19 = int_to_ptr.vmem [resolvable:$true] %s32_s19  ;;  %s11580_s21 = int_to_ptr.vmem [resolvable:$true] %s20_s21 }
   0x4   :  { %s11447_s24 = scalar_lea.hbm %s11899_s2, 98304 }
   0x5   :  { %p11448_p0 = scmp.ne.s32.totalorder %s11899_s2, %s11447_s24  ;;  %p11451_p1 = scmp.lt.u32.totalorder %s11447_s24, %s11899_s2 }
   0x7   :  { %p11453_p2 = pnand %p11451_p1, %p11448_p0 }
   0x9   :  { %11456 = shalt.err (!%p11453_p2)
}
   0xa   :  { %s11457_s29 = scalar_lea.vmem %s33_s19, 98304  ;;  %p11462_p4 = scmp.lt.s32.totalorder %s33_s19, %s33_s19 }
   0xb   :  { %p11458_p3 = scmp.ne.s32.totalorder %s33_s19, %s11457_s29  ;;  %p11463_p5 = scmp.lt.s32.totalorder %s11457_s29, %s11457_s29 }
   0xd   :  { %p11464_p6 = por %p11463_p5, %p11462_p4 }
   0xf   :  { %p11465_p7 = pnand %p11464_p6, %p11458_p3 }
  0x11   :  { %11468 = shalt.err (!%p11465_p7)
}
  0x12   :  { %s11543_s30 = smov 256   ;;  %s11544_s6 = smov 16  }
  0x13   :  { %38 = dma.hbm_to_vmem [thread:$0]  %s11899_s2, 98304, %s33_s19, [#allocation5], %s11543_s30, %s11543_s30, %s11544_s6  }
  0x14   :  { %s11469_s11 = scalar_lea.hbm %s11898_s1, 36864 }
  0x15   :  { %p11470_p8 = scmp.ne.s32.totalorder %s11898_s1, %s11469_s11  ;;  %p11473_p9 = scmp.lt.u32.totalorder %s11469_s11, %s11898_s1 }
  0x17   :  { %p11475_p10 = pnand %p11473_p9, %p11470_p8 }
  0x19   :  { %11478 = shalt.err (!%p11475_p10)
}
  0x1a   :  { %s11479_s16 = scalar_lea.vmem %s11580_s21, 36864  ;;  %p11484_p12 = scmp.lt.s32.totalorder %s11580_s21, %s11580_s21 }
  0x1b   :  { %p11480_p11 = scmp.ne.s32.totalorder %s11580_s21, %s11479_s16  ;;  %p11485_p13 = scmp.lt.s32.totalorder %s11479_s16, %s11479_s16 }
  0x1d   :  { %p11486_p0 = por %p11485_p13, %p11484_p12 }
  0x1f   :  { %p11487_p1 = pnand %p11486_p0, %p11480_p11 }
  0x21   :  { %11490 = shalt.err (!%p11487_p1)
}
  0x22   :  { %26 = dma.hbm_to_vmem [thread:$0]  %s11898_s1, 36864, %s11580_s21, [#allocation3], %s11543_s30, %s11543_s30, %s11544_s6  }
  0x23   :  { %s11545_s18 = smov [#allocation6]   ;;  %s11491_s23 = scalar_lea.hbm %s11900_s3, 4096 }
  0x24   :  { %s44_s19 = sshll.u32 %s11545_s18, 4  ;;  %p11492_p2 = scmp.ne.s32.totalorder %s11900_s3, %s11491_s23  ;;  %s45_s19 = int_to_ptr.vmem [resolvable:$true] %s44_s19 }
  0x25   :  { %p11495_p3 = scmp.lt.u32.totalorder %s11491_s23, %s11900_s3 }
  0x27   :  { %p11497_p4 = pnand %p11495_p3, %p11492_p2 }
  0x29   :  { %11500 = shalt.err (!%p11497_p4)
}
  0x2a   :  { %s11501_s28 = scalar_lea.vmem %s45_s19, 4096  ;;  %p11506_p6 = scmp.lt.s32.totalorder %s45_s19, %s45_s19 }
  0x2b   :  { %p11502_p5 = scmp.ne.s32.totalorder %s45_s19, %s11501_s28  ;;  %p11507_p7 = scmp.lt.s32.totalorder %s11501_s28, %s11501_s28 }
  0x2d   :  { %p11508_p8 = por %p11507_p7, %p11506_p6 }
  0x2f   :  { %p11509_p9 = pnand %p11508_p8, %p11502_p5 }
  0x31   :  { %11512 = shalt.err (!%p11509_p9)
}
  0x32   :  { %s11546_s1 = smov 64   ;;  %s11547_s21 = smov 4  }
  0x33   :  { %50 = dma.hbm_to_vmem [thread:$0]  %s11900_s3, 4096, %s45_s19, [#allocation5], %s11546_s1, %s11546_s1, %s11547_s21  }
  0x34   :  { %s11548_s6 = smov [#allocation7]   ;;  %s11513_s10 = scalar_lea.hbm %s11901_s4, 512 }
  0x35   :  { %s57_s7 = sshll.u32 %s11548_s6, 4  ;;  %p11514_p10 = scmp.ne.s32.totalorder %s11901_s4, %s11513_s10  ;;  %s58_s7 = int_to_ptr.vmem [resolvable:$true] %s57_s7 }
  0x36   :  { %p11517_p11 = scmp.lt.u32.totalorder %s11513_s10, %s11901_s4 }
  0x38   :  { %p11519_p12 = pnand %p11517_p11, %p11514_p10 }
  0x3a   :  { %11522 = shalt.err (!%p11519_p12)
}
  0x3b   :  { %s11523_s15 = scalar_lea.vmem %s58_s7, 512  ;;  %p11528_p0 = scmp.lt.s32.totalorder %s58_s7, %s58_s7 }
  0x3c   :  { %p11524_p13 = scmp.ne.s32.totalorder %s58_s7, %s11523_s15  ;;  %p11529_p1 = scmp.lt.s32.totalorder %s11523_s15, %s11523_s15 }
  0x3e   :  { %p11530_p2 = por %p11529_p1, %p11528_p0 }
  0x40   :  { %p11531_p3 = pnand %p11530_p2, %p11524_p13 }
  0x42   :  { %11534 = shalt.err (!%p11531_p3)
}
  0x43   :  { %60 = dma.hbm_to_vmem [thread:$0]  %s11901_s4, 512, %s58_s7, [#allocation8]  }
  0x44   :  { %11535 = dma.done.wait [#allocation3], 36864  }
  0x45   :  { %11536 = vsyncadd [#allocation3], 4294930432 }
  0x46   :  { %11537 = dma.done.wait [#allocation5], 102400  }
  0x47   :  { %11538 = vsyncadd [#allocation5], 4294864896 }
  0x48   :  { %11539 = dma.done.wait [#allocation8], 512  }
  0x49   :  { %11540 = vsyncadd [#allocation8], 4294966784  ;;  %v9799_v0 = vld [vmem:[#allocation2 + $0x4] ss:$16 sps:$4 sm:$0xff]   ;;  %v9801_v1 = vld [vmem:[#allocation2 + $0xc] ss:$16 sps:$4 sm:$0xff]  }
  0x4a   :  { %1878 = vmatprep.subr.bf16.mxu0 %v9799_v0  ;;  %v9803_v2 = vld [vmem:[#allocation2] ss:$16 sps:$4 sm:$0xff]   ;;  %v9804_v3 = vld [vmem:[#allocation2 + $0x8] ss:$16 sps:$4 sm:$0xff]   ;;  %2093 = vmatprep.subr.bf16.mxu1 %v9801_v1  ;;  %v9805_v4 = vld [vmem:[#allocation2 + $0x24] ss:$16 sps:$4 sm:$0xff]  }
  0x4b   :  { %1879 = vmatpush1.bf16.msra.mxu0 %v9803_v2  ;;  %2094 = vmatpush1.bf16.msra.mxu1 %v9804_v3  ;;  %v9807_v5 = vld [vmem:[#allocation2 + $0x2c] ss:$16 sps:$4 sm:$0xff]   ;;  %v9809_v6 = vld [vmem:[#allocation2 + $0x20] ss:$16 sps:$4 sm:$0xff]   ;;  %v9810_v7 = vld [vmem:[#allocation2 + $0x28] ss:$16 sps:$4 sm:$0xff]  }
  0x4c   :  { %1880 = vmatprep.subr.bf16.mxu0 %v9805_v4  ;;  %2095 = vmatprep.subr.bf16.mxu1 %v9807_v5  ;;  %v9811_v8 = vld [vmem:[#allocation2 + $0x44] ss:$16 sps:$4 sm:$0xff]   ;;  %v9813_v9 = vld [vmem:[#allocation2 + $0x4c] ss:$16 sps:$4 sm:$0xff]   ;;  %v9815_v10 = vld [vmem:[#allocation2 + $0x40] ss:$16 sps:$4 sm:$0xff]  }
  0x4d   :  { %v9816_v11 = vld [vmem:[#allocation2 + $0x48] ss:$16 sps:$4 sm:$0xff]   ;;  %v9817_v12 = vld [vmem:[#allocation2 + $0x64] ss:$16 sps:$4 sm:$0xff]   ;;  %v9819_v13 = vld [vmem:[#allocation2 + $0x6c] ss:$16 sps:$4 sm:$0xff]  }
  0x4e   :  { %v9821_v14 = vld [vmem:[#allocation2 + $0x60] ss:$16 sps:$4 sm:$0xff]   ;;  %v9822_v15 = vld [vmem:[#allocation2 + $0x68] ss:$16 sps:$4 sm:$0xff]   ;;  %v9823_v16 = vld [vmem:[#allocation2 + $0x84] ss:$16 sps:$4 sm:$0xff]  }
  0x4f   :  { %1881 = vmatpush1.bf16.msra.mxu0 %v9809_v6  ;;  %2096 = vmatpush1.bf16.msra.mxu1 %v9810_v7  ;;  %v9825_v17 = vld [vmem:[#allocation2 + $0x8c] ss:$16 sps:$4 sm:$0xff]   ;;  %v9827_v18 = vld [vmem:[#allocation2 + $0x80] ss:$16 sps:$4 sm:$0xff]   ;;  %v9828_v19 = vld [vmem:[#allocation2 + $0x88] ss:$16 sps:$4 sm:$0xff]  }
  0x50   :  { %1882 = vmatprep.subr.bf16.mxu0 %v9811_v8  ;;  %2097 = vmatprep.subr.bf16.mxu1 %v9813_v9  ;;  %v9829_v20 = vld [vmem:[#allocation2 + $0xa4] ss:$16 sps:$4 sm:$0xff]   ;;  %v9831_v21 = vld [vmem:[#allocation2 + $0xac] ss:$16 sps:$4 sm:$0xff]   ;;  %v9833_v22 = vld [vmem:[#allocation2 + $0xa0] ss:$16 sps:$4 sm:$0xff]  }
  0x51   :  { %v9834_v23 = vld [vmem:[#allocation2 + $0xa8] ss:$16 sps:$4 sm:$0xff]   ;;  %v9835_v24 = vld [vmem:[#allocation2 + $0xc4] ss:$16 sps:$4 sm:$0xff]   ;;  %v9837_v25 = vld [vmem:[#allocation2 + $0xcc] ss:$16 sps:$4 sm:$0xff]  }
  0x52   :  { %v9839_v26 = vld [vmem:[#allocation2 + $0xc0] ss:$16 sps:$4 sm:$0xff]   ;;  %v9840_v27 = vld [vmem:[#allocation2 + $0xc8] ss:$16 sps:$4 sm:$0xff]   ;;  %v9841_v28 = vld [vmem:[#allocation2 + $0xe4] ss:$16 sps:$4 sm:$0xff]  }
  0x53   :  { %1883 = vmatpush1.bf16.msra.mxu0 %v9815_v10  ;;  %2098 = vmatpush1.bf16.msra.mxu1 %v9816_v11  ;;  %v9843_v29 = vld [vmem:[#allocation2 + $0xec] ss:$16 sps:$4 sm:$0xff]   ;;  %v9845_v30 = vld [vmem:[#allocation2 + $0xe0] ss:$16 sps:$4 sm:$0xff]   ;;  %v9846_v31 = vld [vmem:[#allocation2 + $0xe8] ss:$16 sps:$4 sm:$0xff]  }
  0x54   :  { %1884 = vmatprep.subr.bf16.mxu0 %v9817_v12  ;;  %2099 = vmatprep.subr.bf16.mxu1 %v9819_v13  ;;  %v9847_v32 = vld [vmem:[#allocation2 + $0x104] ss:$16 sps:$4 sm:$0xff]   ;;  %v9849_v33 = vld [vmem:[#allocation2 + $0x10c] ss:$16 sps:$4 sm:$0xff]   ;;  %v9851_v34 = vld [vmem:[#allocation2 + $0x100] ss:$16 sps:$4 sm:$0xff]  }
  0x55   :  { %v9852_v35 = vld [vmem:[#allocation2 + $0x108] ss:$16 sps:$4 sm:$0xff]   ;;  %v9853_v36 = vld [vmem:[#allocation2 + $0x124] ss:$16 sps:$4 sm:$0xff]   ;;  %v9855_v37 = vld [vmem:[#allocation2 + $0x12c] ss:$16 sps:$4 sm:$0xff]  }
  0x56   :  { %v9857_v38 = vld [vmem:[#allocation2 + $0x120] ss:$16 sps:$4 sm:$0xff]   ;;  %v9858_v39 = vld [vmem:[#allocation2 + $0x128] ss:$16 sps:$4 sm:$0xff]   ;;  %v9859_v40 = vld [vmem:[#allocation2 + $0x144] ss:$16 sps:$4 sm:$0xff]  }
  0x57   :  { %1885 = vmatpush1.bf16.msra.mxu0 %v9821_v14  ;;  %2100 = vmatpush1.bf16.msra.mxu1 %v9822_v15  ;;  %v9861_v41 = vld [vmem:[#allocation2 + $0x14c] ss:$16 sps:$4 sm:$0xff]   ;;  %v9863_v42 = vld [vmem:[#allocation2 + $0x140] ss:$16 sps:$4 sm:$0xff]   ;;  %v9864_v43 = vld [vmem:[#allocation2 + $0x148] ss:$16 sps:$4 sm:$0xff]  }
  0x58   :  { %1886 = vmatprep.subr.bf16.mxu0 %v9823_v16  ;;  %2101 = vmatprep.subr.bf16.mxu1 %v9825_v17  ;;  %v9865_v44 = vld [vmem:[#allocation2 + $0x164] ss:$16 sps:$4 sm:$0xff]   ;;  %v9867_v45 = vld [vmem:[#allocation2 + $0x16c] ss:$16 sps:$4 sm:$0xff]   ;;  %v9869_v46 = vld [vmem:[#allocation2 + $0x160] ss:$16 sps:$4 sm:$0xff]  }
  0x59   :  { %v9870_v47 = vld [vmem:[#allocation2 + $0x168] ss:$16 sps:$4 sm:$0xff]   ;;  %v9871_v49 = vld [vmem:[#allocation2 + $0x184] ss:$16 sps:$4 sm:$0xff]   ;;  %v9873_v50 = vld [vmem:[#allocation2 + $0x18c] ss:$16 sps:$4 sm:$0xff]  }
  0x5a   :  { %v9897_v48 = vld [vmem:[%s11897_s0 + $0x4] ss:$36 sps:$4 sm:$0xff]   ;;  %v9875_v51 = vld [vmem:[#allocation2 + $0x180] ss:$16 sps:$4 sm:$0xff]   ;;  %v9879_v54 = vld [vmem:[#allocation2 + $0x1ac] ss:$16 sps:$4 sm:$0xff]  }
  0x5b   :  { %1887 = vmatpush1.bf16.msra.mxu0 %v9827_v18  ;;  %2102 = vmatpush1.bf16.msra.mxu1 %v9828_v19  ;;  %v9876_v52 = vld [vmem:[#allocation2 + $0x188] ss:$16 sps:$4 sm:$0xff]   ;;  %v9877_v53 = vld [vmem:[#allocation2 + $0x1a4] ss:$16 sps:$4 sm:$0xff]   ;;  %v9881_v55 = vld [vmem:[#allocation2 + $0x1a0] ss:$16 sps:$4 sm:$0xff]  }
  0x5c   :  { %1888 = vmatprep.subr.bf16.mxu0 %v9829_v20  ;;  %2103 = vmatprep.subr.bf16.mxu1 %v9831_v21  ;;  %v9882_v56 = vld [vmem:[#allocation2 + $0x1a8] ss:$16 sps:$4 sm:$0xff]   ;;  %v9883_v57 = vld [vmem:[#allocation2 + $0x1c4] ss:$16 sps:$4 sm:$0xff]   ;;  %v9885_v58 = vld [vmem:[#allocation2 + $0x1cc] ss:$16 sps:$4 sm:$0xff]  }
  0x5d   :  { %1910 = vmatprep.mubr.bf16.mxu0 %v9897_v48  ;;  %2125 = vmatprep.mubr.bf16.mxu1 %v9897_v48  ;;  %v9887_v59 = vld [vmem:[#allocation2 + $0x1c0] ss:$16 sps:$4 sm:$0xff]   ;;  %v9888_v60 = vld [vmem:[#allocation2 + $0x1c8] ss:$16 sps:$4 sm:$0xff]   ;;  %v9889_v61 = vld [vmem:[#allocation2 + $0x1e4] ss:$16 sps:$4 sm:$0xff]  }
  0x5e   :  { %v9891_v62 = vld [vmem:[#allocation2 + $0x1ec] ss:$16 sps:$4 sm:$0xff]   ;;  %v9893_v63 = vld [vmem:[#allocation2 + $0x1e0] ss:$16 sps:$4 sm:$0xff]   ;;  %v9894_v0 = vld [vmem:[#allocation2 + $0x1e8] ss:$16 sps:$4 sm:$0xff]  }
  0x5f   :  { %1889 = vmatpush1.bf16.msra.mxu0 %v9833_v22  ;;  %2104 = vmatpush1.bf16.msra.mxu1 %v9834_v23  ;;  %v9900_v1 = vld [vmem:[#allocation2 + $0x204] ss:$16 sps:$4 sm:$0xff]   ;;  %v9903_v2 = vld [vmem:[#allocation2 + $0x20c] ss:$16 sps:$4 sm:$0xff]   ;;  %v9898_v4 = vld [vmem:[#allocation2 + $0x200] ss:$16 sps:$4 sm:$0xff]  }
  0x60   :  { %1890 = vmatprep.subr.bf16.mxu0 %v9835_v24  ;;  %2105 = vmatprep.subr.bf16.mxu1 %v9837_v25  ;;  %v9895_v3 = vld [vmem:[%s11897_s0] ss:$36 sps:$4 sm:$0xff]   ;;  %v9901_v5 = vld [vmem:[#allocation2 + $0x208] ss:$16 sps:$4 sm:$0xff]   ;;  %v9909_v7 = vld [vmem:[#allocation2 + $0x22c] ss:$16 sps:$4 sm:$0xff]  }
  0x61   :  { %v9906_v6 = vld [vmem:[#allocation2 + $0x224] ss:$16 sps:$4 sm:$0xff]   ;;  %v9904_v8 = vld [vmem:[#allocation2 + $0x220] ss:$16 sps:$4 sm:$0xff]   ;;  %v9907_v9 = vld [vmem:[#allocation2 + $0x228] ss:$16 sps:$4 sm:$0xff]  }
  0x62   :  { %v9912_v10 = vld [vmem:[#allocation2 + $0x244] ss:$16 sps:$4 sm:$0xff]   ;;  %v9915_v11 = vld [vmem:[#allocation2 + $0x24c] ss:$16 sps:$4 sm:$0xff]   ;;  %v9910_v12 = vld [vmem:[#allocation2 + $0x240] ss:$16 sps:$4 sm:$0xff]  }
  0x63   :  { %1891 = vmatpush1.bf16.msra.mxu0 %v9839_v26  ;;  %2106 = vmatpush1.bf16.msra.mxu1 %v9840_v27  ;;  %v9913_v13 = vld [vmem:[#allocation2 + $0x248] ss:$16 sps:$4 sm:$0xff]   ;;  %v9918_v14 = vld [vmem:[#allocation2 + $0x264] ss:$16 sps:$4 sm:$0xff]   ;;  %v9921_v15 = vld [vmem:[#allocation2 + $0x26c] ss:$16 sps:$4 sm:$0xff]  }
  0x64   :  { %1892 = vmatprep.subr.bf16.mxu0 %v9841_v28  ;;  %2107 = vmatprep.subr.bf16.mxu1 %v9843_v29  ;;  %v9916_v16 = vld [vmem:[#allocation2 + $0x260] ss:$16 sps:$4 sm:$0xff]   ;;  %v9919_v17 = vld [vmem:[#allocation2 + $0x268] ss:$16 sps:$4 sm:$0xff]   ;;  %v9924_v18 = vld [vmem:[#allocation2 + $0x284] ss:$16 sps:$4 sm:$0xff]  }
  0x65   :  { %v9927_v19 = vld [vmem:[#allocation2 + $0x28c] ss:$16 sps:$4 sm:$0xff]   ;;  %v9922_v20 = vld [vmem:[#allocation2 + $0x280] ss:$16 sps:$4 sm:$0xff]   ;;  %v9925_v21 = vld [vmem:[#allocation2 + $0x288] ss:$16 sps:$4 sm:$0xff]  }
  0x66   :  { %v9930_v22 = vld [vmem:[#allocation2 + $0x2a4] ss:$16 sps:$4 sm:$0xff]   ;;  %v9933_v23 = vld [vmem:[#allocation2 + $0x2ac] ss:$16 sps:$4 sm:$0xff]   ;;  %v9928_v24 = vld [vmem:[#allocation2 + $0x2a0] ss:$16 sps:$4 sm:$0xff]  }
  0x67   :  { %1893 = vmatpush1.bf16.msra.mxu0 %v9845_v30  ;;  %2108 = vmatpush1.bf16.msra.mxu1 %v9846_v31  ;;  %v9931_v25 = vld [vmem:[#allocation2 + $0x2a8] ss:$16 sps:$4 sm:$0xff]   ;;  %v9936_v26 = vld [vmem:[#allocation2 + $0x2c4] ss:$16 sps:$4 sm:$0xff]   ;;  %v9939_v27 = vld [vmem:[#allocation2 + $0x2cc] ss:$16 sps:$4 sm:$0xff]  }
  0x68   :  { %1894 = vmatprep.subr.bf16.mxu0 %v9847_v32  ;;  %2109 = vmatprep.subr.bf16.mxu1 %v9849_v33  ;;  %v9934_v28 = vld [vmem:[#allocation2 + $0x2c0] ss:$16 sps:$4 sm:$0xff]   ;;  %v9937_v29 = vld [vmem:[#allocation2 + $0x2c8] ss:$16 sps:$4 sm:$0xff]   ;;  %v9942_v31 = vld [vmem:[#allocation2 + $0x2e4] ss:$16 sps:$4 sm:$0xff]  }
  0x69   :  { %v9996_v30 = vld [vmem:[%s11897_s0 + $0xc] ss:$36 sps:$4 sm:$0xff]  }
  0x6a   :  { %v9945_v32 = vld [vmem:[#allocation2 + $0x2ec] ss:$16 sps:$4 sm:$0xff]   ;;  %v9940_v33 = vld [vmem:[#allocation2 + $0x2e0] ss:$16 sps:$4 sm:$0xff]  }
  0x6b   :  { %1895 = vmatpush1.bf16.msra.mxu0 %v9851_v34  ;;  %2110 = vmatpush1.bf16.msra.mxu1 %v9852_v35  ;;  %v9943_v34 = vld [vmem:[#allocation2 + $0x2e8] ss:$16 sps:$4 sm:$0xff]   ;;  %v9948_v35 = vld [vmem:[#allocation2 + $0x304] ss:$16 sps:$4 sm:$0xff]   ;;  %v9969_v48 = vld [vmem:[#allocation2 + $0x36c] ss:$16 sps:$4 sm:$0xff]  }
  0x6c   :  { %1896 = vmatprep.subr.bf16.mxu0 %v9853_v36  ;;  %2111 = vmatprep.subr.bf16.mxu1 %v9855_v37  ;;  %v9951_v36 = vld [vmem:[#allocation2 + $0x30c] ss:$16 sps:$4 sm:$0xff]   ;;  %v9946_v37 = vld [vmem:[#allocation2 + $0x300] ss:$16 sps:$4 sm:$0xff]  }
  0x6f   :  { %1897 = vmatpush1.bf16.msra.mxu0 %v9857_v38  ;;  %2112 = vmatpush1.bf16.msra.mxu1 %v9858_v39  ;;  %v9949_v38 = vld [vmem:[#allocation2 + $0x308] ss:$16 sps:$4 sm:$0xff]   ;;  %v9954_v39 = vld [vmem:[#allocation2 + $0x324] ss:$16 sps:$4 sm:$0xff]  }
  0x70   :  { %1898 = vmatprep.subr.bf16.mxu0 %v9859_v40  ;;  %2113 = vmatprep.subr.bf16.mxu1 %v9861_v41  ;;  %v9957_v40 = vld [vmem:[#allocation2 + $0x32c] ss:$16 sps:$4 sm:$0xff]   ;;  %v9952_v41 = vld [vmem:[#allocation2 + $0x320] ss:$16 sps:$4 sm:$0xff]  }
  0x73   :  { %1899 = vmatpush1.bf16.msra.mxu0 %v9863_v42  ;;  %2114 = vmatpush1.bf16.msra.mxu1 %v9864_v43  ;;  %v9955_v42 = vld [vmem:[#allocation2 + $0x328] ss:$16 sps:$4 sm:$0xff]   ;;  %v9960_v43 = vld [vmem:[#allocation2 + $0x344] ss:$16 sps:$4 sm:$0xff]  }
  0x74   :  { %1900 = vmatprep.subr.bf16.mxu0 %v9865_v44  ;;  %2115 = vmatprep.subr.bf16.mxu1 %v9867_v45  ;;  %v9963_v44 = vld [vmem:[#allocation2 + $0x34c] ss:$16 sps:$4 sm:$0xff]   ;;  %v9958_v45 = vld [vmem:[#allocation2 + $0x340] ss:$16 sps:$4 sm:$0xff]  }
  0x77   :  { %1901 = vmatpush1.bf16.msra.mxu0 %v9869_v46  ;;  %2116 = vmatpush1.bf16.msra.mxu1 %v9870_v47  ;;  %v9961_v46 = vld [vmem:[#allocation2 + $0x348] ss:$16 sps:$4 sm:$0xff]   ;;  %v9966_v47 = vld [vmem:[#allocation2 + $0x364] ss:$16 sps:$4 sm:$0xff]  }
  0x78   :  { %1902 = vmatprep.subr.bf16.mxu0 %v9871_v49  ;;  %2117 = vmatprep.subr.bf16.mxu1 %v9873_v50  ;;  %v9964_v49 = vld [vmem:[#allocation2 + $0x360] ss:$16 sps:$4 sm:$0xff]   ;;  %v9967_v50 = vld [vmem:[#allocation2 + $0x368] ss:$16 sps:$4 sm:$0xff]  }
  0x7b   :  { %1903 = vmatpush1.bf16.msra.mxu0 %v9875_v51  ;;  %2118 = vmatpush1.bf16.msra.mxu1 %v9876_v52  ;;  %v9972_v51 = vld [vmem:[#allocation2 + $0x384] ss:$16 sps:$4 sm:$0xff]   ;;  %v9975_v52 = vld [vmem:[#allocation2 + $0x38c] ss:$16 sps:$4 sm:$0xff]  }
  0x7c   :  { %1904 = vmatprep.subr.bf16.mxu0 %v9877_v53  ;;  %2119 = vmatprep.subr.bf16.mxu1 %v9879_v54  ;;  %v9970_v53 = vld [vmem:[#allocation2 + $0x380] ss:$16 sps:$4 sm:$0xff]   ;;  %v9973_v54 = vld [vmem:[#allocation2 + $0x388] ss:$16 sps:$4 sm:$0xff]  }
  0x7f   :  { %1905 = vmatpush1.bf16.msra.mxu0 %v9881_v55  ;;  %2120 = vmatpush1.bf16.msra.mxu1 %v9882_v56  ;;  %v9978_v55 = vld [vmem:[#allocation2 + $0x3a4] ss:$16 sps:$4 sm:$0xff]   ;;  %v9981_v56 = vld [vmem:[#allocation2 + $0x3ac] ss:$16 sps:$4 sm:$0xff]  }
  0x80   :  { %1906 = vmatprep.subr.bf16.mxu0 %v9883_v57  ;;  %2121 = vmatprep.subr.bf16.mxu1 %v9885_v58  ;;  %v9976_v57 = vld [vmem:[#allocation2 + $0x3a0] ss:$16 sps:$4 sm:$0xff]   ;;  %v9979_v58 = vld [vmem:[#allocation2 + $0x3a8] ss:$16 sps:$4 sm:$0xff]  }
  0x83   :  { %1907 = vmatpush1.bf16.msra.mxu0 %v9887_v59  ;;  %2122 = vmatpush1.bf16.msra.mxu1 %v9888_v60  ;;  %v9984_v59 = vld [vmem:[#allocation2 + $0x3c4] ss:$16 sps:$4 sm:$0xff]   ;;  %v9987_v60 = vld [vmem:[#allocation2 + $0x3cc] ss:$16 sps:$4 sm:$0xff]  }
  0x84   :  { %1908 = vmatprep.subr.bf16.mxu0 %v9889_v61  ;;  %2123 = vmatprep.subr.bf16.mxu1 %v9891_v62  ;;  %v9982_v61 = vld [vmem:[#allocation2 + $0x3c0] ss:$16 sps:$4 sm:$0xff]   ;;  %v9985_v62 = vld [vmem:[#allocation2 + $0x3c8] ss:$16 sps:$4 sm:$0xff]  }
  0x87   :  { %1909 = vmatpush1.bf16.msra.mxu0 %v9893_v63  ;;  %2124 = vmatpush1.bf16.msra.mxu1 %v9894_v0  ;;  %v9990_v63 = vld [vmem:[#allocation2 + $0x3e4] ss:$16 sps:$4 sm:$0xff]   ;;  %v9993_v0 = vld [vmem:[#allocation2 + $0x3ec] ss:$16 sps:$4 sm:$0xff]  }
  0x88   :  { %1921 = vmatprep.subr.bf16.mxu0 %v9900_v1  ;;  %2136 = vmatprep.subr.bf16.mxu1 %v9903_v2  ;;  %v9988_v1 = vld [vmem:[#allocation2 + $0x3e0] ss:$16 sps:$4 sm:$0xff]   ;;  %v9991_v2 = vld [vmem:[#allocation2 + $0x3e8] ss:$16 sps:$4 sm:$0xff]  }
  0x8a   :  { %1911 = vmatmul.mubr.bf16.vlgmr.msra.gmra.mrb[0].mxu0 %v9895_v3  ;;  %2126 = vmatmul.mubr.bf16.vlgmr.msra.gmra.mrb[0].mxu1 %v9895_v3  ;;  %v9999_v3 = vld [vmem:[#allocation2 + $0x404] ss:$16 sps:$4 sm:$0xff]  }
  0x8b   :  { %1922 = vmatpush1.bf16.msra.mxu0 %v9898_v4  ;;  %2137 = vmatpush1.bf16.msra.mxu1 %v9901_v5  ;;  %v10002_v4 = vld [vmem:[#allocation2 + $0x40c] ss:$16 sps:$4 sm:$0xff]  }
  0x8c   :  { %1923 = vmatprep.subr.bf16.mxu0 %v9906_v6  ;;  %2138 = vmatprep.subr.bf16.mxu1 %v9909_v7  ;;  %v9994_v5 = vld [vmem:[%s11897_s0 + $0x8] ss:$36 sps:$4 sm:$0xff]   ;;  %v9997_v6 = vld [vmem:[#allocation2 + $0x400] ss:$16 sps:$4 sm:$0xff]  }
  0x8d   :  { %1953 = vmatprep.mubr.bf16.mxu0 %v9996_v30  ;;  %2168 = vmatprep.mubr.bf16.mxu1 %v9996_v30  ;;  %v10000_v7 = vld [vmem:[#allocation2 + $0x408] ss:$16 sps:$4 sm:$0xff]   ;;  %v10038_v30 = vld [vmem:[#allocation2 + $0x4cc] ss:$16 sps:$4 sm:$0xff]  }
  0x8f   :  { %1924 = vmatpush1.bf16.msra.mxu0 %v9904_v8  ;;  %2139 = vmatpush1.bf16.msra.mxu1 %v9907_v9  ;;  %v10005_v8 = vld [vmem:[#allocation2 + $0x424] ss:$16 sps:$4 sm:$0xff]   ;;  %v10008_v9 = vld [vmem:[#allocation2 + $0x42c] ss:$16 sps:$4 sm:$0xff]  }
  0x90   :  { %1925 = vmatprep.subr.bf16.mxu0 %v9912_v10  ;;  %2140 = vmatprep.subr.bf16.mxu1 %v9915_v11  ;;  %v10003_v10 = vld [vmem:[#allocation2 + $0x420] ss:$16 sps:$4 sm:$0xff]   ;;  %v10006_v11 = vld [vmem:[#allocation2 + $0x428] ss:$16 sps:$4 sm:$0xff]  }
  0x93   :  { %1926 = vmatpush1.bf16.msra.mxu0 %v9910_v12  ;;  %2141 = vmatpush1.bf16.msra.mxu1 %v9913_v13  ;;  %v10095_v12 = vld [vmem:[%s11897_s0 + $0x14] ss:$36 sps:$4 sm:$0xff]  }
  0x94   :  { %1927 = vmatprep.subr.bf16.mxu0 %v9918_v14  ;;  %2142 = vmatprep.subr.bf16.mxu1 %v9921_v15  ;;  %v10011_v13 = vld [vmem:[#allocation2 + $0x444] ss:$16 sps:$4 sm:$0xff]   ;;  %v10014_v14 = vld [vmem:[#allocation2 + $0x44c] ss:$16 sps:$4 sm:$0xff]   ;;  %v10009_v15 = vld [vmem:[#allocation2 + $0x440] ss:$16 sps:$4 sm:$0xff]  }
  0x97   :  { %1928 = vmatpush1.bf16.msra.mxu0 %v9916_v16  ;;  %2143 = vmatpush1.bf16.msra.mxu1 %v9919_v17  ;;  %v10012_v16 = vld [vmem:[#allocation2 + $0x448] ss:$16 sps:$4 sm:$0xff]   ;;  %v10017_v17 = vld [vmem:[#allocation2 + $0x464] ss:$16 sps:$4 sm:$0xff]  }
  0x98   :  { %1929 = vmatprep.subr.bf16.mxu0 %v9924_v18  ;;  %2144 = vmatprep.subr.bf16.mxu1 %v9927_v19  ;;  %v10020_v18 = vld [vmem:[#allocation2 + $0x46c] ss:$16 sps:$4 sm:$0xff]   ;;  %v10015_v19 = vld [vmem:[#allocation2 + $0x460] ss:$16 sps:$4 sm:$0xff]  }
  0x9b   :  { %1930 = vmatpush1.bf16.msra.mxu0 %v9922_v20  ;;  %2145 = vmatpush1.bf16.msra.mxu1 %v9925_v21  ;;  %v10018_v20 = vld [vmem:[#allocation2 + $0x468] ss:$16 sps:$4 sm:$0xff]   ;;  %v10023_v21 = vld [vmem:[#allocation2 + $0x484] ss:$16 sps:$4 sm:$0xff]  }
  0x9c   :  { %1931 = vmatprep.subr.bf16.mxu0 %v9930_v22  ;;  %2146 = vmatprep.subr.bf16.mxu1 %v9933_v23  ;;  %v10026_v22 = vld [vmem:[#allocation2 + $0x48c] ss:$16 sps:$4 sm:$0xff]   ;;  %v10021_v23 = vld [vmem:[#allocation2 + $0x480] ss:$16 sps:$4 sm:$0xff]  }
  0x9f   :  { %1932 = vmatpush1.bf16.msra.mxu0 %v9928_v24  ;;  %2147 = vmatpush1.bf16.msra.mxu1 %v9931_v25  ;;  %v10024_v24 = vld [vmem:[#allocation2 + $0x488] ss:$16 sps:$4 sm:$0xff]   ;;  %v10029_v25 = vld [vmem:[#allocation2 + $0x4a4] ss:$16 sps:$4 sm:$0xff]  }
  0xa0   :  { %1933 = vmatprep.subr.bf16.mxu0 %v9936_v26  ;;  %2148 = vmatprep.subr.bf16.mxu1 %v9939_v27  ;;  %v10032_v26 = vld [vmem:[#allocation2 + $0x4ac] ss:$16 sps:$4 sm:$0xff]   ;;  %v10027_v27 = vld [vmem:[#allocation2 + $0x4a0] ss:$16 sps:$4 sm:$0xff]  }
  0xa3   :  { %1934 = vmatpush1.bf16.msra.mxu0 %v9934_v28  ;;  %2149 = vmatpush1.bf16.msra.mxu1 %v9937_v29  ;;  %v10030_v28 = vld [vmem:[#allocation2 + $0x4a8] ss:$16 sps:$4 sm:$0xff]   ;;  %v10035_v29 = vld [vmem:[#allocation2 + $0x4c4] ss:$16 sps:$4 sm:$0xff]  }
  0xa4   :  { %1935 = vmatprep.subr.bf16.mxu0 %v9942_v31  ;;  %2150 = vmatprep.subr.bf16.mxu1 %v9945_v32  ;;  %v10033_v31 = vld [vmem:[#allocation2 + $0x4c0] ss:$16 sps:$4 sm:$0xff]   ;;  %v10036_v32 = vld [vmem:[#allocation2 + $0x4c8] ss:$16 sps:$4 sm:$0xff]  }
  0xa7   :  { %1936 = vmatpush1.bf16.msra.mxu0 %v9940_v33  ;;  %2151 = vmatpush1.bf16.msra.mxu1 %v9943_v34  ;;  %v10041_v33 = vld [vmem:[#allocation2 + $0x4e4] ss:$16 sps:$4 sm:$0xff]   ;;  %v10044_v34 = vld [vmem:[#allocation2 + $0x4ec] ss:$16 sps:$4 sm:$0xff]  }
  0xa8   :  { %1937 = vmatprep.subr.bf16.mxu0 %v9948_v35  ;;  %2152 = vmatprep.subr.bf16.mxu1 %v9951_v36  ;;  %v10039_v35 = vld [vmem:[#allocation2 + $0x4e0] ss:$16 sps:$4 sm:$0xff]   ;;  %v10042_v36 = vld [vmem:[#allocation2 + $0x4e8] ss:$16 sps:$4 sm:$0xff]  }
  0xab   :  { %1938 = vmatpush1.bf16.msra.mxu0 %v9946_v37  ;;  %2153 = vmatpush1.bf16.msra.mxu1 %v9949_v38  ;;  %v10047_v37 = vld [vmem:[#allocation2 + $0x504] ss:$16 sps:$4 sm:$0xff]   ;;  %v10050_v38 = vld [vmem:[#allocation2 + $0x50c] ss:$16 sps:$4 sm:$0xff]  }
  0xac   :  { %1939 = vmatprep.subr.bf16.mxu0 %v9954_v39  ;;  %2154 = vmatprep.subr.bf16.mxu1 %v9957_v40  ;;  %v10045_v39 = vld [vmem:[#allocation2 + $0x500] ss:$16 sps:$4 sm:$0xff]   ;;  %v10048_v40 = vld [vmem:[#allocation2 + $0x508] ss:$16 sps:$4 sm:$0xff]  }
  0xaf   :  { %1940 = vmatpush1.bf16.msra.mxu0 %v9952_v41  ;;  %2155 = vmatpush1.bf16.msra.mxu1 %v9955_v42  ;;  %v10053_v41 = vld [vmem:[#allocation2 + $0x524] ss:$16 sps:$4 sm:$0xff]   ;;  %v10056_v42 = vld [vmem:[#allocation2 + $0x52c] ss:$16 sps:$4 sm:$0xff]  }
  0xb0   :  { %1941 = vmatprep.subr.bf16.mxu0 %v9960_v43  ;;  %2156 = vmatprep.subr.bf16.mxu1 %v9963_v44  ;;  %v10051_v43 = vld [vmem:[#allocation2 + $0x520] ss:$16 sps:$4 sm:$0xff]   ;;  %v10054_v44 = vld [vmem:[#allocation2 + $0x528] ss:$16 sps:$4 sm:$0xff]  }
  0xb3   :  { %1942 = vmatpush1.bf16.msra.mxu0 %v9958_v45  ;;  %2157 = vmatpush1.bf16.msra.mxu1 %v9961_v46  ;;  %v10059_v45 = vld [vmem:[#allocation2 + $0x544] ss:$16 sps:$4 sm:$0xff]   ;;  %v10062_v46 = vld [vmem:[#allocation2 + $0x54c] ss:$16 sps:$4 sm:$0xff]  }
  0xb4   :  { %1943 = vmatprep.subr.bf16.mxu0 %v9966_v47  ;;  %2158 = vmatprep.subr.bf16.mxu1 %v9969_v48  ;;  %v10057_v47 = vld [vmem:[#allocation2 + $0x540] ss:$16 sps:$4 sm:$0xff]   ;;  %v10060_v48 = vld [vmem:[#allocation2 + $0x548] ss:$16 sps:$4 sm:$0xff]  }
  0xb7   :  { %1944 = vmatpush1.bf16.msra.mxu0 %v9964_v49  ;;  %2159 = vmatpush1.bf16.msra.mxu1 %v9967_v50  ;;  %v10065_v49 = vld [vmem:[#allocation2 + $0x564] ss:$16 sps:$4 sm:$0xff]   ;;  %v10068_v50 = vld [vmem:[#allocation2 + $0x56c] ss:$16 sps:$4 sm:$0xff]  }
  0xb8   :  { %1945 = vmatprep.subr.bf16.mxu0 %v9972_v51  ;;  %2160 = vmatprep.subr.bf16.mxu1 %v9975_v52  ;;  %v10063_v51 = vld [vmem:[#allocation2 + $0x560] ss:$16 sps:$4 sm:$0xff]   ;;  %v10066_v52 = vld [vmem:[#allocation2 + $0x568] ss:$16 sps:$4 sm:$0xff]  }
  0xbb   :  { %1946 = vmatpush1.bf16.msra.mxu0 %v9970_v53  ;;  %2161 = vmatpush1.bf16.msra.mxu1 %v9973_v54  ;;  %v10071_v53 = vld [vmem:[#allocation2 + $0x584] ss:$16 sps:$4 sm:$0xff]   ;;  %v10074_v54 = vld [vmem:[#allocation2 + $0x58c] ss:$16 sps:$4 sm:$0xff]  }
  0xbc   :  { %1947 = vmatprep.subr.bf16.mxu0 %v9978_v55  ;;  %2162 = vmatprep.subr.bf16.mxu1 %v9981_v56  ;;  %v10069_v55 = vld [vmem:[#allocation2 + $0x580] ss:$16 sps:$4 sm:$0xff]   ;;  %v10072_v56 = vld [vmem:[#allocation2 + $0x588] ss:$16 sps:$4 sm:$0xff]  }
  0xbf   :  { %1948 = vmatpush1.bf16.msra.mxu0 %v9976_v57  ;;  %2163 = vmatpush1.bf16.msra.mxu1 %v9979_v58  ;;  %v10077_v57 = vld [vmem:[#allocation2 + $0x5a4] ss:$16 sps:$4 sm:$0xff]   ;;  %v10080_v58 = vld [vmem:[#allocation2 + $0x5ac] ss:$16 sps:$4 sm:$0xff]  }
  0xc0   :  { %1949 = vmatprep.subr.bf16.mxu0 %v9984_v59  ;;  %2164 = vmatprep.subr.bf16.mxu1 %v9987_v60  ;;  %v10075_v59 = vld [vmem:[#allocation2 + $0x5a0] ss:$16 sps:$4 sm:$0xff]   ;;  %v10078_v60 = vld [vmem:[#allocation2 + $0x5a8] ss:$16 sps:$4 sm:$0xff]  }
  0xc3   :  { %1950 = vmatpush1.bf16.msra.mxu0 %v9982_v61  ;;  %2165 = vmatpush1.bf16.msra.mxu1 %v9985_v62  ;;  %v10083_v61 = vld [vmem:[#allocation2 + $0x5c4] ss:$16 sps:$4 sm:$0xff]   ;;  %v10086_v62 = vld [vmem:[#allocation2 + $0x5cc] ss:$16 sps:$4 sm:$0xff]  }
  0xc4   :  { %1951 = vmatprep.subr.bf16.mxu0 %v9990_v63  ;;  %2166 = vmatprep.subr.bf16.mxu1 %v9993_v0  ;;  %v10081_v63 = vld [vmem:[#allocation2 + $0x5c0] ss:$16 sps:$4 sm:$0xff]   ;;  %v10084_v0 = vld [vmem:[#allocation2 + $0x5c8] ss:$16 sps:$4 sm:$0xff]  }
  0xc7   :  { %1952 = vmatpush1.bf16.msra.mxu0 %v9988_v1  ;;  %2167 = vmatpush1.bf16.msra.mxu1 %v9991_v2  ;;  %v10089_v1 = vld [vmem:[#allocation2 + $0x5e4] ss:$16 sps:$4 sm:$0xff]   ;;  %v10092_v2 = vld [vmem:[#allocation2 + $0x5ec] ss:$16 sps:$4 sm:$0xff]  }
  0xc8   :  { %1964 = vmatprep.subr.bf16.mxu0 %v9999_v3  ;;  %2179 = vmatprep.subr.bf16.mxu1 %v10002_v4  ;;  %v10087_v3 = vld [vmem:[#allocation2 + $0x5e0] ss:$16 sps:$4 sm:$0xff]   ;;  %v10090_v4 = vld [vmem:[#allocation2 + $0x5e8] ss:$16 sps:$4 sm:$0xff]  }
  0xca   :  { %1954 = vmatmul.mubr.bf16.vlgmr.msra.gmra.mrb[0].mxu0 %v9994_v5  ;;  %2169 = vmatmul.mubr.bf16.vlgmr.msra.gmra.mrb[0].mxu1 %v9994_v5  ;;  %v10098_v5 = vld [vmem:[#allocation2 + $0x604] ss:$16 sps:$4 sm:$0xff]  }
  0xcb   :  { %1965 = vmatpush1.bf16.msra.mxu0 %v9997_v6  ;;  %2180 = vmatpush1.bf16.msra.mxu1 %v10000_v7  ;;  %v10101_v6 = vld [vmem:[#allocation2 + $0x60c] ss:$16 sps:$4 sm:$0xff]   ;;  %v10093_v7 = vld [vmem:[%s11897_s0 + $0x10] ss:$36 sps:$4 sm:$0xff]  }
  0xcc   :  { %1966 = vmatprep.subr.bf16.mxu0 %v10005_v8  ;;  %2181 = vmatprep.subr.bf16.mxu1 %v10008_v9  ;;  %v10096_v8 = vld [vmem:[#allocation2 + $0x600] ss:$16 sps:$4 sm:$0xff]   ;;  %v10099_v9 = vld [vmem:[#allocation2 + $0x608] ss:$16 sps:$4 sm:$0xff]  }
  0xcd   :  { %1996 = vmatprep.mubr.bf16.mxu0 %v10095_v12  ;;  %2211 = vmatprep.mubr.bf16.mxu1 %v10095_v12  ;;  %v10194_v12 = vld [vmem:[%s11897_s0 + $0x1c] ss:$36 sps:$4 sm:$0xff]  }
  0xcf   :  { %1967 = vmatpush1.bf16.msra.mxu0 %v10003_v10  ;;  %2182 = vmatpush1.bf16.msra.mxu1 %v10006_v11  ;;  %v10104_v10 = vld [vmem:[#allocation2 + $0x624] ss:$16 sps:$4 sm:$0xff]   ;;  %v10107_v11 = vld [vmem:[#allocation2 + $0x62c] ss:$16 sps:$4 sm:$0xff]  }
  0xd0   :  { %1968 = vmatprep.subr.bf16.mxu0 %v10011_v13  ;;  %2183 = vmatprep.subr.bf16.mxu1 %v10014_v14  ;;  %v10102_v13 = vld [vmem:[#allocation2 + $0x620] ss:$16 sps:$4 sm:$0xff]   ;;  %v10105_v14 = vld [vmem:[#allocation2 + $0x628] ss:$16 sps:$4 sm:$0xff]  }
  0xd3   :  { %1969 = vmatpush1.bf16.msra.mxu0 %v10009_v15  ;;  %2184 = vmatpush1.bf16.msra.mxu1 %v10012_v16  ;;  %v10110_v15 = vld [vmem:[#allocation2 + $0x644] ss:$16 sps:$4 sm:$0xff]   ;;  %v10113_v16 = vld [vmem:[#allocation2 + $0x64c] ss:$16 sps:$4 sm:$0xff]  }
  0xd4   :  { %1970 = vmatprep.subr.bf16.mxu0 %v10017_v17  ;;  %2185 = vmatprep.subr.bf16.mxu1 %v10020_v18  ;;  %v10108_v17 = vld [vmem:[#allocation2 + $0x640] ss:$16 sps:$4 sm:$0xff]   ;;  %v10111_v18 = vld [vmem:[#allocation2 + $0x648] ss:$16 sps:$4 sm:$0xff]  }
  0xd7   :  { %1971 = vmatpush1.bf16.msra.mxu0 %v10015_v19  ;;  %2186 = vmatpush1.bf16.msra.mxu1 %v10018_v20  ;;  %v10116_v19 = vld [vmem:[#allocation2 + $0x664] ss:$16 sps:$4 sm:$0xff]   ;;  %v10119_v20 = vld [vmem:[#allocation2 + $0x66c] ss:$16 sps:$4 sm:$0xff]  }
  0xd8   :  { %1972 = vmatprep.subr.bf16.mxu0 %v10023_v21  ;;  %2187 = vmatprep.subr.bf16.mxu1 %v10026_v22  ;;  %v10114_v21 = vld [vmem:[#allocation2 + $0x660] ss:$16 sps:$4 sm:$0xff]   ;;  %v10117_v22 = vld [vmem:[#allocation2 + $0x668] ss:$16 sps:$4 sm:$0xff]  }
  0xdb   :  { %1973 = vmatpush1.bf16.msra.mxu0 %v10021_v23  ;;  %2188 = vmatpush1.bf16.msra.mxu1 %v10024_v24  ;;  %v10122_v23 = vld [vmem:[#allocation2 + $0x684] ss:$16 sps:$4 sm:$0xff]   ;;  %v10125_v24 = vld [vmem:[#allocation2 + $0x68c] ss:$16 sps:$4 sm:$0xff]  }
  0xdc   :  { %1974 = vmatprep.subr.bf16.mxu0 %v10029_v25  ;;  %2189 = vmatprep.subr.bf16.mxu1 %v10032_v26  ;;  %v10120_v25 = vld [vmem:[#allocation2 + $0x680] ss:$16 sps:$4 sm:$0xff]   ;;  %v10123_v26 = vld [vmem:[#allocation2 + $0x688] ss:$16 sps:$4 sm:$0xff]  }
  0xdf   :  { %1975 = vmatpush1.bf16.msra.mxu0 %v10027_v27  ;;  %2190 = vmatpush1.bf16.msra.mxu1 %v10030_v28  ;;  %v10128_v27 = vld [vmem:[#allocation2 + $0x6a4] ss:$16 sps:$4 sm:$0xff]   ;;  %v10131_v28 = vld [vmem:[#allocation2 + $0x6ac] ss:$16 sps:$4 sm:$0xff]  }
  0xe0   :  { %1976 = vmatprep.subr.bf16.mxu0 %v10035_v29  ;;  %2191 = vmatprep.subr.bf16.mxu1 %v10038_v30  ;;  %v10126_v29 = vld [vmem:[#allocation2 + $0x6a0] ss:$16 sps:$4 sm:$0xff]   ;;  %v10129_v30 = vld [vmem:[#allocation2 + $0x6a8] ss:$16 sps:$4 sm:$0xff]  }
  0xe3   :  { %1977 = vmatpush1.bf16.msra.mxu0 %v10033_v31  ;;  %2192 = vmatpush1.bf16.msra.mxu1 %v10036_v32  ;;  %v10134_v31 = vld [vmem:[#allocation2 + $0x6c4] ss:$16 sps:$4 sm:$0xff]   ;;  %v10137_v32 = vld [vmem:[#allocation2 + $0x6cc] ss:$16 sps:$4 sm:$0xff]  }
  0xe4   :  { %1978 = vmatprep.subr.bf16.mxu0 %v10041_v33  ;;  %2193 = vmatprep.subr.bf16.mxu1 %v10044_v34  ;;  %v10132_v33 = vld [vmem:[#allocation2 + $0x6c0] ss:$16 sps:$4 sm:$0xff]   ;;  %v10135_v34 = vld [vmem:[#allocation2 + $0x6c8] ss:$16 sps:$4 sm:$0xff]  }
  0xe7   :  { %1979 = vmatpush1.bf16.msra.mxu0 %v10039_v35  ;;  %2194 = vmatpush1.bf16.msra.mxu1 %v10042_v36  ;;  %v10140_v35 = vld [vmem:[#allocation2 + $0x6e4] ss:$16 sps:$4 sm:$0xff]   ;;  %v10143_v36 = vld [vmem:[#allocation2 + $0x6ec] ss:$16 sps:$4 sm:$0xff]  }
  0xe8   :  { %1980 = vmatprep.subr.bf16.mxu0 %v10047_v37  ;;  %2195 = vmatprep.subr.bf16.mxu1 %v10050_v38  ;;  %v10138_v37 = vld [vmem:[#allocation2 + $0x6e0] ss:$16 sps:$4 sm:$0xff]   ;;  %v10141_v38 = vld [vmem:[#allocation2 + $0x6e8] ss:$16 sps:$4 sm:$0xff]  }
  0xeb   :  { %1981 = vmatpush1.bf16.msra.mxu0 %v10045_v39  ;;  %2196 = vmatpush1.bf16.msra.mxu1 %v10048_v40  ;;  %v10146_v39 = vld [vmem:[#allocation2 + $0x704] ss:$16 sps:$4 sm:$0xff]   ;;  %v10149_v40 = vld [vmem:[#allocation2 + $0x70c] ss:$16 sps:$4 sm:$0xff]  }
  0xec   :  { %1982 = vmatprep.subr.bf16.mxu0 %v10053_v41  ;;  %2197 = vmatprep.subr.bf16.mxu1 %v10056_v42  ;;  %v10144_v41 = vld [vmem:[#allocation2 + $0x700] ss:$16 sps:$4 sm:$0xff]   ;;  %v10147_v42 = vld [vmem:[#allocation2 + $0x708] ss:$16 sps:$4 sm:$0xff]  }
  0xef   :  { %1983 = vmatpush1.bf16.msra.mxu0 %v10051_v43  ;;  %2198 = vmatpush1.bf16.msra.mxu1 %v10054_v44  ;;  %v10152_v43 = vld [vmem:[#allocation2 + $0x724] ss:$16 sps:$4 sm:$0xff]   ;;  %v10155_v44 = vld [vmem:[#allocation2 + $0x72c] ss:$16 sps:$4 sm:$0xff]  }
  0xf0   :  { %1984 = vmatprep.subr.bf16.mxu0 %v10059_v45  ;;  %2199 = vmatprep.subr.bf16.mxu1 %v10062_v46  ;;  %v10150_v45 = vld [vmem:[#allocation2 + $0x720] ss:$16 sps:$4 sm:$0xff]   ;;  %v10153_v46 = vld [vmem:[#allocation2 + $0x728] ss:$16 sps:$4 sm:$0xff]  }
  0xf3   :  { %1985 = vmatpush1.bf16.msra.mxu0 %v10057_v47  ;;  %2200 = vmatpush1.bf16.msra.mxu1 %v10060_v48  ;;  %v10158_v47 = vld [vmem:[#allocation2 + $0x744] ss:$16 sps:$4 sm:$0xff]   ;;  %v10161_v48 = vld [vmem:[#allocation2 + $0x74c] ss:$16 sps:$4 sm:$0xff]  }
  0xf4   :  { %1986 = vmatprep.subr.bf16.mxu0 %v10065_v49  ;;  %2201 = vmatprep.subr.bf16.mxu1 %v10068_v50  ;;  %v10156_v49 = vld [vmem:[#allocation2 + $0x740] ss:$16 sps:$4 sm:$0xff]   ;;  %v10159_v50 = vld [vmem:[#allocation2 + $0x748] ss:$16 sps:$4 sm:$0xff]  }
  0xf7   :  { %1987 = vmatpush1.bf16.msra.mxu0 %v10063_v51  ;;  %2202 = vmatpush1.bf16.msra.mxu1 %v10066_v52  ;;  %v10164_v51 = vld [vmem:[#allocation2 + $0x764] ss:$16 sps:$4 sm:$0xff]   ;;  %v10167_v52 = vld [vmem:[#allocation2 + $0x76c] ss:$16 sps:$4 sm:$0xff]  }
  0xf8   :  { %1988 = vmatprep.subr.bf16.mxu0 %v10071_v53  ;;  %2203 = vmatprep.subr.bf16.mxu1 %v10074_v54  ;;  %v10162_v53 = vld [vmem:[#allocation2 + $0x760] ss:$16 sps:$4 sm:$0xff]   ;;  %v10165_v54 = vld [vmem:[#allocation2 + $0x768] ss:$16 sps:$4 sm:$0xff]  }
  0xfb   :  { %1989 = vmatpush1.bf16.msra.mxu0 %v10069_v55  ;;  %2204 = vmatpush1.bf16.msra.mxu1 %v10072_v56  ;;  %v10170_v55 = vld [vmem:[#allocation2 + $0x784] ss:$16 sps:$4 sm:$0xff]   ;;  %v10173_v56 = vld [vmem:[#allocation2 + $0x78c] ss:$16 sps:$4 sm:$0xff]  }
  0xfc   :  { %1990 = vmatprep.subr.bf16.mxu0 %v10077_v57  ;;  %2205 = vmatprep.subr.bf16.mxu1 %v10080_v58  ;;  %v10168_v57 = vld [vmem:[#allocation2 + $0x780] ss:$16 sps:$4 sm:$0xff]   ;;  %v10171_v58 = vld [vmem:[#allocation2 + $0x788] ss:$16 sps:$4 sm:$0xff]  }
  0xff   :  { %1991 = vmatpush1.bf16.msra.mxu0 %v10075_v59  ;;  %2206 = vmatpush1.bf16.msra.mxu1 %v10078_v60  ;;  %v10176_v59 = vld [vmem:[#allocation2 + $0x7a4] ss:$16 sps:$4 sm:$0xff]   ;;  %v10179_v60 = vld [vmem:[#allocation2 + $0x7ac] ss:$16 sps:$4 sm:$0xff]  }
 0x100   :  { %1992 = vmatprep.subr.bf16.mxu0 %v10083_v61  ;;  %2207 = vmatprep.subr.bf16.mxu1 %v10086_v62  ;;  %v10174_v61 = vld [vmem:[#allocation2 + $0x7a0] ss:$16 sps:$4 sm:$0xff]   ;;  %v10177_v62 = vld [vmem:[#allocation2 + $0x7a8] ss:$16 sps:$4 sm:$0xff]  }
 0x103   :  { %1993 = vmatpush1.bf16.msra.mxu0 %v10081_v63  ;;  %2208 = vmatpush1.bf16.msra.mxu1 %v10084_v0  ;;  %v10182_v63 = vld [vmem:[#allocation2 + $0x7c4] ss:$16 sps:$4 sm:$0xff]   ;;  %v10185_v0 = vld [vmem:[#allocation2 + $0x7cc] ss:$16 sps:$4 sm:$0xff]  }
 0x104   :  { %1994 = vmatprep.subr.bf16.mxu0 %v10089_v1  ;;  %2209 = vmatprep.subr.bf16.mxu1 %v10092_v2  ;;  %v10180_v1 = vld [vmem:[#allocation2 + $0x7c0] ss:$16 sps:$4 sm:$0xff]   ;;  %v10183_v2 = vld [vmem:[#allocation2 + $0x7c8] ss:$16 sps:$4 sm:$0xff]  }
 0x107   :  { %1995 = vmatpush1.bf16.msra.mxu0 %v10087_v3  ;;  %2210 = vmatpush1.bf16.msra.mxu1 %v10090_v4  ;;  %v10188_v3 = vld [vmem:[#allocation2 + $0x7e4] ss:$16 sps:$4 sm:$0xff]   ;;  %v10191_v4 = vld [vmem:[#allocation2 + $0x7ec] ss:$16 sps:$4 sm:$0xff]  }
 0x108   :  { %2007 = vmatprep.subr.bf16.mxu0 %v10098_v5  ;;  %2222 = vmatprep.subr.bf16.mxu1 %v10101_v6  ;;  %v10186_v5 = vld [vmem:[#allocation2 + $0x7e0] ss:$16 sps:$4 sm:$0xff]   ;;  %v10189_v6 = vld [vmem:[#allocation2 + $0x7e8] ss:$16 sps:$4 sm:$0xff]  }
 0x10a   :  { %1997 = vmatmul.mubr.bf16.vlgmr.msra.gmra.mrb[0].mxu0 %v10093_v7  ;;  %2212 = vmatmul.mubr.bf16.vlgmr.msra.gmra.mrb[0].mxu1 %v10093_v7  ;;  %v10197_v7 = vld [vmem:[#allocation2 + $0x804] ss:$16 sps:$4 sm:$0xff]  }
 0x10b   :  { %2008 = vmatpush1.bf16.msra.mxu0 %v10096_v8  ;;  %2223 = vmatpush1.bf16.msra.mxu1 %v10099_v9  ;;  %v10200_v8 = vld [vmem:[#allocation2 + $0x80c] ss:$16 sps:$4 sm:$0xff]  }
 0x10c   :  { %2009 = vmatprep.subr.bf16.mxu0 %v10104_v10  ;;  %2224 = vmatprep.subr.bf16.mxu1 %v10107_v11  ;;  %v10192_v9 = vld [vmem:[%s11897_s0 + $0x18] ss:$36 sps:$4 sm:$0xff]   ;;  %v10195_v10 = vld [vmem:[#allocation2 + $0x800] ss:$16 sps:$4 sm:$0xff]  }
 0x10d   :  { %2039 = vmatprep.mubr.bf16.mxu0 %v10194_v12  ;;  %2254 = vmatprep.mubr.bf16.mxu1 %v10194_v12  ;;  %v10198_v11 = vld [vmem:[#allocation2 + $0x808] ss:$16 sps:$4 sm:$0xff]   ;;  %v10203_v12 = vld [vmem:[#allocation2 + $0x824] ss:$16 sps:$4 sm:$0xff]  }
 0x10f   :  { %2010 = vmatpush1.bf16.msra.mxu0 %v10102_v13  ;;  %2225 = vmatpush1.bf16.msra.mxu1 %v10105_v14  ;;  %v10206_v13 = vld [vmem:[#allocation2 + $0x82c] ss:$16 sps:$4 sm:$0xff]   ;;  %v10201_v14 = vld [vmem:[#allocation2 + $0x820] ss:$16 sps:$4 sm:$0xff]  }
 0x110   :  { %2011 = vmatprep.subr.bf16.mxu0 %v10110_v15  ;;  %2226 = vmatprep.subr.bf16.mxu1 %v10113_v16  ;;  %v10204_v15 = vld [vmem:[#allocation2 + $0x828] ss:$16 sps:$4 sm:$0xff]   ;;  %v10209_v16 = vld [vmem:[#allocation2 + $0x844] ss:$16 sps:$4 sm:$0xff]  }
 0x113   :  { %2012 = vmatpush1.bf16.msra.mxu0 %v10108_v17  ;;  %2227 = vmatpush1.bf16.msra.mxu1 %v10111_v18  ;;  %v10212_v17 = vld [vmem:[#allocation2 + $0x84c] ss:$16 sps:$4 sm:$0xff]   ;;  %v10207_v18 = vld [vmem:[#allocation2 + $0x840] ss:$16 sps:$4 sm:$0xff]  }
 0x114   :  { %2013 = vmatprep.subr.bf16.mxu0 %v10116_v19  ;;  %2228 = vmatprep.subr.bf16.mxu1 %v10119_v20  ;;  %v10210_v19 = vld [vmem:[#allocation2 + $0x848] ss:$16 sps:$4 sm:$0xff]   ;;  %v11549_v20 = vmov 0  }
 0x117   :  { %2014 = vmatpush1.bf16.msra.mxu0 %v10114_v21  ;;  %2229 = vmatpush1.bf16.msra.mxu1 %v10117_v22  ;;  %v10215_v21 = vld [vmem:[#allocation2 + $0x864] ss:$16 sps:$4 sm:$0xff]   ;;  %v10218_v22 = vld [vmem:[#allocation2 + $0x86c] ss:$16 sps:$4 sm:$0xff]  }
 0x118   :  { %2015 = vmatprep.subr.bf16.mxu0 %v10122_v23  ;;  %2230 = vmatprep.subr.bf16.mxu1 %v10125_v24  ;;  %v10213_v23 = vld [vmem:[#allocation2 + $0x860] ss:$16 sps:$4 sm:$0xff]   ;;  %v10216_v24 = vld [vmem:[#allocation2 + $0x868] ss:$16 sps:$4 sm:$0xff]  }
 0x11b   :  { %2016 = vmatpush1.bf16.msra.mxu0 %v10120_v25  ;;  %2231 = vmatpush1.bf16.msra.mxu1 %v10123_v26  ;;  %v10221_v25 = vld [vmem:[#allocation2 + $0x884] ss:$16 sps:$4 sm:$0xff]   ;;  %v10224_v26 = vld [vmem:[#allocation2 + $0x88c] ss:$16 sps:$4 sm:$0xff]  }
 0x11c   :  { %2017 = vmatprep.subr.bf16.mxu0 %v10128_v27  ;;  %2232 = vmatprep.subr.bf16.mxu1 %v10131_v28  ;;  %v10219_v27 = vld [vmem:[#allocation2 + $0x880] ss:$16 sps:$4 sm:$0xff]   ;;  %v10222_v28 = vld [vmem:[#allocation2 + $0x888] ss:$16 sps:$4 sm:$0xff]  }
 0x11f   :  { %2018 = vmatpush1.bf16.msra.mxu0 %v10126_v29  ;;  %2233 = vmatpush1.bf16.msra.mxu1 %v10129_v30  ;;  %v10227_v29 = vld [vmem:[#allocation2 + $0x8a4] ss:$16 sps:$4 sm:$0xff]   ;;  %v10230_v30 = vld [vmem:[#allocation2 + $0x8ac] ss:$16 sps:$4 sm:$0xff]  }
 0x120   :  { %2019 = vmatprep.subr.bf16.mxu0 %v10134_v31  ;;  %2234 = vmatprep.subr.bf16.mxu1 %v10137_v32  ;;  %v10225_v31 = vld [vmem:[#allocation2 + $0x8a0] ss:$16 sps:$4 sm:$0xff]   ;;  %v10228_v32 = vld [vmem:[#allocation2 + $0x8a8] ss:$16 sps:$4 sm:$0xff]  }
 0x123   :  { %2020 = vmatpush1.bf16.msra.mxu0 %v10132_v33  ;;  %2235 = vmatpush1.bf16.msra.mxu1 %v10135_v34  ;;  %v10233_v33 = vld [vmem:[#allocation2 + $0x8c4] ss:$16 sps:$4 sm:$0xff]   ;;  %v10236_v34 = vld [vmem:[#allocation2 + $0x8cc] ss:$16 sps:$4 sm:$0xff]  }
 0x124   :  { %2021 = vmatprep.subr.bf16.mxu0 %v10140_v35  ;;  %2236 = vmatprep.subr.bf16.mxu1 %v10143_v36  ;;  %v10231_v35 = vld [vmem:[#allocation2 + $0x8c0] ss:$16 sps:$4 sm:$0xff]   ;;  %v10234_v36 = vld [vmem:[#allocation2 + $0x8c8] ss:$16 sps:$4 sm:$0xff]  }
 0x127   :  { %2022 = vmatpush1.bf16.msra.mxu0 %v10138_v37  ;;  %2237 = vmatpush1.bf16.msra.mxu1 %v10141_v38  ;;  %v10239_v37 = vld [vmem:[#allocation2 + $0x8e4] ss:$16 sps:$4 sm:$0xff]   ;;  %v10242_v38 = vld [vmem:[#allocation2 + $0x8ec] ss:$16 sps:$4 sm:$0xff]  }
 0x128   :  { %2023 = vmatprep.subr.bf16.mxu0 %v10146_v39  ;;  %2238 = vmatprep.subr.bf16.mxu1 %v10149_v40  ;;  %v10237_v39 = vld [vmem:[#allocation2 + $0x8e0] ss:$16 sps:$4 sm:$0xff]   ;;  %v10240_v40 = vld [vmem:[#allocation2 + $0x8e8] ss:$16 sps:$4 sm:$0xff]  }
 0x12b   :  { %2024 = vmatpush1.bf16.msra.mxu0 %v10144_v41  ;;  %2239 = vmatpush1.bf16.msra.mxu1 %v10147_v42  ;;  %v10246_v41 = vld [vmem:[#allocation4 + $0x4] ss:$16 sps:$4 sm:$0xff]   ;;  %v10249_v42 = vld [vmem:[#allocation4 + $0xc] ss:$16 sps:$4 sm:$0xff]  }
 0x12c   :  { %2025 = vmatprep.subr.bf16.mxu0 %v10152_v43  ;;  %2240 = vmatprep.subr.bf16.mxu1 %v10155_v44  ;;  %v10243_v43 = vld [vmem:[%s11897_s0 + $0x20] ss:$36 sps:$4 sm:$0xff]  }
 0x12d   :  { %v10244_v44 = vld [vmem:[#allocation4] ss:$16 sps:$4 sm:$0xff]  }
 0x12f   :  { %2026 = vmatpush1.bf16.msra.mxu0 %v10150_v45  ;;  %2241 = vmatpush1.bf16.msra.mxu1 %v10153_v46  ;;  %v10247_v45 = vld [vmem:[#allocation4 + $0x8] ss:$16 sps:$4 sm:$0xff]   ;;  %v10252_v46 = vld [vmem:[#allocation4 + $0x24] ss:$16 sps:$4 sm:$0xff]  }
 0x130   :  { %2027 = vmatprep.subr.bf16.mxu0 %v10158_v47  ;;  %2242 = vmatprep.subr.bf16.mxu1 %v10161_v48  ;;  %v10255_v47 = vld [vmem:[#allocation4 + $0x2c] ss:$16 sps:$4 sm:$0xff]   ;;  %v10250_v48 = vld [vmem:[#allocation4 + $0x20] ss:$16 sps:$4 sm:$0xff]  }
 0x133   :  { %2028 = vmatpush1.bf16.msra.mxu0 %v10156_v49  ;;  %2243 = vmatpush1.bf16.msra.mxu1 %v10159_v50  ;;  %v10253_v49 = vld [vmem:[#allocation4 + $0x28] ss:$16 sps:$4 sm:$0xff]   ;;  %v10258_v50 = vld [vmem:[#allocation4 + $0x44] ss:$16 sps:$4 sm:$0xff]  }
 0x134   :  { %2029 = vmatprep.subr.bf16.mxu0 %v10164_v51  ;;  %2244 = vmatprep.subr.bf16.mxu1 %v10167_v52  ;;  %v10261_v51 = vld [vmem:[#allocation4 + $0x4c] ss:$16 sps:$4 sm:$0xff]   ;;  %v10256_v52 = vld [vmem:[#allocation4 + $0x40] ss:$16 sps:$4 sm:$0xff]  }
 0x137   :  { %2030 = vmatpush1.bf16.msra.mxu0 %v10162_v53  ;;  %2245 = vmatpush1.bf16.msra.mxu1 %v10165_v54  ;;  %v10259_v53 = vld [vmem:[#allocation4 + $0x48] ss:$16 sps:$4 sm:$0xff]   ;;  %v10264_v54 = vld [vmem:[#allocation4 + $0x64] ss:$16 sps:$4 sm:$0xff]  }
 0x138   :  { %2031 = vmatprep.subr.bf16.mxu0 %v10170_v55  ;;  %2246 = vmatprep.subr.bf16.mxu1 %v10173_v56  ;;  %v10267_v55 = vld [vmem:[#allocation4 + $0x6c] ss:$16 sps:$4 sm:$0xff]   ;;  %v10262_v56 = vld [vmem:[#allocation4 + $0x60] ss:$16 sps:$4 sm:$0xff]  }
 0x13b   :  { %2032 = vmatpush1.bf16.msra.mxu0 %v10168_v57  ;;  %2247 = vmatpush1.bf16.msra.mxu1 %v10171_v58  ;;  %v10265_v57 = vld [vmem:[#allocation4 + $0x68] ss:$16 sps:$4 sm:$0xff]   ;;  %v10270_v58 = vld [vmem:[#allocation4 + $0x84] ss:$16 sps:$4 sm:$0xff]  }
 0x13c   :  { %2033 = vmatprep.subr.bf16.mxu0 %v10176_v59  ;;  %2248 = vmatprep.subr.bf16.mxu1 %v10179_v60  ;;  %v10273_v59 = vld [vmem:[#allocation4 + $0x8c] ss:$16 sps:$4 sm:$0xff]   ;;  %v10268_v60 = vld [vmem:[#allocation4 + $0x80] ss:$16 sps:$4 sm:$0xff]  }
 0x13f   :  { %2034 = vmatpush1.bf16.msra.mxu0 %v10174_v61  ;;  %2249 = vmatpush1.bf16.msra.mxu1 %v10177_v62  ;;  %v10271_v61 = vld [vmem:[#allocation4 + $0x88] ss:$16 sps:$4 sm:$0xff]   ;;  %v10276_v62 = vld [vmem:[#allocation4 + $0xa4] ss:$16 sps:$4 sm:$0xff]  }
 0x140   :  { %2035 = vmatprep.subr.bf16.mxu0 %v10182_v63  ;;  %2250 = vmatprep.subr.bf16.mxu1 %v10185_v0  ;;  %v10279_v63 = vld [vmem:[#allocation4 + $0xac] ss:$16 sps:$4 sm:$0xff]   ;;  %v10274_v0 = vld [vmem:[#allocation4 + $0xa0] ss:$16 sps:$4 sm:$0xff]  }
 0x143   :  { %2036 = vmatpush1.bf16.msra.mxu0 %v10180_v1  ;;  %2251 = vmatpush1.bf16.msra.mxu1 %v10183_v2  ;;  %v10277_v1 = vld [vmem:[#allocation4 + $0xa8] ss:$16 sps:$4 sm:$0xff]   ;;  %v10282_v2 = vld [vmem:[#allocation4 + $0xc4] ss:$16 sps:$4 sm:$0xff]  }
 0x144   :  { %2037 = vmatprep.subr.bf16.mxu0 %v10188_v3  ;;  %2252 = vmatprep.subr.bf16.mxu1 %v10191_v4  ;;  %v10285_v3 = vld [vmem:[#allocation4 + $0xcc] ss:$16 sps:$4 sm:$0xff]   ;;  %v10280_v4 = vld [vmem:[#allocation4 + $0xc0] ss:$16 sps:$4 sm:$0xff]  }
 0x147   :  { %2038 = vmatpush1.bf16.msra.mxu0 %v10186_v5  ;;  %2253 = vmatpush1.bf16.msra.mxu1 %v10189_v6  ;;  %v10283_v5 = vld [vmem:[#allocation4 + $0xc8] ss:$16 sps:$4 sm:$0xff]   ;;  %v10288_v6 = vld [vmem:[#allocation4 + $0xe4] ss:$16 sps:$4 sm:$0xff]  }
 0x148   :  { %2050 = vmatprep.subr.bf16.mxu0 %v10197_v7  ;;  %2265 = vmatprep.subr.bf16.mxu1 %v10200_v8  ;;  %v10291_v7 = vld [vmem:[#allocation4 + $0xec] ss:$16 sps:$4 sm:$0xff]   ;;  %v10286_v8 = vld [vmem:[#allocation4 + $0xe0] ss:$16 sps:$4 sm:$0xff]  }
 0x14a   :  { %2040 = vmatmul.mubr.bf16.vlgmr.msra.gmra.mrb[0].mxu0 %v10192_v9  ;;  %2255 = vmatmul.mubr.bf16.vlgmr.msra.gmra.mrb[0].mxu1 %v10192_v9  ;;  %v10289_v9 = vld [vmem:[#allocation4 + $0xe8] ss:$16 sps:$4 sm:$0xff]  }
 0x14b   :  { %2051 = vmatpush1.bf16.msra.mxu0 %v10195_v10  ;;  %2266 = vmatpush1.bf16.msra.mxu1 %v10198_v11  ;;  %v10294_v10 = vld [vmem:[#allocation4 + $0x104] ss:$16 sps:$4 sm:$0xff]   ;;  %v10297_v11 = vld [vmem:[#allocation4 + $0x10c] ss:$16 sps:$4 sm:$0xff]  }
 0x14c   :  { %2052 = vmatprep.subr.bf16.mxu0 %v10203_v12  ;;  %2267 = vmatprep.subr.bf16.mxu1 %v10206_v13  ;;  %v10292_v12 = vld [vmem:[#allocation4 + $0x100] ss:$16 sps:$4 sm:$0xff]   ;;  %v10295_v13 = vld [vmem:[#allocation4 + $0x108] ss:$16 sps:$4 sm:$0xff]  }
 0x14d   :  { %2082 = vmatprep.mubr.bf16.mxu0 %v11549_v20  ;;  %2297 = vmatprep.mubr.bf16.mxu1 %v11549_v20  ;;  %v10304_v20 = vld [vmem:[#allocation4 + $0x140] ss:$16 sps:$4 sm:$0xff]  }
 0x14f   :  { %2053 = vmatpush1.bf16.msra.mxu0 %v10201_v14  ;;  %2268 = vmatpush1.bf16.msra.mxu1 %v10204_v15  ;;  %v10300_v14 = vld [vmem:[#allocation4 + $0x124] ss:$16 sps:$4 sm:$0xff]   ;;  %v10303_v15 = vld [vmem:[#allocation4 + $0x12c] ss:$16 sps:$4 sm:$0xff]  }
 0x150   :  { %2054 = vmatprep.subr.bf16.mxu0 %v10209_v16  ;;  %2269 = vmatprep.subr.bf16.mxu1 %v10212_v17  ;;  %v10298_v16 = vld [vmem:[#allocation4 + $0x120] ss:$16 sps:$4 sm:$0xff]   ;;  %v10301_v17 = vld [vmem:[#allocation4 + $0x128] ss:$16 sps:$4 sm:$0xff]  }
 0x153   :  { %2055 = vmatpush1.bf16.msra.mxu0 %v10207_v18  ;;  %2270 = vmatpush1.bf16.msra.mxu1 %v10210_v19  ;;  %v10306_v18 = vld [vmem:[#allocation4 + $0x144] ss:$16 sps:$4 sm:$0xff]   ;;  %v10309_v19 = vld [vmem:[#allocation4 + $0x14c] ss:$16 sps:$4 sm:$0xff]  }
 0x154   :  { %2056 = vmatprep.subr.bf16.mxu0 %v10215_v21  ;;  %2271 = vmatprep.subr.bf16.mxu1 %v10218_v22  ;;  %v10307_v21 = vld [vmem:[#allocation4 + $0x148] ss:$16 sps:$4 sm:$0xff]   ;;  %v10312_v22 = vld [vmem:[#allocation4 + $0x164] ss:$16 sps:$4 sm:$0xff]  }
 0x157   :  { %2057 = vmatpush1.bf16.msra.mxu0 %v10213_v23  ;;  %2272 = vmatpush1.bf16.msra.mxu1 %v10216_v24  ;;  %v10315_v23 = vld [vmem:[#allocation4 + $0x16c] ss:$16 sps:$4 sm:$0xff]   ;;  %v10310_v24 = vld [vmem:[#allocation4 + $0x160] ss:$16 sps:$4 sm:$0xff]  }
 0x158   :  { %2058 = vmatprep.subr.bf16.mxu0 %v10221_v25  ;;  %2273 = vmatprep.subr.bf16.mxu1 %v10224_v26  ;;  %v10313_v25 = vld [vmem:[#allocation4 + $0x168] ss:$16 sps:$4 sm:$0xff]   ;;  %v10318_v26 = vld [vmem:[#allocation4 + $0x184] ss:$16 sps:$4 sm:$0xff]  }
 0x15b   :  { %2059 = vmatpush1.bf16.msra.mxu0 %v10219_v27  ;;  %2274 = vmatpush1.bf16.msra.mxu1 %v10222_v28  ;;  %v10321_v27 = vld [vmem:[#allocation4 + $0x18c] ss:$16 sps:$4 sm:$0xff]   ;;  %v10316_v28 = vld [vmem:[#allocation4 + $0x180] ss:$16 sps:$4 sm:$0xff]  }
 0x15c   :  { %2060 = vmatprep.subr.bf16.mxu0 %v10227_v29  ;;  %2275 = vmatprep.subr.bf16.mxu1 %v10230_v30  ;;  %v10319_v29 = vld [vmem:[#allocation4 + $0x188] ss:$16 sps:$4 sm:$0xff]   ;;  %v10324_v30 = vld [vmem:[#allocation4 + $0x1a4] ss:$16 sps:$4 sm:$0xff]  }
 0x15f   :  { %2061 = vmatpush1.bf16.msra.mxu0 %v10225_v31  ;;  %2276 = vmatpush1.bf16.msra.mxu1 %v10228_v32  ;;  %v10327_v31 = vld [vmem:[#allocation4 + $0x1ac] ss:$16 sps:$4 sm:$0xff]   ;;  %v10322_v32 = vld [vmem:[#allocation4 + $0x1a0] ss:$16 sps:$4 sm:$0xff]  }
 0x160   :  { %2062 = vmatprep.subr.bf16.mxu0 %v10233_v33  ;;  %2277 = vmatprep.subr.bf16.mxu1 %v10236_v34  ;;  %v10325_v33 = vld [vmem:[#allocation4 + $0x1a8] ss:$16 sps:$4 sm:$0xff]   ;;  %v10330_v34 = vld [vmem:[#allocation4 + $0x1c4] ss:$16 sps:$4 sm:$0xff]  }
 0x163   :  { %2063 = vmatpush1.bf16.msra.mxu0 %v10231_v35  ;;  %2278 = vmatpush1.bf16.msra.mxu1 %v10234_v36  ;;  %v10333_v35 = vld [vmem:[#allocation4 + $0x1cc] ss:$16 sps:$4 sm:$0xff]   ;;  %v10328_v36 = vld [vmem:[#allocation4 + $0x1c0] ss:$16 sps:$4 sm:$0xff]  }
 0x164   :  { %2064 = vmatprep.subr.bf16.mxu0 %v10239_v37  ;;  %2279 = vmatprep.subr.bf16.mxu1 %v10242_v38  ;;  %v10331_v37 = vld [vmem:[#allocation4 + $0x1c8] ss:$16 sps:$4 sm:$0xff]   ;;  %v10336_v38 = vld [vmem:[#allocation4 + $0x1e4] ss:$16 sps:$4 sm:$0xff]  }
 0x167   :  { %2065 = vmatpush1.bf16.msra.mxu0 %v10237_v39  ;;  %2280 = vmatpush1.bf16.msra.mxu1 %v10240_v40  ;;  %v10339_v39 = vld [vmem:[#allocation4 + $0x1ec] ss:$16 sps:$4 sm:$0xff]   ;;  %v10334_v40 = vld [vmem:[#allocation4 + $0x1e0] ss:$16 sps:$4 sm:$0xff]  }
 0x168   :  { %3233 = vmatprep.subr.bf16.mxu0 %v10246_v41  ;;  %3319 = vmatprep.subr.bf16.mxu1 %v10249_v42  ;;  %v10337_v41 = vld [vmem:[#allocation4 + $0x1e8] ss:$16 sps:$4 sm:$0xff]   ;;  %v10342_v42 = vld [vmem:[#allocation4 + $0x204] ss:$16 sps:$4 sm:$0xff]  }
 0x16a   :  { %2083 = vmatmul.mubr.bf16.vlgmr.msra.gmra.mrb[0].mxu0 %v10243_v43  ;;  %2298 = vmatmul.mubr.bf16.vlgmr.msra.gmra.mrb[0].mxu1 %v10243_v43  ;;  %v10345_v43 = vld [vmem:[#allocation4 + $0x20c] ss:$16 sps:$4 sm:$0xff]  }
 0x16b   :  { %3234 = vmatpush1.bf16.msra.mxu0 %v10244_v44  ;;  %3320 = vmatpush1.bf16.msra.mxu1 %v10247_v45  ;;  %v376_v44 = vlaneseq }
 0x16c   :  { %3235 = vmatprep.subr.bf16.mxu0 %v10252_v46  ;;  %3321 = vmatprep.subr.bf16.mxu1 %v10255_v47  ;;  %v11665_v46 = vld [vmem:[#allocation7 + $0x8] sm:$0xff] }
 0x16d   :  { %v11663_v45 = vshrl.u32 %v376_v44, 7 }
 0x16f   :  { %3236 = vmatpush1.bf16.msra.mxu0 %v10250_v48  ;;  %3322 = vmatpush1.bf16.msra.mxu1 %v10253_v49  ;;  %v11668_v47 = vsub.s32 0, %v11663_v45  ;;  %v11670_v48 = vld [vmem:[#allocation7] sm:$0xff]  ;;  %v11672_v49 = vld [vmem:[#allocation7 + $0x18] sm:$0xff] }
 0x170   :  { %3237 = vmatprep.subr.bf16.mxu0 %v10258_v50  ;;  %3323 = vmatprep.subr.bf16.mxu1 %v10261_v51 }
 0x171   :  { %v383_v50 = vrot.slane %v11665_v46, %v11668_v47  ;;  %v379_v51 = vrot.slane %v11670_v48, %v11668_v47 }
 0x173   :  { %3238 = vmatpush1.bf16.msra.mxu0 %v10256_v52  ;;  %3324 = vmatpush1.bf16.msra.mxu1 %v10259_v53 }
 0x174   :  { %3239 = vmatprep.subr.bf16.mxu0 %v10264_v54  ;;  %3325 = vmatprep.subr.bf16.mxu1 %v10267_v55  ;;  %v391_v55 = vrot.slane %v11672_v49, %v11668_v47 }
 0x177   :  { %3240 = vmatpush1.bf16.msra.mxu0 %v10262_v56  ;;  %3326 = vmatpush1.bf16.msra.mxu1 %v10265_v57 }
 0x178   :  { %3241 = vmatprep.subr.bf16.mxu0 %v10270_v58  ;;  %3327 = vmatprep.subr.bf16.mxu1 %v10273_v59 }
 0x17b   :  { %3242 = vmatpush1.bf16.msra.mxu0 %v10268_v60  ;;  %3328 = vmatpush1.bf16.msra.mxu1 %v10271_v61 }
 0x17c   :  { %3243 = vmatprep.subr.bf16.mxu0 %v10276_v62  ;;  %3329 = vmatprep.subr.bf16.mxu1 %v10279_v63 }
 0x17f   :  { %3244 = vmatpush1.bf16.msra.mxu0 %v10274_v0  ;;  %3330 = vmatpush1.bf16.msra.mxu1 %v10277_v1 }
 0x180   :  { %3245 = vmatprep.subr.bf16.mxu0 %v10282_v2  ;;  %3331 = vmatprep.subr.bf16.mxu1 %v10285_v3 }
 0x183   :  { %3246 = vmatpush1.bf16.msra.mxu0 %v10280_v4  ;;  %3332 = vmatpush1.bf16.msra.mxu1 %v10283_v5 }
 0x184   :  { %3247 = vmatprep.subr.bf16.mxu0 %v10288_v6  ;;  %3333 = vmatprep.subr.bf16.mxu1 %v10291_v7  ;;  %v10340_v6 = vld [vmem:[#allocation4 + $0x200] ss:$16 sps:$4 sm:$0xff]   ;;  %v10343_v7 = vld [vmem:[#allocation4 + $0x208] ss:$16 sps:$4 sm:$0xff]  }
 0x187   :  { %3248 = vmatpush1.bf16.msra.mxu0 %v10286_v8  ;;  %3334 = vmatpush1.bf16.msra.mxu1 %v10289_v9 }
 0x188   :  { %3249 = vmatprep.subr.bf16.mxu0 %v10294_v10  ;;  %3335 = vmatprep.subr.bf16.mxu1 %v10297_v11  ;;  %v10348_v11 = vld [vmem:[#allocation4 + $0x224] ss:$16 sps:$4 sm:$0xff]  }
 0x18b   :  { %3250 = vmatpush1.bf16.msra.mxu0 %v10292_v12  ;;  %3336 = vmatpush1.bf16.msra.mxu1 %v10295_v13  ;;  %v10351_v12 = vld [vmem:[#allocation4 + $0x22c] ss:$16 sps:$4 sm:$0xff]  }
 0x18c   :  { %3251 = vmatprep.subr.bf16.mxu0 %v10300_v14  ;;  %3337 = vmatprep.subr.bf16.mxu1 %v10303_v15  ;;  %v10346_v15 = vld [vmem:[#allocation4 + $0x220] ss:$16 sps:$4 sm:$0xff]  }
 0x18f   :  { %3252 = vmatpush1.bf16.msra.mxu0 %v10298_v16  ;;  %3338 = vmatpush1.bf16.msra.mxu1 %v10301_v17  ;;  %v10349_v16 = vld [vmem:[#allocation4 + $0x228] ss:$16 sps:$4 sm:$0xff]  }
 0x190   :  { %3253 = vmatprep.subr.bf16.mxu0 %v10306_v18  ;;  %3339 = vmatprep.subr.bf16.mxu1 %v10309_v19  ;;  %v10354_v18 = vld [vmem:[#allocation4 + $0x244] ss:$16 sps:$4 sm:$0xff]   ;;  %v10357_v19 = vld [vmem:[#allocation4 + $0x24c] ss:$16 sps:$4 sm:$0xff]  }
 0x193   :  { %3254 = vmatpush1.bf16.msra.mxu0 %v10304_v20  ;;  %3340 = vmatpush1.bf16.msra.mxu1 %v10307_v21  ;;  %v10352_v20 = vld [vmem:[#allocation4 + $0x240] ss:$16 sps:$4 sm:$0xff]   ;;  %v10355_v21 = vld [vmem:[#allocation4 + $0x248] ss:$16 sps:$4 sm:$0xff]  }
 0x194   :  { %3255 = vmatprep.subr.bf16.mxu0 %v10312_v22  ;;  %3341 = vmatprep.subr.bf16.mxu1 %v10315_v23  ;;  %v10360_v22 = vld [vmem:[#allocation4 + $0x264] ss:$16 sps:$4 sm:$0xff]   ;;  %v10363_v23 = vld [vmem:[#allocation4 + $0x26c] ss:$16 sps:$4 sm:$0xff]  }
 0x197   :  { %3256 = vmatpush1.bf16.msra.mxu0 %v10310_v24  ;;  %3342 = vmatpush1.bf16.msra.mxu1 %v10313_v25  ;;  %v10358_v24 = vld [vmem:[#allocation4 + $0x260] ss:$16 sps:$4 sm:$0xff]   ;;  %v10361_v25 = vld [vmem:[#allocation4 + $0x268] ss:$16 sps:$4 sm:$0xff]  }
 0x198   :  { %3257 = vmatprep.subr.bf16.mxu0 %v10318_v26  ;;  %3343 = vmatprep.subr.bf16.mxu1 %v10321_v27  ;;  %v10366_v26 = vld [vmem:[#allocation4 + $0x284] ss:$16 sps:$4 sm:$0xff]   ;;  %v10369_v27 = vld [vmem:[#allocation4 + $0x28c] ss:$16 sps:$4 sm:$0xff]  }
 0x19b   :  { %3258 = vmatpush1.bf16.msra.mxu0 %v10316_v28  ;;  %3344 = vmatpush1.bf16.msra.mxu1 %v10319_v29  ;;  %v10364_v28 = vld [vmem:[#allocation4 + $0x280] ss:$16 sps:$4 sm:$0xff]   ;;  %v10367_v29 = vld [vmem:[#allocation4 + $0x288] ss:$16 sps:$4 sm:$0xff]  }
 0x19c   :  { %3259 = vmatprep.subr.bf16.mxu0 %v10324_v30  ;;  %3345 = vmatprep.subr.bf16.mxu1 %v10327_v31  ;;  %v10372_v30 = vld [vmem:[#allocation4 + $0x2a4] ss:$16 sps:$4 sm:$0xff]   ;;  %v10375_v31 = vld [vmem:[#allocation4 + $0x2ac] ss:$16 sps:$4 sm:$0xff]  }
 0x19f   :  { %3260 = vmatpush1.bf16.msra.mxu0 %v10322_v32  ;;  %3346 = vmatpush1.bf16.msra.mxu1 %v10325_v33  ;;  %v10370_v32 = vld [vmem:[#allocation4 + $0x2a0] ss:$16 sps:$4 sm:$0xff]   ;;  %v10373_v33 = vld [vmem:[#allocation4 + $0x2a8] ss:$16 sps:$4 sm:$0xff]  }
 0x1a0   :  { %3261 = vmatprep.subr.bf16.mxu0 %v10330_v34  ;;  %3347 = vmatprep.subr.bf16.mxu1 %v10333_v35  ;;  %v10378_v34 = vld [vmem:[#allocation4 + $0x2c4] ss:$16 sps:$4 sm:$0xff]   ;;  %v10381_v35 = vld [vmem:[#allocation4 + $0x2cc] ss:$16 sps:$4 sm:$0xff]  }
 0x1a3   :  { %3262 = vmatpush1.bf16.msra.mxu0 %v10328_v36  ;;  %3348 = vmatpush1.bf16.msra.mxu1 %v10331_v37  ;;  %v10376_v36 = vld [vmem:[#allocation4 + $0x2c0] ss:$16 sps:$4 sm:$0xff]   ;;  %v10379_v37 = vld [vmem:[#allocation4 + $0x2c8] ss:$16 sps:$4 sm:$0xff]  }
 0x1a4   :  { %3263 = vmatprep.subr.bf16.mxu0 %v10336_v38  ;;  %3349 = vmatprep.subr.bf16.mxu1 %v10339_v39  ;;  %v10384_v38 = vld [vmem:[#allocation4 + $0x2e4] ss:$16 sps:$4 sm:$0xff]   ;;  %v10387_v39 = vld [vmem:[#allocation4 + $0x2ec] ss:$16 sps:$4 sm:$0xff]  }
 0x1a7   :  { %3264 = vmatpush1.bf16.msra.mxu0 %v10334_v40  ;;  %3350 = vmatpush1.bf16.msra.mxu1 %v10337_v41  ;;  %v10382_v40 = vld [vmem:[#allocation4 + $0x2e0] ss:$16 sps:$4 sm:$0xff]   ;;  %v10385_v41 = vld [vmem:[#allocation4 + $0x2e8] ss:$16 sps:$4 sm:$0xff]  }
 0x1a8   :  { %3276 = vmatprep.subr.bf16.mxu0 %v10342_v42  ;;  %3362 = vmatprep.subr.bf16.mxu1 %v10345_v43  ;;  %v10390_v42 = vld [vmem:[#allocation4 + $0x304] ss:$16 sps:$4 sm:$0xff]   ;;  %v10393_v43 = vld [vmem:[#allocation4 + $0x30c] ss:$16 sps:$4 sm:$0xff]  }
 0x23d   :  { %v2084_v52 = vpop.f32.mrb[0].mxu0  ;;  %v11678_v53 = vpop.f32.mrb[0].mxu1 }
 0x23e   :  { %v2086_v54 = vpop.f32.mrb[1].mxu0  ;;  %v2301_v56 = vpop.f32.mrb[1].mxu1  ;;  %v11686_v60 = vadd.f32 %v2084_v52, %v379_v51  ;;  %v10396_v52 = vld [vmem:[#allocation4 + $0x324] ss:$16 sps:$4 sm:$0xff]  }
 0x23f   :  { %v11682_v57 = vadd.f32 %v2086_v54, %v383_v50  ;;  %v2088_v58 = vpop.f32.mrb[2].mxu0  ;;  %v11684_v59 = vpop.f32.mrb[2].mxu1  ;;  %v11694_v2 = vadd.f32 %v2301_v56, %v391_v55  ;;  %v10399_v54 = vld [vmem:[#allocation4 + $0x32c] ss:$16 sps:$4 sm:$0xff]   ;;  %v10397_v56 = vld [vmem:[#allocation4 + $0x328] ss:$16 sps:$4 sm:$0xff]  }
 0x240   :  { %v11688_v61 = vadd.f32 %v2088_v58, %v379_v51  ;;  %v2090_v62 = vpop.f32.mrb[3].mxu0  ;;  %v2305_v63 = vpop.f32.mrb[3].mxu1  ;;  %v2308_v8 = vmax.f32 %v11686_v60, 0.0  ;;  %v10391_v51 = vld [vmem:[#allocation4 + $0x308] ss:$16 sps:$4 sm:$0xff]  }
 0x241   :  { %v11690_v0 = vadd.f32 %v2090_v62, %v383_v50  ;;  %v11692_v1 = vadd.f32 %v2305_v63, %v391_v55  ;;  %v2309_v4 = vmax.f32 %v11682_v57, 0.0  ;;  %v2311_v13 = vmax.f32 %v11694_v2, 0.0  ;;  %v10388_v50 = vld [vmem:[#allocation4 + $0x300] ss:$16 sps:$4 sm:$0xff]   ;;  %v10402_v58 = vld [vmem:[#allocation4 + $0x344] ss:$16 sps:$4 sm:$0xff]  }
 0x242   :  { %v2312_v3 = vmax.f32 %v11688_v61, 0.0  ;;  %v10394_v55 = vld [vmem:[#allocation4 + $0x320] ss:$16 sps:$4 sm:$0xff]   ;;  %v10405_v62 = vld [vmem:[#allocation4 + $0x34c] ss:$16 sps:$4 sm:$0xff]  }
 0x243   :  { %v2313_v5 = vmax.f32 %v11690_v0, 0.0  ;;  %v2315_v9 = vmax.f32 %v11692_v1, 0.0  ;;  %v10400_v63 = vld [vmem:[#allocation4 + $0x340] ss:$16 sps:$4 sm:$0xff]   ;;  %v10732_v60 = vld [vmem:[#allocation4 + $0xa24] ss:$16 sps:$4 sm:$0xff]  }
 0x244   :  { %v2573_v14 = vpack.c.bf16 %v2312_v3, %v2308_v8  ;;  %v10738_v2 = vld [vmem:[#allocation4 + $0xa44] ss:$16 sps:$4 sm:$0xff]  }
 0x245   :  { %v2574_v10 = vpack.c.bf16 %v2313_v5, %v2309_v4  ;;  %v2576_v17 = vpack.c.bf16 %v2315_v9, %v2311_v13 }
 0x247   :  { %3265 = vmatprep.mubr.bf16.mxu0 %v2574_v10  ;;  %3351 = vmatprep.mubr.bf16.mxu1 %v2574_v10  ;;  %v10411_v10 = vld [vmem:[#allocation4 + $0x36c] ss:$16 sps:$4 sm:$0xff]  }
 0x248   :  { %3266 = vmatmul.mubr.bf16.vlgmr.msra.gmra.mrb[4].mxu0 %v2573_v14  ;;  %3352 = vmatmul.mubr.bf16.vlgmr.msra.gmra.mrb[4].mxu1 %v2573_v14  ;;  %v10414_v14 = vld [vmem:[#allocation4 + $0x384] ss:$16 sps:$4 sm:$0xff]  }
 0x249   :  { %3277 = vmatpush1.bf16.msra.mxu0 %v10340_v6  ;;  %3363 = vmatpush1.bf16.msra.mxu1 %v10343_v7  ;;  %v10403_v6 = vld [vmem:[#allocation4 + $0x348] ss:$16 sps:$4 sm:$0xff]   ;;  %v10408_v7 = vld [vmem:[#allocation4 + $0x364] ss:$16 sps:$4 sm:$0xff]  }
 0x24a   :  { %3308 = vmatprep.mubr.bf16.mxu0 %v2576_v17  ;;  %3394 = vmatprep.mubr.bf16.mxu1 %v2576_v17  ;;  %v10415_v17 = vld [vmem:[#allocation4 + $0x388] ss:$16 sps:$4 sm:$0xff]  }
 0x24b   :  { %3278 = vmatprep.subr.bf16.mxu0 %v10348_v11  ;;  %3364 = vmatprep.subr.bf16.mxu1 %v10351_v12  ;;  %v10406_v11 = vld [vmem:[#allocation4 + $0x360] ss:$16 sps:$4 sm:$0xff]   ;;  %v10409_v12 = vld [vmem:[#allocation4 + $0x368] ss:$16 sps:$4 sm:$0xff]  }
 0x24d   :  { %3279 = vmatpush1.bf16.msra.mxu0 %v10346_v15  ;;  %3365 = vmatpush1.bf16.msra.mxu1 %v10349_v16  ;;  %v10417_v15 = vld [vmem:[#allocation4 + $0x38c] ss:$16 sps:$4 sm:$0xff]   ;;  %v10412_v16 = vld [vmem:[#allocation4 + $0x380] ss:$16 sps:$4 sm:$0xff]  }
 0x24e   :  { %3280 = vmatprep.subr.bf16.mxu0 %v10354_v18  ;;  %3366 = vmatprep.subr.bf16.mxu1 %v10357_v19  ;;  %v10420_v18 = vld [vmem:[#allocation4 + $0x3a4] ss:$16 sps:$4 sm:$0xff]   ;;  %v10423_v19 = vld [vmem:[#allocation4 + $0x3ac] ss:$16 sps:$4 sm:$0xff]  }
 0x251   :  { %3281 = vmatpush1.bf16.msra.mxu0 %v10352_v20  ;;  %3367 = vmatpush1.bf16.msra.mxu1 %v10355_v21  ;;  %v11714_v20 = vld [vmem:[#allocation7 + $0x10] sm:$0xff] }
 0x252   :  { %3282 = vmatprep.subr.bf16.mxu0 %v10360_v22  ;;  %3368 = vmatprep.subr.bf16.mxu1 %v10363_v23  ;;  %v10418_v21 = vld [vmem:[#allocation4 + $0x3a0] ss:$16 sps:$4 sm:$0xff]   ;;  %v10421_v22 = vld [vmem:[#allocation4 + $0x3a8] ss:$16 sps:$4 sm:$0xff]   ;;  %v10426_v23 = vld [vmem:[#allocation4 + $0x3c4] ss:$16 sps:$4 sm:$0xff]  }
 0x255   :  { %3283 = vmatpush1.bf16.msra.mxu0 %v10358_v24  ;;  %3369 = vmatpush1.bf16.msra.mxu1 %v10361_v25  ;;  %v10429_v24 = vld [vmem:[#allocation4 + $0x3cc] ss:$16 sps:$4 sm:$0xff]   ;;  %v387_v25 = vrot.slane %v11714_v20, %v11668_v47 }
 0x256   :  { %3284 = vmatprep.subr.bf16.mxu0 %v10366_v26  ;;  %3370 = vmatprep.subr.bf16.mxu1 %v10369_v27  ;;  %v10424_v26 = vld [vmem:[#allocation4 + $0x3c0] ss:$16 sps:$4 sm:$0xff]   ;;  %v10427_v27 = vld [vmem:[#allocation4 + $0x3c8] ss:$16 sps:$4 sm:$0xff]  }
 0x259   :  { %3285 = vmatpush1.bf16.msra.mxu0 %v10364_v28  ;;  %3371 = vmatpush1.bf16.msra.mxu1 %v10367_v29  ;;  %v11719_v28 = vadd.f32 %v11684_v59, %v387_v25  ;;  %v10432_v29 = vld [vmem:[#allocation4 + $0x3e4] ss:$16 sps:$4 sm:$0xff]  }
 0x25a   :  { %3286 = vmatprep.subr.bf16.mxu0 %v10372_v30  ;;  %3372 = vmatprep.subr.bf16.mxu1 %v10375_v31  ;;  %v10435_v30 = vld [vmem:[#allocation4 + $0x3ec] ss:$16 sps:$4 sm:$0xff]   ;;  %v11722_v31 = vadd.f32 %v11678_v53, %v387_v25  ;;  %v10484_v25 = vld [vmem:[#allocation4 + $0x500] ss:$16 sps:$4 sm:$0xff]  }
 0x25b   :  { %v2314_v47 = vmax.f32 %v11719_v28, 0.0  ;;  %v10828_v28 = vld [vmem:[#allocation4 + $0xc24] ss:$16 sps:$4 sm:$0xff]  }
 0x25c   :  { %v2310_v59 = vmax.f32 %v11722_v31, 0.0  ;;  %v10834_v31 = vld [vmem:[#allocation4 + $0xc44] ss:$16 sps:$4 sm:$0xff]  }
 0x25d   :  { %3287 = vmatpush1.bf16.msra.mxu0 %v10370_v32  ;;  %3373 = vmatpush1.bf16.msra.mxu1 %v10373_v33  ;;  %v10430_v32 = vld [vmem:[#allocation4 + $0x3e0] ss:$16 sps:$4 sm:$0xff]   ;;  %v10433_v33 = vld [vmem:[#allocation4 + $0x3e8] ss:$16 sps:$4 sm:$0xff]  }
 0x25e   :  { %3288 = vmatprep.subr.bf16.mxu0 %v10378_v34  ;;  %3374 = vmatprep.subr.bf16.mxu1 %v10381_v35  ;;  %v10438_v34 = vld [vmem:[#allocation4 + $0x404] ss:$16 sps:$4 sm:$0xff]   ;;  %v10441_v35 = vld [vmem:[#allocation4 + $0x40c] ss:$16 sps:$4 sm:$0xff]   ;;  %v2575_v53 = vpack.c.bf16 %v2314_v47, %v2310_v59 }
 0x261   :  { %3289 = vmatpush1.bf16.msra.mxu0 %v10376_v36  ;;  %3375 = vmatpush1.bf16.msra.mxu1 %v10379_v37  ;;  %v10436_v36 = vld [vmem:[#allocation4 + $0x400] ss:$16 sps:$4 sm:$0xff]   ;;  %v10439_v37 = vld [vmem:[#allocation4 + $0x408] ss:$16 sps:$4 sm:$0xff]  }
 0x262   :  { %3290 = vmatprep.subr.bf16.mxu0 %v10384_v38  ;;  %3376 = vmatprep.subr.bf16.mxu1 %v10387_v39  ;;  %v10444_v38 = vld [vmem:[#allocation4 + $0x424] ss:$16 sps:$4 sm:$0xff]   ;;  %v10447_v39 = vld [vmem:[#allocation4 + $0x42c] ss:$16 sps:$4 sm:$0xff]  }
 0x265   :  { %3291 = vmatpush1.bf16.msra.mxu0 %v10382_v40  ;;  %3377 = vmatpush1.bf16.msra.mxu1 %v10385_v41  ;;  %v10442_v40 = vld [vmem:[#allocation4 + $0x420] ss:$16 sps:$4 sm:$0xff]   ;;  %v10445_v41 = vld [vmem:[#allocation4 + $0x428] ss:$16 sps:$4 sm:$0xff]  }
 0x266   :  { %3292 = vmatprep.subr.bf16.mxu0 %v10390_v42  ;;  %3378 = vmatprep.subr.bf16.mxu1 %v10393_v43  ;;  %v10450_v42 = vld [vmem:[#allocation4 + $0x444] ss:$16 sps:$4 sm:$0xff]   ;;  %v10453_v43 = vld [vmem:[#allocation4 + $0x44c] ss:$16 sps:$4 sm:$0xff]  }
 0x269   :  { %3293 = vmatpush1.bf16.msra.mxu0 %v10388_v50  ;;  %3379 = vmatpush1.bf16.msra.mxu1 %v10391_v51  ;;  %v10448_v50 = vld [vmem:[#allocation4 + $0x440] ss:$16 sps:$4 sm:$0xff]   ;;  %v10451_v51 = vld [vmem:[#allocation4 + $0x448] ss:$16 sps:$4 sm:$0xff]  }
 0x26a   :  { %3294 = vmatprep.subr.bf16.mxu0 %v10396_v52  ;;  %3380 = vmatprep.subr.bf16.mxu1 %v10399_v54  ;;  %v10456_v52 = vld [vmem:[#allocation4 + $0x464] ss:$16 sps:$4 sm:$0xff]   ;;  %v10459_v54 = vld [vmem:[#allocation4 + $0x46c] ss:$16 sps:$4 sm:$0xff]  }
 0x26d   :  { %3295 = vmatpush1.bf16.msra.mxu0 %v10394_v55  ;;  %3381 = vmatpush1.bf16.msra.mxu1 %v10397_v56  ;;  %v10454_v55 = vld [vmem:[#allocation4 + $0x460] ss:$16 sps:$4 sm:$0xff]   ;;  %v10457_v56 = vld [vmem:[#allocation4 + $0x468] ss:$16 sps:$4 sm:$0xff]  }
 0x26e   :  { %3296 = vmatprep.subr.bf16.mxu0 %v10402_v58  ;;  %3382 = vmatprep.subr.bf16.mxu1 %v10405_v62  ;;  %v10462_v58 = vld [vmem:[#allocation4 + $0x484] ss:$16 sps:$4 sm:$0xff]   ;;  %v10465_v62 = vld [vmem:[#allocation4 + $0x48c] ss:$16 sps:$4 sm:$0xff]  }
 0x271   :  { %3297 = vmatpush1.bf16.msra.mxu0 %v10400_v63  ;;  %3383 = vmatpush1.bf16.msra.mxu1 %v10403_v6  ;;  %v10460_v63 = vld [vmem:[#allocation4 + $0x480] ss:$16 sps:$4 sm:$0xff]   ;;  %v10463_v6 = vld [vmem:[#allocation4 + $0x488] ss:$16 sps:$4 sm:$0xff]  }
 0x272   :  { %3298 = vmatprep.subr.bf16.mxu0 %v10408_v7  ;;  %3384 = vmatprep.subr.bf16.mxu1 %v10411_v10  ;;  %v10468_v7 = vld [vmem:[#allocation4 + $0x4a4] ss:$16 sps:$4 sm:$0xff]   ;;  %v10471_v10 = vld [vmem:[#allocation4 + $0x4ac] ss:$16 sps:$4 sm:$0xff]  }
 0x275   :  { %3299 = vmatpush1.bf16.msra.mxu0 %v10406_v11  ;;  %3385 = vmatpush1.bf16.msra.mxu1 %v10409_v12  ;;  %v10466_v11 = vld [vmem:[#allocation4 + $0x4a0] ss:$16 sps:$4 sm:$0xff]   ;;  %v10469_v12 = vld [vmem:[#allocation4 + $0x4a8] ss:$16 sps:$4 sm:$0xff]  }
 0x276   :  { %3300 = vmatprep.subr.bf16.mxu0 %v10414_v14  ;;  %3386 = vmatprep.subr.bf16.mxu1 %v10417_v15  ;;  %v10474_v14 = vld [vmem:[#allocation4 + $0x4c4] ss:$16 sps:$4 sm:$0xff]   ;;  %v10477_v15 = vld [vmem:[#allocation4 + $0x4cc] ss:$16 sps:$4 sm:$0xff]  }
 0x279   :  { %3301 = vmatpush1.bf16.msra.mxu0 %v10412_v16  ;;  %3387 = vmatpush1.bf16.msra.mxu1 %v10415_v17  ;;  %v10472_v16 = vld [vmem:[#allocation4 + $0x4c0] ss:$16 sps:$4 sm:$0xff]   ;;  %v10475_v17 = vld [vmem:[#allocation4 + $0x4c8] ss:$16 sps:$4 sm:$0xff]  }
 0x27a   :  { %3302 = vmatprep.subr.bf16.mxu0 %v10420_v18  ;;  %3388 = vmatprep.subr.bf16.mxu1 %v10423_v19  ;;  %v10480_v18 = vld [vmem:[#allocation4 + $0x4e4] ss:$16 sps:$4 sm:$0xff]   ;;  %v10483_v19 = vld [vmem:[#allocation4 + $0x4ec] ss:$16 sps:$4 sm:$0xff]  }
 0x27d   :  { %3303 = vmatpush1.bf16.msra.mxu0 %v10418_v21  ;;  %3389 = vmatpush1.bf16.msra.mxu1 %v10421_v22  ;;  %v10478_v21 = vld [vmem:[#allocation4 + $0x4e0] ss:$16 sps:$4 sm:$0xff]   ;;  %v10481_v22 = vld [vmem:[#allocation4 + $0x4e8] ss:$16 sps:$4 sm:$0xff]  }
 0x27e   :  { %3304 = vmatprep.subr.bf16.mxu0 %v10426_v23  ;;  %3390 = vmatprep.subr.bf16.mxu1 %v10429_v24  ;;  %v10486_v23 = vld [vmem:[#allocation4 + $0x504] ss:$16 sps:$4 sm:$0xff]   ;;  %v10489_v24 = vld [vmem:[#allocation4 + $0x50c] ss:$16 sps:$4 sm:$0xff]  }
 0x281   :  { %3305 = vmatpush1.bf16.msra.mxu0 %v10424_v26  ;;  %3391 = vmatpush1.bf16.msra.mxu1 %v10427_v27  ;;  %v10487_v26 = vld [vmem:[#allocation4 + $0x508] ss:$16 sps:$4 sm:$0xff]   ;;  %v10492_v27 = vld [vmem:[#allocation4 + $0x524] ss:$16 sps:$4 sm:$0xff]  }
 0x282   :  { %3306 = vmatprep.subr.bf16.mxu0 %v10432_v29  ;;  %3392 = vmatprep.subr.bf16.mxu1 %v10435_v30  ;;  %v10495_v29 = vld [vmem:[#allocation4 + $0x52c] ss:$16 sps:$4 sm:$0xff]   ;;  %v10490_v30 = vld [vmem:[#allocation4 + $0x520] ss:$16 sps:$4 sm:$0xff]  }
 0x285   :  { %3307 = vmatpush1.bf16.msra.mxu0 %v10430_v32  ;;  %3393 = vmatpush1.bf16.msra.mxu1 %v10433_v33  ;;  %v10493_v32 = vld [vmem:[#allocation4 + $0x528] ss:$16 sps:$4 sm:$0xff]   ;;  %v10498_v33 = vld [vmem:[#allocation4 + $0x544] ss:$16 sps:$4 sm:$0xff]  }
 0x286   :  { %4073 = vmatprep.subr.bf16.mxu0 %v10438_v34  ;;  %4159 = vmatprep.subr.bf16.mxu1 %v10441_v35  ;;  %v10501_v34 = vld [vmem:[#allocation4 + $0x54c] ss:$16 sps:$4 sm:$0xff]   ;;  %v10496_v35 = vld [vmem:[#allocation4 + $0x540] ss:$16 sps:$4 sm:$0xff]  }
 0x288   :  { %3309 = vmatmul.mubr.bf16.vlgmr.msra.gmra.mrb[4].mxu0 %v2575_v53  ;;  %3395 = vmatmul.mubr.bf16.vlgmr.msra.gmra.mrb[4].mxu1 %v2575_v53  ;;  %v10507_v53 = vld [vmem:[#allocation4 + $0x56c] ss:$16 sps:$4 sm:$0xff]  }
 0x289   :  { %4074 = vmatpush1.bf16.msra.mxu0 %v10436_v36  ;;  %4160 = vmatpush1.bf16.msra.mxu1 %v10439_v37  ;;  %v10499_v36 = vld [vmem:[#allocation4 + $0x548] ss:$16 sps:$4 sm:$0xff]   ;;  %v10504_v37 = vld [vmem:[#allocation4 + $0x564] ss:$16 sps:$4 sm:$0xff]  }
 0x28a   :  { %4075 = vmatprep.subr.bf16.mxu0 %v10444_v38  ;;  %4161 = vmatprep.subr.bf16.mxu1 %v10447_v39  ;;  %v10502_v38 = vld [vmem:[#allocation4 + $0x560] ss:$16 sps:$4 sm:$0xff]   ;;  %v10505_v39 = vld [vmem:[#allocation4 + $0x568] ss:$16 sps:$4 sm:$0xff]  }
 0x28d   :  { %4076 = vmatpush1.bf16.msra.mxu0 %v10442_v40  ;;  %4162 = vmatpush1.bf16.msra.mxu1 %v10445_v41  ;;  %v10510_v40 = vld [vmem:[#allocation4 + $0x584] ss:$16 sps:$4 sm:$0xff]   ;;  %v10513_v41 = vld [vmem:[#allocation4 + $0x58c] ss:$16 sps:$4 sm:$0xff]  }
 0x28e   :  { %4077 = vmatprep.subr.bf16.mxu0 %v10450_v42  ;;  %4163 = vmatprep.subr.bf16.mxu1 %v10453_v43  ;;  %v10508_v42 = vld [vmem:[#allocation4 + $0x580] ss:$16 sps:$4 sm:$0xff]   ;;  %v10511_v43 = vld [vmem:[#allocation4 + $0x588] ss:$16 sps:$4 sm:$0xff]  }
 0x291   :  { %4078 = vmatpush1.bf16.msra.mxu0 %v10448_v50  ;;  %4164 = vmatpush1.bf16.msra.mxu1 %v10451_v51  ;;  %v10516_v50 = vld [vmem:[#allocation4 + $0x5a4] ss:$16 sps:$4 sm:$0xff]   ;;  %v10519_v51 = vld [vmem:[#allocation4 + $0x5ac] ss:$16 sps:$4 sm:$0xff]  }
 0x292   :  { %4079 = vmatprep.subr.bf16.mxu0 %v10456_v52  ;;  %4165 = vmatprep.subr.bf16.mxu1 %v10459_v54  ;;  %v10514_v52 = vld [vmem:[#allocation4 + $0x5a0] ss:$16 sps:$4 sm:$0xff]   ;;  %v10517_v54 = vld [vmem:[#allocation4 + $0x5a8] ss:$16 sps:$4 sm:$0xff]  }
 0x295   :  { %4080 = vmatpush1.bf16.msra.mxu0 %v10454_v55  ;;  %4166 = vmatpush1.bf16.msra.mxu1 %v10457_v56  ;;  %v10522_v55 = vld [vmem:[#allocation4 + $0x5c4] ss:$16 sps:$4 sm:$0xff]   ;;  %v10525_v56 = vld [vmem:[#allocation4 + $0x5cc] ss:$16 sps:$4 sm:$0xff]  }
 0x296   :  { %4081 = vmatprep.subr.bf16.mxu0 %v10462_v58  ;;  %4167 = vmatprep.subr.bf16.mxu1 %v10465_v62  ;;  %v10520_v58 = vld [vmem:[#allocation4 + $0x5c0] ss:$16 sps:$4 sm:$0xff]   ;;  %v10523_v62 = vld [vmem:[#allocation4 + $0x5c8] ss:$16 sps:$4 sm:$0xff]  }
 0x299   :  { %4082 = vmatpush1.bf16.msra.mxu0 %v10460_v63  ;;  %4168 = vmatpush1.bf16.msra.mxu1 %v10463_v6  ;;  %v10528_v63 = vld [vmem:[#allocation4 + $0x5e4] ss:$16 sps:$4 sm:$0xff]   ;;  %v10531_v6 = vld [vmem:[#allocation4 + $0x5ec] ss:$16 sps:$4 sm:$0xff]  }
 0x29a   :  { %4083 = vmatprep.subr.bf16.mxu0 %v10468_v7  ;;  %4169 = vmatprep.subr.bf16.mxu1 %v10471_v10  ;;  %v10526_v7 = vld [vmem:[#allocation4 + $0x5e0] ss:$16 sps:$4 sm:$0xff]   ;;  %v10529_v10 = vld [vmem:[#allocation4 + $0x5e8] ss:$16 sps:$4 sm:$0xff]  }
 0x29d   :  { %4084 = vmatpush1.bf16.msra.mxu0 %v10466_v11  ;;  %4170 = vmatpush1.bf16.msra.mxu1 %v10469_v12  ;;  %v10534_v11 = vld [vmem:[#allocation4 + $0x604] ss:$16 sps:$4 sm:$0xff]   ;;  %v10537_v12 = vld [vmem:[#allocation4 + $0x60c] ss:$16 sps:$4 sm:$0xff]  }
 0x29e   :  { %4085 = vmatprep.subr.bf16.mxu0 %v10474_v14  ;;  %4171 = vmatprep.subr.bf16.mxu1 %v10477_v15  ;;  %v2579_v14 = vsub.s32 1, %v11663_v45 }
 0x2a0   :  { %v2580_v15 = vrot.slane %v11670_v48, %v2579_v14 }
 0x2a1   :  { %4086 = vmatpush1.bf16.msra.mxu0 %v10472_v16  ;;  %4172 = vmatpush1.bf16.msra.mxu1 %v10475_v17  ;;  %v2588_v16 = vrot.slane %v11714_v20, %v2579_v14  ;;  %v2584_v17 = vrot.slane %v11665_v46, %v2579_v14 }
 0x2a2   :  { %4087 = vmatprep.subr.bf16.mxu0 %v10480_v18  ;;  %4173 = vmatprep.subr.bf16.mxu1 %v10483_v19  ;;  %v2592_v18 = vrot.slane %v11672_v49, %v2579_v14  ;;  %v10553_v14 = vld [vmem:[#allocation4 + $0x668] ss:$16 sps:$4 sm:$0xff]  }
 0x2a5   :  { %4088 = vmatpush1.bf16.msra.mxu0 %v10478_v21  ;;  %4174 = vmatpush1.bf16.msra.mxu1 %v10481_v22 }
 0x2a6   :  { %4089 = vmatprep.subr.bf16.mxu0 %v10486_v23  ;;  %4175 = vmatprep.subr.bf16.mxu1 %v10489_v24 }
 0x2a9   :  { %4090 = vmatpush1.bf16.msra.mxu0 %v10484_v25  ;;  %4176 = vmatpush1.bf16.msra.mxu1 %v10487_v26 }
 0x2aa   :  { %4091 = vmatprep.subr.bf16.mxu0 %v10492_v27  ;;  %4177 = vmatprep.subr.bf16.mxu1 %v10495_v29 }
 0x2ad   :  { %4092 = vmatpush1.bf16.msra.mxu0 %v10490_v30  ;;  %4178 = vmatpush1.bf16.msra.mxu1 %v10493_v32 }
 0x2ae   :  { %4093 = vmatprep.subr.bf16.mxu0 %v10498_v33  ;;  %4179 = vmatprep.subr.bf16.mxu1 %v10501_v34 }
 0x2b1   :  { %4094 = vmatpush1.bf16.msra.mxu0 %v10496_v35  ;;  %4180 = vmatpush1.bf16.msra.mxu1 %v10499_v36 }
 0x2b2   :  { %4095 = vmatprep.subr.bf16.mxu0 %v10504_v37  ;;  %4181 = vmatprep.subr.bf16.mxu1 %v10507_v53 }
 0x2b5   :  { %4096 = vmatpush1.bf16.msra.mxu0 %v10502_v38  ;;  %4182 = vmatpush1.bf16.msra.mxu1 %v10505_v39 }
 0x2b6   :  { %4097 = vmatprep.subr.bf16.mxu0 %v10510_v40  ;;  %4183 = vmatprep.subr.bf16.mxu1 %v10513_v41 }
 0x2b9   :  { %4098 = vmatpush1.bf16.msra.mxu0 %v10508_v42  ;;  %4184 = vmatpush1.bf16.msra.mxu1 %v10511_v43 }
 0x2ba   :  { %4099 = vmatprep.subr.bf16.mxu0 %v10516_v50  ;;  %4185 = vmatprep.subr.bf16.mxu1 %v10519_v51  ;;  %v10532_v51 = vld [vmem:[#allocation4 + $0x600] ss:$16 sps:$4 sm:$0xff]  }
 0x2bd   :  { %4100 = vmatpush1.bf16.msra.mxu0 %v10514_v52  ;;  %4186 = vmatpush1.bf16.msra.mxu1 %v10517_v54  ;;  %v10535_v52 = vld [vmem:[#allocation4 + $0x608] ss:$16 sps:$4 sm:$0xff]   ;;  %v10540_v54 = vld [vmem:[#allocation4 + $0x624] ss:$16 sps:$4 sm:$0xff]  }
 0x2be   :  { %4101 = vmatprep.subr.bf16.mxu0 %v10522_v55  ;;  %4187 = vmatprep.subr.bf16.mxu1 %v10525_v56  ;;  %v10543_v55 = vld [vmem:[#allocation4 + $0x62c] ss:$16 sps:$4 sm:$0xff]   ;;  %v10538_v56 = vld [vmem:[#allocation4 + $0x620] ss:$16 sps:$4 sm:$0xff]  }
 0x2c1   :  { %4102 = vmatpush1.bf16.msra.mxu0 %v10520_v58  ;;  %4188 = vmatpush1.bf16.msra.mxu1 %v10523_v62  ;;  %v10541_v58 = vld [vmem:[#allocation4 + $0x628] ss:$16 sps:$4 sm:$0xff]   ;;  %v10546_v62 = vld [vmem:[#allocation4 + $0x644] ss:$16 sps:$4 sm:$0xff]  }
 0x2c2   :  { %4103 = vmatprep.subr.bf16.mxu0 %v10528_v63  ;;  %4189 = vmatprep.subr.bf16.mxu1 %v10531_v6  ;;  %v10549_v63 = vld [vmem:[#allocation4 + $0x64c] ss:$16 sps:$4 sm:$0xff]   ;;  %v10544_v6 = vld [vmem:[#allocation4 + $0x640] ss:$16 sps:$4 sm:$0xff]  }
 0x2c5   :  { %4104 = vmatpush1.bf16.msra.mxu0 %v10526_v7  ;;  %4190 = vmatpush1.bf16.msra.mxu1 %v10529_v10  ;;  %v10547_v7 = vld [vmem:[#allocation4 + $0x648] ss:$16 sps:$4 sm:$0xff]   ;;  %v10552_v10 = vld [vmem:[#allocation4 + $0x664] ss:$16 sps:$4 sm:$0xff]  }
 0x2c6   :  { %4116 = vmatprep.subr.bf16.mxu0 %v10534_v11  ;;  %4202 = vmatprep.subr.bf16.mxu1 %v10537_v12  ;;  %v10555_v11 = vld [vmem:[#allocation4 + $0x66c] ss:$16 sps:$4 sm:$0xff]   ;;  %v10550_v12 = vld [vmem:[#allocation4 + $0x660] ss:$16 sps:$4 sm:$0xff]  }
 0x35b   :  { %v3310_v19 = vpop.f32.mrb[4].mxu0  ;;  %v3396_v21 = vpop.f32.mrb[4].mxu1 }
 0x35c   :  { %v9662_v22 = vadd.f32 %v3310_v19, %v2580_v15  ;;  %v9666_v23 = vadd.f32 %v3396_v21, %v2588_v16  ;;  %v3312_v24 = vpop.f32.mrb[5].mxu0  ;;  %v3398_v25 = vpop.f32.mrb[5].mxu1  ;;  %v10564_v19 = vld [vmem:[#allocation4 + $0x6a4] ss:$16 sps:$4 sm:$0xff]   ;;  %v10567_v21 = vld [vmem:[#allocation4 + $0x6ac] ss:$16 sps:$4 sm:$0xff]  }
 0x35d   :  { %v9663_v26 = vadd.f32 %v3312_v24, %v2584_v17  ;;  %v9667_v27 = vadd.f32 %v3398_v25, %v2592_v18  ;;  %v3314_v29 = vpop.f32.mrb[6].mxu0  ;;  %v3400_v30 = vpop.f32.mrb[6].mxu1  ;;  %v10570_v24 = vld [vmem:[#allocation4 + $0x6c4] ss:$16 sps:$4 sm:$0xff]   ;;  %v10573_v25 = vld [vmem:[#allocation4 + $0x6cc] ss:$16 sps:$4 sm:$0xff]  }
 0x35e   :  { %v9664_v32 = vadd.f32 %v3314_v29, %v2580_v15  ;;  %v9668_v33 = vadd.f32 %v3400_v30, %v2588_v16  ;;  %v3316_v34 = vpop.f32.mrb[7].mxu0  ;;  %v3402_v48 = vpop.f32.mrb[7].mxu1  ;;  %v3405_v36 = vmax.f32 %v9662_v22, 0.0  ;;  %v3407_v46 = vmax.f32 %v9666_v23, 0.0  ;;  %v10558_v15 = vld [vmem:[#allocation4 + $0x684] ss:$16 sps:$4 sm:$0xff]  }
 0x35f   :  { %v9665_v35 = vadd.f32 %v3316_v34, %v2584_v17  ;;  %v9669_v20 = vadd.f32 %v3402_v48, %v2592_v18  ;;  %v3406_v53 = vmax.f32 %v9663_v26, 0.0  ;;  %v3408_v38 = vmax.f32 %v9667_v27, 0.0  ;;  %v10561_v16 = vld [vmem:[#allocation4 + $0x68c] ss:$16 sps:$4 sm:$0xff]   ;;  %v10556_v17 = vld [vmem:[#allocation4 + $0x680] ss:$16 sps:$4 sm:$0xff]  }
 0x360   :  { %v3409_v37 = vmax.f32 %v9664_v32, 0.0  ;;  %v3411_v49 = vmax.f32 %v9668_v33, 0.0  ;;  %v10559_v18 = vld [vmem:[#allocation4 + $0x688] ss:$16 sps:$4 sm:$0xff]   ;;  %v10562_v22 = vld [vmem:[#allocation4 + $0x6a0] ss:$16 sps:$4 sm:$0xff]  }
 0x361   :  { %v3410_v39 = vmax.f32 %v9665_v35, 0.0  ;;  %v3412_v40 = vmax.f32 %v9669_v20, 0.0  ;;  %v10565_v23 = vld [vmem:[#allocation4 + $0x6a8] ss:$16 sps:$4 sm:$0xff]   ;;  %v10568_v26 = vld [vmem:[#allocation4 + $0x6c0] ss:$16 sps:$4 sm:$0xff]  }
 0x362   :  { %v3413_v41 = vpack.c.bf16 %v3409_v37, %v3405_v36  ;;  %v11735_v42 = vpack.c.bf16 %v3411_v49, %v3407_v46  ;;  %v10571_v27 = vld [vmem:[#allocation4 + $0x6c8] ss:$16 sps:$4 sm:$0xff]   ;;  %v10576_v29 = vld [vmem:[#allocation4 + $0x6e4] ss:$16 sps:$4 sm:$0xff]   ;;  %v10579_v30 = vld [vmem:[#allocation4 + $0x6ec] ss:$16 sps:$4 sm:$0xff]  }
 0x363   :  { %v3414_v43 = vpack.c.bf16 %v3410_v39, %v3406_v53  ;;  %v3416_v50 = vpack.c.bf16 %v3412_v40, %v3408_v38  ;;  %v10574_v32 = vld [vmem:[#allocation4 + $0x6e0] ss:$16 sps:$4 sm:$0xff]   ;;  %v10577_v33 = vld [vmem:[#allocation4 + $0x6e8] ss:$16 sps:$4 sm:$0xff]   ;;  %v10582_v34 = vld [vmem:[#allocation4 + $0x704] ss:$16 sps:$4 sm:$0xff]  }
 0x364   :  { %v10585_v48 = vld [vmem:[#allocation4 + $0x70c] ss:$16 sps:$4 sm:$0xff]   ;;  %v10580_v35 = vld [vmem:[#allocation4 + $0x700] ss:$16 sps:$4 sm:$0xff]   ;;  %v10583_v20 = vld [vmem:[#allocation4 + $0x708] ss:$16 sps:$4 sm:$0xff]  }
 0x365   :  { %4105 = vmatprep.mubr.bf16.mxu0 %v3414_v43  ;;  %4191 = vmatprep.mubr.bf16.mxu1 %v3414_v43  ;;  %v10588_v36 = vld [vmem:[#allocation4 + $0x724] ss:$16 sps:$4 sm:$0xff]   ;;  %v10591_v46 = vld [vmem:[#allocation4 + $0x72c] ss:$16 sps:$4 sm:$0xff]   ;;  %v10586_v37 = vld [vmem:[#allocation4 + $0x720] ss:$16 sps:$4 sm:$0xff]  }
 0x366   :  { %4106 = vmatmul.mubr.bf16.vlgmr.msra.gmra.mrb[8].mxu0 %v3413_v41  ;;  %4192 = vmatmul.mubr.bf16.vlgmr.msra.gmra.mrb[8].mxu1 %v3413_v41  ;;  %v10589_v49 = vld [vmem:[#allocation4 + $0x728] ss:$16 sps:$4 sm:$0xff]   ;;  %v10594_v53 = vld [vmem:[#allocation4 + $0x744] ss:$16 sps:$4 sm:$0xff]   ;;  %v10597_v38 = vld [vmem:[#allocation4 + $0x74c] ss:$16 sps:$4 sm:$0xff]  }
 0x367   :  { %4117 = vmatpush1.bf16.msra.mxu0 %v10532_v51  ;;  %4203 = vmatpush1.bf16.msra.mxu1 %v10535_v52  ;;  %v10592_v39 = vld [vmem:[#allocation4 + $0x740] ss:$16 sps:$4 sm:$0xff]   ;;  %v10595_v40 = vld [vmem:[#allocation4 + $0x748] ss:$16 sps:$4 sm:$0xff]   ;;  %v10600_v41 = vld [vmem:[#allocation4 + $0x764] ss:$16 sps:$4 sm:$0xff]  }
 0x368   :  { %4148 = vmatprep.mubr.bf16.mxu0 %v3416_v50  ;;  %4234 = vmatprep.mubr.bf16.mxu1 %v3416_v50  ;;  %v10603_v43 = vld [vmem:[#allocation4 + $0x76c] ss:$16 sps:$4 sm:$0xff]   ;;  %v10598_v50 = vld [vmem:[#allocation4 + $0x760] ss:$16 sps:$4 sm:$0xff]   ;;  %v10601_v51 = vld [vmem:[#allocation4 + $0x768] ss:$16 sps:$4 sm:$0xff]  }
 0x369   :  { %4118 = vmatprep.subr.bf16.mxu0 %v10540_v54  ;;  %4204 = vmatprep.subr.bf16.mxu1 %v10543_v55  ;;  %v10606_v52 = vld [vmem:[#allocation4 + $0x784] ss:$16 sps:$4 sm:$0xff]   ;;  %v10609_v54 = vld [vmem:[#allocation4 + $0x78c] ss:$16 sps:$4 sm:$0xff]   ;;  %v10604_v55 = vld [vmem:[#allocation4 + $0x780] ss:$16 sps:$4 sm:$0xff]  }
 0x36b   :  { %4119 = vmatpush1.bf16.msra.mxu0 %v10538_v56  ;;  %4205 = vmatpush1.bf16.msra.mxu1 %v10541_v58  ;;  %v10607_v56 = vld [vmem:[#allocation4 + $0x788] ss:$16 sps:$4 sm:$0xff]   ;;  %v10612_v58 = vld [vmem:[#allocation4 + $0x7a4] ss:$16 sps:$4 sm:$0xff]  }
 0x36c   :  { %4120 = vmatprep.subr.bf16.mxu0 %v10546_v62  ;;  %4206 = vmatprep.subr.bf16.mxu1 %v10549_v63  ;;  %v10615_v62 = vld [vmem:[#allocation4 + $0x7ac] ss:$16 sps:$4 sm:$0xff]   ;;  %v10610_v63 = vld [vmem:[#allocation4 + $0x7a0] ss:$16 sps:$4 sm:$0xff]  }
 0x36f   :  { %4121 = vmatpush1.bf16.msra.mxu0 %v10544_v6  ;;  %4207 = vmatpush1.bf16.msra.mxu1 %v10547_v7  ;;  %v10613_v6 = vld [vmem:[#allocation4 + $0x7a8] ss:$16 sps:$4 sm:$0xff]   ;;  %v10618_v7 = vld [vmem:[#allocation4 + $0x7c4] ss:$16 sps:$4 sm:$0xff]  }
 0x370   :  { %4122 = vmatprep.subr.bf16.mxu0 %v10552_v10  ;;  %4208 = vmatprep.subr.bf16.mxu1 %v10555_v11  ;;  %v10621_v10 = vld [vmem:[#allocation4 + $0x7cc] ss:$16 sps:$4 sm:$0xff]   ;;  %v10616_v11 = vld [vmem:[#allocation4 + $0x7c0] ss:$16 sps:$4 sm:$0xff]  }
 0x373   :  { %4123 = vmatpush1.bf16.msra.mxu0 %v10550_v12  ;;  %4209 = vmatpush1.bf16.msra.mxu1 %v10553_v14  ;;  %v10619_v12 = vld [vmem:[#allocation4 + $0x7c8] ss:$16 sps:$4 sm:$0xff]   ;;  %v10624_v14 = vld [vmem:[#allocation4 + $0x7e4] ss:$16 sps:$4 sm:$0xff]  }
 0x374   :  { %4124 = vmatprep.subr.bf16.mxu0 %v10558_v15  ;;  %4210 = vmatprep.subr.bf16.mxu1 %v10561_v16  ;;  %v10627_v15 = vld [vmem:[#allocation4 + $0x7ec] ss:$16 sps:$4 sm:$0xff]   ;;  %v10622_v16 = vld [vmem:[#allocation4 + $0x7e0] ss:$16 sps:$4 sm:$0xff]  }
 0x377   :  { %4125 = vmatpush1.bf16.msra.mxu0 %v10556_v17  ;;  %4211 = vmatpush1.bf16.msra.mxu1 %v10559_v18  ;;  %v10625_v17 = vld [vmem:[#allocation4 + $0x7e8] ss:$16 sps:$4 sm:$0xff]   ;;  %v10630_v18 = vld [vmem:[#allocation4 + $0x804] ss:$16 sps:$4 sm:$0xff]  }
 0x378   :  { %4126 = vmatprep.subr.bf16.mxu0 %v10564_v19  ;;  %4212 = vmatprep.subr.bf16.mxu1 %v10567_v21  ;;  %v10633_v19 = vld [vmem:[#allocation4 + $0x80c] ss:$16 sps:$4 sm:$0xff]   ;;  %v10628_v21 = vld [vmem:[#allocation4 + $0x800] ss:$16 sps:$4 sm:$0xff]  }
 0x37b   :  { %4127 = vmatpush1.bf16.msra.mxu0 %v10562_v22  ;;  %4213 = vmatpush1.bf16.msra.mxu1 %v10565_v23  ;;  %v10631_v22 = vld [vmem:[#allocation4 + $0x808] ss:$16 sps:$4 sm:$0xff]   ;;  %v10636_v23 = vld [vmem:[#allocation4 + $0x824] ss:$16 sps:$4 sm:$0xff]  }
 0x37c   :  { %4128 = vmatprep.subr.bf16.mxu0 %v10570_v24  ;;  %4214 = vmatprep.subr.bf16.mxu1 %v10573_v25  ;;  %v10639_v24 = vld [vmem:[#allocation4 + $0x82c] ss:$16 sps:$4 sm:$0xff]   ;;  %v10634_v25 = vld [vmem:[#allocation4 + $0x820] ss:$16 sps:$4 sm:$0xff]  }
 0x37f   :  { %4129 = vmatpush1.bf16.msra.mxu0 %v10568_v26  ;;  %4215 = vmatpush1.bf16.msra.mxu1 %v10571_v27  ;;  %v10637_v26 = vld [vmem:[#allocation4 + $0x828] ss:$16 sps:$4 sm:$0xff]   ;;  %v10642_v27 = vld [vmem:[#allocation4 + $0x844] ss:$16 sps:$4 sm:$0xff]  }
 0x380   :  { %4130 = vmatprep.subr.bf16.mxu0 %v10576_v29  ;;  %4216 = vmatprep.subr.bf16.mxu1 %v10579_v30  ;;  %v10645_v29 = vld [vmem:[#allocation4 + $0x84c] ss:$16 sps:$4 sm:$0xff]   ;;  %v10640_v30 = vld [vmem:[#allocation4 + $0x840] ss:$16 sps:$4 sm:$0xff]  }
 0x383   :  { %4131 = vmatpush1.bf16.msra.mxu0 %v10574_v32  ;;  %4217 = vmatpush1.bf16.msra.mxu1 %v10577_v33  ;;  %v10643_v32 = vld [vmem:[#allocation4 + $0x848] ss:$16 sps:$4 sm:$0xff]   ;;  %v10648_v33 = vld [vmem:[#allocation4 + $0x864] ss:$16 sps:$4 sm:$0xff]  }
 0x384   :  { %4132 = vmatprep.subr.bf16.mxu0 %v10582_v34  ;;  %4218 = vmatprep.subr.bf16.mxu1 %v10585_v48  ;;  %v10651_v34 = vld [vmem:[#allocation4 + $0x86c] ss:$16 sps:$4 sm:$0xff]   ;;  %v10646_v48 = vld [vmem:[#allocation4 + $0x860] ss:$16 sps:$4 sm:$0xff]  }
 0x387   :  { %4133 = vmatpush1.bf16.msra.mxu0 %v10580_v35  ;;  %4219 = vmatpush1.bf16.msra.mxu1 %v10583_v20  ;;  %v10654_v35 = vld [vmem:[#allocation4 + $0x884] ss:$16 sps:$4 sm:$0xff]   ;;  %v10657_v20 = vld [vmem:[#allocation4 + $0x88c] ss:$16 sps:$4 sm:$0xff]  }
 0x388   :  { %4134 = vmatprep.subr.bf16.mxu0 %v10588_v36  ;;  %4220 = vmatprep.subr.bf16.mxu1 %v10591_v46  ;;  %v10652_v36 = vld [vmem:[#allocation4 + $0x880] ss:$16 sps:$4 sm:$0xff]   ;;  %v10655_v46 = vld [vmem:[#allocation4 + $0x888] ss:$16 sps:$4 sm:$0xff]  }
 0x38b   :  { %4135 = vmatpush1.bf16.msra.mxu0 %v10586_v37  ;;  %4221 = vmatpush1.bf16.msra.mxu1 %v10589_v49  ;;  %v10660_v37 = vld [vmem:[#allocation4 + $0x8a4] ss:$16 sps:$4 sm:$0xff]   ;;  %v10663_v49 = vld [vmem:[#allocation4 + $0x8ac] ss:$16 sps:$4 sm:$0xff]  }
 0x38c   :  { %4136 = vmatprep.subr.bf16.mxu0 %v10594_v53  ;;  %4222 = vmatprep.subr.bf16.mxu1 %v10597_v38  ;;  %v10658_v53 = vld [vmem:[#allocation4 + $0x8a0] ss:$16 sps:$4 sm:$0xff]   ;;  %v10661_v38 = vld [vmem:[#allocation4 + $0x8a8] ss:$16 sps:$4 sm:$0xff]  }
 0x38f   :  { %4137 = vmatpush1.bf16.msra.mxu0 %v10592_v39  ;;  %4223 = vmatpush1.bf16.msra.mxu1 %v10595_v40  ;;  %v10666_v39 = vld [vmem:[#allocation4 + $0x8c4] ss:$16 sps:$4 sm:$0xff]   ;;  %v10669_v40 = vld [vmem:[#allocation4 + $0x8cc] ss:$16 sps:$4 sm:$0xff]  }
 0x390   :  { %4138 = vmatprep.subr.bf16.mxu0 %v10600_v41  ;;  %4224 = vmatprep.subr.bf16.mxu1 %v10603_v43  ;;  %v10664_v41 = vld [vmem:[#allocation4 + $0x8c0] ss:$16 sps:$4 sm:$0xff]   ;;  %v10667_v43 = vld [vmem:[#allocation4 + $0x8c8] ss:$16 sps:$4 sm:$0xff]  }
 0x393   :  { %4139 = vmatpush1.bf16.msra.mxu0 %v10598_v50  ;;  %4225 = vmatpush1.bf16.msra.mxu1 %v10601_v51  ;;  %v10672_v50 = vld [vmem:[#allocation4 + $0x8e4] ss:$16 sps:$4 sm:$0xff]   ;;  %v10675_v51 = vld [vmem:[#allocation4 + $0x8ec] ss:$16 sps:$4 sm:$0xff]  }
 0x394   :  { %4140 = vmatprep.subr.bf16.mxu0 %v10606_v52  ;;  %4226 = vmatprep.subr.bf16.mxu1 %v10609_v54  ;;  %v10670_v52 = vld [vmem:[#allocation4 + $0x8e0] ss:$16 sps:$4 sm:$0xff]   ;;  %v10673_v54 = vld [vmem:[#allocation4 + $0x8e8] ss:$16 sps:$4 sm:$0xff]  }
 0x397   :  { %4141 = vmatpush1.bf16.msra.mxu0 %v10604_v55  ;;  %4227 = vmatpush1.bf16.msra.mxu1 %v10607_v56  ;;  %v10678_v55 = vld [vmem:[#allocation4 + $0x904] ss:$16 sps:$4 sm:$0xff]   ;;  %v10681_v56 = vld [vmem:[#allocation4 + $0x90c] ss:$16 sps:$4 sm:$0xff]  }
 0x398   :  { %4142 = vmatprep.subr.bf16.mxu0 %v10612_v58  ;;  %4228 = vmatprep.subr.bf16.mxu1 %v10615_v62  ;;  %v10676_v58 = vld [vmem:[#allocation4 + $0x900] ss:$16 sps:$4 sm:$0xff]   ;;  %v10679_v62 = vld [vmem:[#allocation4 + $0x908] ss:$16 sps:$4 sm:$0xff]  }
 0x39b   :  { %4143 = vmatpush1.bf16.msra.mxu0 %v10610_v63  ;;  %4229 = vmatpush1.bf16.msra.mxu1 %v10613_v6  ;;  %v10684_v63 = vld [vmem:[#allocation4 + $0x924] ss:$16 sps:$4 sm:$0xff]   ;;  %v10687_v6 = vld [vmem:[#allocation4 + $0x92c] ss:$16 sps:$4 sm:$0xff]  }
 0x39c   :  { %4144 = vmatprep.subr.bf16.mxu0 %v10618_v7  ;;  %4230 = vmatprep.subr.bf16.mxu1 %v10621_v10  ;;  %v10682_v7 = vld [vmem:[#allocation4 + $0x920] ss:$16 sps:$4 sm:$0xff]   ;;  %v10685_v10 = vld [vmem:[#allocation4 + $0x928] ss:$16 sps:$4 sm:$0xff]  }
 0x39f   :  { %4145 = vmatpush1.bf16.msra.mxu0 %v10616_v11  ;;  %4231 = vmatpush1.bf16.msra.mxu1 %v10619_v12  ;;  %v10690_v11 = vld [vmem:[#allocation4 + $0x944] ss:$16 sps:$4 sm:$0xff]   ;;  %v10693_v12 = vld [vmem:[#allocation4 + $0x94c] ss:$16 sps:$4 sm:$0xff]  }
 0x3a0   :  { %4146 = vmatprep.subr.bf16.mxu0 %v10624_v14  ;;  %4232 = vmatprep.subr.bf16.mxu1 %v10627_v15  ;;  %v10688_v14 = vld [vmem:[#allocation4 + $0x940] ss:$16 sps:$4 sm:$0xff]   ;;  %v10691_v15 = vld [vmem:[#allocation4 + $0x948] ss:$16 sps:$4 sm:$0xff]  }
 0x3a3   :  { %4147 = vmatpush1.bf16.msra.mxu0 %v10622_v16  ;;  %4233 = vmatpush1.bf16.msra.mxu1 %v10625_v17  ;;  %v10696_v16 = vld [vmem:[#allocation4 + $0x964] ss:$16 sps:$4 sm:$0xff]   ;;  %v10699_v17 = vld [vmem:[#allocation4 + $0x96c] ss:$16 sps:$4 sm:$0xff]  }
 0x3a4   :  { %5171 = vmatprep.subr.bf16.mxu0 %v10630_v18  ;;  %5257 = vmatprep.subr.bf16.mxu1 %v10633_v19  ;;  %v10694_v18 = vld [vmem:[#allocation4 + $0x960] ss:$16 sps:$4 sm:$0xff]   ;;  %v10697_v19 = vld [vmem:[#allocation4 + $0x968] ss:$16 sps:$4 sm:$0xff]  }
 0x3a6   :  { %4149 = vmatmul.mubr.bf16.vlgmr.msra.gmra.mrb[8].mxu0 %v11735_v42  ;;  %4235 = vmatmul.mubr.bf16.vlgmr.msra.gmra.mrb[8].mxu1 %v11735_v42  ;;  %v10649_v42 = vld [vmem:[#allocation4 + $0x868] ss:$16 sps:$4 sm:$0xff]  }
 0x3a7   :  { %5172 = vmatpush1.bf16.msra.mxu0 %v10628_v21  ;;  %5258 = vmatpush1.bf16.msra.mxu1 %v10631_v22  ;;  %v10702_v21 = vld [vmem:[#allocation4 + $0x984] ss:$16 sps:$4 sm:$0xff]   ;;  %v10705_v22 = vld [vmem:[#allocation4 + $0x98c] ss:$16 sps:$4 sm:$0xff]  }
 0x3a8   :  { %5173 = vmatprep.subr.bf16.mxu0 %v10636_v23  ;;  %5259 = vmatprep.subr.bf16.mxu1 %v10639_v24  ;;  %v10700_v23 = vld [vmem:[#allocation4 + $0x980] ss:$16 sps:$4 sm:$0xff]   ;;  %v10703_v24 = vld [vmem:[#allocation4 + $0x988] ss:$16 sps:$4 sm:$0xff]  }
 0x3ab   :  { %5174 = vmatpush1.bf16.msra.mxu0 %v10634_v25  ;;  %5260 = vmatpush1.bf16.msra.mxu1 %v10637_v26  ;;  %v10708_v25 = vld [vmem:[#allocation4 + $0x9a4] ss:$16 sps:$4 sm:$0xff]   ;;  %v10711_v26 = vld [vmem:[#allocation4 + $0x9ac] ss:$16 sps:$4 sm:$0xff]  }
 0x3ac   :  { %5175 = vmatprep.subr.bf16.mxu0 %v10642_v27  ;;  %5261 = vmatprep.subr.bf16.mxu1 %v10645_v29  ;;  %v10706_v27 = vld [vmem:[#allocation4 + $0x9a0] ss:$16 sps:$4 sm:$0xff]   ;;  %v10709_v29 = vld [vmem:[#allocation4 + $0x9a8] ss:$16 sps:$4 sm:$0xff]  }
 0x3af   :  { %5176 = vmatpush1.bf16.msra.mxu0 %v10640_v30  ;;  %5262 = vmatpush1.bf16.msra.mxu1 %v10643_v32  ;;  %v10714_v30 = vld [vmem:[#allocation4 + $0x9c4] ss:$16 sps:$4 sm:$0xff]   ;;  %v10717_v32 = vld [vmem:[#allocation4 + $0x9cc] ss:$16 sps:$4 sm:$0xff]  }
 0x3b0   :  { %5177 = vmatprep.subr.bf16.mxu0 %v10648_v33  ;;  %5263 = vmatprep.subr.bf16.mxu1 %v10651_v34  ;;  %v10712_v33 = vld [vmem:[#allocation4 + $0x9c0] ss:$16 sps:$4 sm:$0xff]   ;;  %v10715_v34 = vld [vmem:[#allocation4 + $0x9c8] ss:$16 sps:$4 sm:$0xff]  }
 0x3b3   :  { %5178 = vmatpush1.bf16.msra.mxu0 %v10646_v48  ;;  %5264 = vmatpush1.bf16.msra.mxu1 %v10649_v42  ;;  %v10720_v48 = vld [vmem:[#allocation4 + $0x9e4] ss:$16 sps:$4 sm:$0xff]   ;;  %v10723_v42 = vld [vmem:[#allocation4 + $0x9ec] ss:$16 sps:$4 sm:$0xff]  }
 0x3b4   :  { %5179 = vmatprep.subr.bf16.mxu0 %v10654_v35  ;;  %5265 = vmatprep.subr.bf16.mxu1 %v10657_v20  ;;  %v10718_v35 = vld [vmem:[#allocation4 + $0x9e0] ss:$16 sps:$4 sm:$0xff]   ;;  %v10721_v20 = vld [vmem:[#allocation4 + $0x9e8] ss:$16 sps:$4 sm:$0xff]  }
 0x3b7   :  { %5180 = vmatpush1.bf16.msra.mxu0 %v10652_v36  ;;  %5266 = vmatpush1.bf16.msra.mxu1 %v10655_v46  ;;  %v10726_v36 = vld [vmem:[#allocation4 + $0xa04] ss:$16 sps:$4 sm:$0xff]   ;;  %v10729_v46 = vld [vmem:[#allocation4 + $0xa0c] ss:$16 sps:$4 sm:$0xff]  }
 0x3b8   :  { %5181 = vmatprep.subr.bf16.mxu0 %v10660_v37  ;;  %5267 = vmatprep.subr.bf16.mxu1 %v10663_v49  ;;  %v11740_v37 = vsub.s32 2, %v11663_v45  ;;  %v11742_v49 = vld [vmem:[#allocation7 + $0x8] sm:$0xff] }
 0x3bb   :  { %5182 = vmatpush1.bf16.msra.mxu0 %v10658_v53  ;;  %5268 = vmatpush1.bf16.msra.mxu1 %v10661_v38  ;;  %v3424_v53 = vrot.slane %v11742_v49, %v11740_v37  ;;  %v11746_v38 = vld [vmem:[#allocation7] sm:$0xff] }
 0x3bc   :  { %5183 = vmatprep.subr.bf16.mxu0 %v10666_v39  ;;  %5269 = vmatprep.subr.bf16.mxu1 %v10669_v40  ;;  %v3420_v39 = vrot.slane %v11746_v38, %v11740_v37 }
 0x3bf   :  { %5184 = vmatpush1.bf16.msra.mxu0 %v10664_v41  ;;  %5270 = vmatpush1.bf16.msra.mxu1 %v10667_v43 }
 0x3c0   :  { %5185 = vmatprep.subr.bf16.mxu0 %v10672_v50  ;;  %5271 = vmatprep.subr.bf16.mxu1 %v10675_v51  ;;  %v11752_v50 = vld [vmem:[#allocation7 + $0x18] sm:$0xff] }
 0x3c1   :  { %v3432_v51 = vrot.slane %v11752_v50, %v11740_v37 }
 0x3c3   :  { %5186 = vmatpush1.bf16.msra.mxu0 %v10670_v52  ;;  %5272 = vmatpush1.bf16.msra.mxu1 %v10673_v54 }
 0x3c4   :  { %5187 = vmatprep.subr.bf16.mxu0 %v10678_v55  ;;  %5273 = vmatprep.subr.bf16.mxu1 %v10681_v56 }
 0x3c7   :  { %5188 = vmatpush1.bf16.msra.mxu0 %v10676_v58  ;;  %5274 = vmatpush1.bf16.msra.mxu1 %v10679_v62 }
 0x3c8   :  { %5189 = vmatprep.subr.bf16.mxu0 %v10684_v63  ;;  %5275 = vmatprep.subr.bf16.mxu1 %v10687_v6 }
 0x3cb   :  { %5190 = vmatpush1.bf16.msra.mxu0 %v10682_v7  ;;  %5276 = vmatpush1.bf16.msra.mxu1 %v10685_v10 }
 0x3cc   :  { %5191 = vmatprep.subr.bf16.mxu0 %v10690_v11  ;;  %5277 = vmatprep.subr.bf16.mxu1 %v10693_v12 }
 0x3cf   :  { %5192 = vmatpush1.bf16.msra.mxu0 %v10688_v14  ;;  %5278 = vmatpush1.bf16.msra.mxu1 %v10691_v15 }
 0x3d0   :  { %5193 = vmatprep.subr.bf16.mxu0 %v10696_v16  ;;  %5279 = vmatprep.subr.bf16.mxu1 %v10699_v17 }
 0x3d3   :  { %5194 = vmatpush1.bf16.msra.mxu0 %v10694_v18  ;;  %5280 = vmatpush1.bf16.msra.mxu1 %v10697_v19  ;;  %v10727_v18 = vld [vmem:[#allocation4 + $0xa08] ss:$16 sps:$4 sm:$0xff]  }
 0x3d4   :  { %5195 = vmatprep.subr.bf16.mxu0 %v10702_v21  ;;  %5281 = vmatprep.subr.bf16.mxu1 %v10705_v22  ;;  %v10739_v19 = vld [vmem:[#allocation4 + $0xa48] ss:$16 sps:$4 sm:$0xff]   ;;  %v10744_v21 = vld [vmem:[#allocation4 + $0xa64] ss:$16 sps:$4 sm:$0xff]   ;;  %v10747_v22 = vld [vmem:[#allocation4 + $0xa6c] ss:$16 sps:$4 sm:$0xff]  }
 0x3d7   :  { %5196 = vmatpush1.bf16.msra.mxu0 %v10700_v23  ;;  %5282 = vmatpush1.bf16.msra.mxu1 %v10703_v24  ;;  %v10742_v23 = vld [vmem:[#allocation4 + $0xa60] ss:$16 sps:$4 sm:$0xff]   ;;  %v10745_v24 = vld [vmem:[#allocation4 + $0xa68] ss:$16 sps:$4 sm:$0xff]  }
 0x3d8   :  { %5197 = vmatprep.subr.bf16.mxu0 %v10708_v25  ;;  %5283 = vmatprep.subr.bf16.mxu1 %v10711_v26  ;;  %v10750_v25 = vld [vmem:[#allocation4 + $0xa84] ss:$16 sps:$4 sm:$0xff]   ;;  %v10753_v26 = vld [vmem:[#allocation4 + $0xa8c] ss:$16 sps:$4 sm:$0xff]  }
 0x3db   :  { %5198 = vmatpush1.bf16.msra.mxu0 %v10706_v27  ;;  %5284 = vmatpush1.bf16.msra.mxu1 %v10709_v29  ;;  %v10748_v27 = vld [vmem:[#allocation4 + $0xa80] ss:$16 sps:$4 sm:$0xff]   ;;  %v10751_v29 = vld [vmem:[#allocation4 + $0xa88] ss:$16 sps:$4 sm:$0xff]  }
 0x3dc   :  { %5199 = vmatprep.subr.bf16.mxu0 %v10714_v30  ;;  %5285 = vmatprep.subr.bf16.mxu1 %v10717_v32  ;;  %v10756_v30 = vld [vmem:[#allocation4 + $0xaa4] ss:$16 sps:$4 sm:$0xff]   ;;  %v10759_v32 = vld [vmem:[#allocation4 + $0xaac] ss:$16 sps:$4 sm:$0xff]  }
 0x3df   :  { %5200 = vmatpush1.bf16.msra.mxu0 %v10712_v33  ;;  %5286 = vmatpush1.bf16.msra.mxu1 %v10715_v34  ;;  %v10754_v33 = vld [vmem:[#allocation4 + $0xaa0] ss:$16 sps:$4 sm:$0xff]   ;;  %v10757_v34 = vld [vmem:[#allocation4 + $0xaa8] ss:$16 sps:$4 sm:$0xff]  }
 0x3e0   :  { %5201 = vmatprep.subr.bf16.mxu0 %v10720_v48  ;;  %5287 = vmatprep.subr.bf16.mxu1 %v10723_v42  ;;  %v10762_v48 = vld [vmem:[#allocation4 + $0xac4] ss:$16 sps:$4 sm:$0xff]   ;;  %v10765_v42 = vld [vmem:[#allocation4 + $0xacc] ss:$16 sps:$4 sm:$0xff]  }
 0x3e3   :  { %5202 = vmatpush1.bf16.msra.mxu0 %v10718_v35  ;;  %5288 = vmatpush1.bf16.msra.mxu1 %v10721_v20  ;;  %v10760_v35 = vld [vmem:[#allocation4 + $0xac0] ss:$16 sps:$4 sm:$0xff]   ;;  %v10763_v20 = vld [vmem:[#allocation4 + $0xac8] ss:$16 sps:$4 sm:$0xff]  }
 0x3e4   :  { %5214 = vmatprep.subr.bf16.mxu0 %v10726_v36  ;;  %5300 = vmatprep.subr.bf16.mxu1 %v10729_v46  ;;  %v10768_v36 = vld [vmem:[#allocation4 + $0xae4] ss:$16 sps:$4 sm:$0xff]   ;;  %v10771_v46 = vld [vmem:[#allocation4 + $0xaec] ss:$16 sps:$4 sm:$0xff]  }
 0x479   :  { %v4150_v40 = vpop.f32.mrb[8].mxu0  ;;  %v11750_v41 = vpop.f32.mrb[8].mxu1 }
 0x47a   :  { %v4152_v43 = vpop.f32.mrb[9].mxu0  ;;  %v4238_v52 = vpop.f32.mrb[9].mxu1  ;;  %v9670_v58 = vadd.f32 %v4150_v40, %v3420_v39  ;;  %v10774_v40 = vld [vmem:[#allocation4 + $0xb04] ss:$16 sps:$4 sm:$0xff]  }
 0x47b   :  { %v9671_v54 = vadd.f32 %v4152_v43, %v3424_v53  ;;  %v4154_v55 = vpop.f32.mrb[10].mxu0  ;;  %v11756_v56 = vpop.f32.mrb[10].mxu1  ;;  %v9675_v11 = vadd.f32 %v4238_v52, %v3432_v51  ;;  %v10777_v43 = vld [vmem:[#allocation4 + $0xb0c] ss:$16 sps:$4 sm:$0xff]   ;;  %v10775_v52 = vld [vmem:[#allocation4 + $0xb08] ss:$16 sps:$4 sm:$0xff]  }
 0x47c   :  { %v9672_v62 = vadd.f32 %v4154_v55, %v3420_v39  ;;  %v4156_v63 = vpop.f32.mrb[11].mxu0  ;;  %v4242_v6 = vpop.f32.mrb[11].mxu1  ;;  %v11772_v16 = vadd.f32 %v9670_v58, %v2308_v8  ;;  %v10733_v8 = vld [vmem:[#allocation4 + $0xa28] ss:$16 sps:$4 sm:$0xff]   ;;  %v10783_v55 = vld [vmem:[#allocation4 + $0xb2c] ss:$16 sps:$4 sm:$0xff]  }
 0x47d   :  { %v9673_v7 = vadd.f32 %v4156_v63, %v3424_v53  ;;  %v9677_v10 = vadd.f32 %v4242_v6, %v3432_v51  ;;  %v11764_v14 = vadd.f32 %v9671_v54, %v2309_v4  ;;  %v11782_v57 = vadd.f32 %v9675_v11, %v2311_v13  ;;  %v10735_v4 = vld [vmem:[#allocation4 + $0xa2c] ss:$16 sps:$4 sm:$0xff]   ;;  %v10736_v13 = vld [vmem:[#allocation4 + $0xa40] ss:$16 sps:$4 sm:$0xff]   ;;  %v10769_v39 = vld [vmem:[#allocation4 + $0xae8] ss:$16 sps:$4 sm:$0xff]  }
 0x47e   :  { %v11760_v12 = vadd.f32 %v9672_v62, %v2312_v3  ;;  %v10724_v3 = vld [vmem:[#allocation4 + $0xa00] ss:$16 sps:$4 sm:$0xff]   ;;  %v10780_v54 = vld [vmem:[#allocation4 + $0xb24] ss:$16 sps:$4 sm:$0xff]   ;;  %v10781_v62 = vld [vmem:[#allocation4 + $0xb28] ss:$16 sps:$4 sm:$0xff]  }
 0x47f   :  { %v11768_v15 = vadd.f32 %v9673_v7, %v2313_v5  ;;  %v11776_v17 = vadd.f32 %v9677_v10, %v2315_v9  ;;  %v10730_v5 = vld [vmem:[#allocation4 + $0xa20] ss:$16 sps:$4 sm:$0xff]   ;;  %v10741_v9 = vld [vmem:[#allocation4 + $0xa4c] ss:$16 sps:$4 sm:$0xff]   ;;  %v10786_v63 = vld [vmem:[#allocation4 + $0xb44] ss:$16 sps:$4 sm:$0xff]  }
 0x480   :  { %v4511_v0 = vpack.c.bf16 %v11760_v12, %v11772_v16  ;;  %v10766_v53 = vld [vmem:[#allocation4 + $0xae0] ss:$16 sps:$4 sm:$0xff]   ;;  %v10789_v6 = vld [vmem:[#allocation4 + $0xb4c] ss:$16 sps:$4 sm:$0xff]   ;;  %v10787_v10 = vld [vmem:[#allocation4 + $0xb48] ss:$16 sps:$4 sm:$0xff]  }
 0x481   :  { %v4512_v61 = vpack.c.bf16 %v11768_v15, %v11764_v14  ;;  %v4514_v1 = vpack.c.bf16 %v11776_v17, %v11782_v57  ;;  %v10772_v51 = vld [vmem:[#allocation4 + $0xb00] ss:$16 sps:$4 sm:$0xff]   ;;  %v10792_v11 = vld [vmem:[#allocation4 + $0xb64] ss:$16 sps:$4 sm:$0xff]  }
 0x482   :  { %v10778_v58 = vld [vmem:[#allocation4 + $0xb20] ss:$16 sps:$4 sm:$0xff]  }
 0x483   :  { %5203 = vmatprep.mubr.bf16.mxu0 %v4512_v61  ;;  %5289 = vmatprep.mubr.bf16.mxu1 %v4512_v61  ;;  %v10784_v7 = vld [vmem:[#allocation4 + $0xb40] ss:$16 sps:$4 sm:$0xff]   ;;  %v10795_v61 = vld [vmem:[#allocation4 + $0xb6c] ss:$16 sps:$4 sm:$0xff]  }
 0x484   :  { %5204 = vmatmul.mubr.bf16.vlgmr.msra.gmra.mrb[12].mxu0 %v4511_v0  ;;  %5290 = vmatmul.mubr.bf16.vlgmr.msra.gmra.mrb[12].mxu1 %v4511_v0  ;;  %v10798_v0 = vld [vmem:[#allocation4 + $0xb84] ss:$16 sps:$4 sm:$0xff]  }
 0x485   :  { %5215 = vmatpush1.bf16.msra.mxu0 %v10724_v3  ;;  %5301 = vmatpush1.bf16.msra.mxu1 %v10727_v18  ;;  %v10790_v3 = vld [vmem:[#allocation4 + $0xb60] ss:$16 sps:$4 sm:$0xff]   ;;  %v10793_v18 = vld [vmem:[#allocation4 + $0xb68] ss:$16 sps:$4 sm:$0xff]  }
 0x486   :  { %5246 = vmatprep.mubr.bf16.mxu0 %v4514_v1  ;;  %5332 = vmatprep.mubr.bf16.mxu1 %v4514_v1  ;;  %v10799_v1 = vld [vmem:[#allocation4 + $0xb88] ss:$16 sps:$4 sm:$0xff]  }
 0x487   :  { %5216 = vmatprep.subr.bf16.mxu0 %v10732_v60  ;;  %5302 = vmatprep.subr.bf16.mxu1 %v10735_v4  ;;  %v10801_v60 = vld [vmem:[#allocation4 + $0xb8c] ss:$16 sps:$4 sm:$0xff]   ;;  %v10796_v4 = vld [vmem:[#allocation4 + $0xb80] ss:$16 sps:$4 sm:$0xff]  }
 0x489   :  { %5217 = vmatpush1.bf16.msra.mxu0 %v10730_v5  ;;  %5303 = vmatpush1.bf16.msra.mxu1 %v10733_v8  ;;  %v10804_v5 = vld [vmem:[#allocation4 + $0xba4] ss:$16 sps:$4 sm:$0xff]   ;;  %v10807_v8 = vld [vmem:[#allocation4 + $0xbac] ss:$16 sps:$4 sm:$0xff]  }
 0x48a   :  { %5218 = vmatprep.subr.bf16.mxu0 %v10738_v2  ;;  %5304 = vmatprep.subr.bf16.mxu1 %v10741_v9  ;;  %v10802_v2 = vld [vmem:[#allocation4 + $0xba0] ss:$16 sps:$4 sm:$0xff]   ;;  %v10805_v9 = vld [vmem:[#allocation4 + $0xba8] ss:$16 sps:$4 sm:$0xff]  }
 0x48d   :  { %5219 = vmatpush1.bf16.msra.mxu0 %v10736_v13  ;;  %5305 = vmatpush1.bf16.msra.mxu1 %v10739_v19  ;;  %v10810_v13 = vld [vmem:[#allocation4 + $0xbc4] ss:$16 sps:$4 sm:$0xff]   ;;  %v10813_v19 = vld [vmem:[#allocation4 + $0xbcc] ss:$16 sps:$4 sm:$0xff]  }
 0x48e   :  { %5220 = vmatprep.subr.bf16.mxu0 %v10744_v21  ;;  %5306 = vmatprep.subr.bf16.mxu1 %v10747_v22  ;;  %v11788_v21 = vld [vmem:[#allocation7 + $0x10] sm:$0xff] }
 0x48f   :  { %v3428_v22 = vrot.slane %v11788_v21, %v11740_v37  ;;  %v10822_v37 = vld [vmem:[#allocation4 + $0xc04] ss:$16 sps:$4 sm:$0xff]  }
 0x491   :  { %5221 = vmatpush1.bf16.msra.mxu0 %v10742_v23  ;;  %5307 = vmatpush1.bf16.msra.mxu1 %v10745_v24  ;;  %v10808_v23 = vld [vmem:[#allocation4 + $0xbc0] ss:$16 sps:$4 sm:$0xff]   ;;  %v10811_v24 = vld [vmem:[#allocation4 + $0xbc8] ss:$16 sps:$4 sm:$0xff]  }
 0x492   :  { %5222 = vmatprep.subr.bf16.mxu0 %v10750_v25  ;;  %5308 = vmatprep.subr.bf16.mxu1 %v10753_v26  ;;  %v9676_v25 = vadd.f32 %v11756_v56, %v3428_v22  ;;  %v10816_v26 = vld [vmem:[#allocation4 + $0xbe4] ss:$16 sps:$4 sm:$0xff]  }
 0x495   :  { %5223 = vmatpush1.bf16.msra.mxu0 %v10748_v27  ;;  %5309 = vmatpush1.bf16.msra.mxu1 %v10751_v29  ;;  %v10819_v27 = vld [vmem:[#allocation4 + $0xbec] ss:$16 sps:$4 sm:$0xff]   ;;  %v9674_v29 = vadd.f32 %v11750_v41, %v3428_v22  ;;  %v10823_v41 = vld [vmem:[#allocation4 + $0xc08] ss:$16 sps:$4 sm:$0xff]   ;;  %v10882_v22 = vld [vmem:[#allocation4 + $0xd44] ss:$16 sps:$4 sm:$0xff]  }
 0x496   :  { %5224 = vmatprep.subr.bf16.mxu0 %v10756_v30  ;;  %5310 = vmatprep.subr.bf16.mxu1 %v10759_v32  ;;  %v10814_v30 = vld [vmem:[#allocation4 + $0xbe0] ss:$16 sps:$4 sm:$0xff]   ;;  %v10817_v32 = vld [vmem:[#allocation4 + $0xbe8] ss:$16 sps:$4 sm:$0xff]  }
 0x497   :  { %v11800_v56 = vadd.f32 %v9674_v29, %v2310_v59  ;;  %v10837_v59 = vld [vmem:[#allocation4 + $0xc4c] ss:$16 sps:$4 sm:$0xff]   ;;  %v10886_v29 = vld [vmem:[#allocation4 + $0xd60] ss:$16 sps:$4 sm:$0xff]  }
 0x499   :  { %5225 = vmatpush1.bf16.msra.mxu0 %v10754_v33  ;;  %5311 = vmatpush1.bf16.msra.mxu1 %v10757_v34  ;;  %v11796_v33 = vadd.f32 %v9676_v25, %v2314_v47  ;;  %v10825_v34 = vld [vmem:[#allocation4 + $0xc0c] ss:$16 sps:$4 sm:$0xff]   ;;  %v10883_v25 = vld [vmem:[#allocation4 + $0xd48] ss:$16 sps:$4 sm:$0xff]  }
 0x49a   :  { %5226 = vmatprep.subr.bf16.mxu0 %v10762_v48  ;;  %5312 = vmatprep.subr.bf16.mxu1 %v10765_v42  ;;  %v10820_v48 = vld [vmem:[#allocation4 + $0xc00] ss:$16 sps:$4 sm:$0xff]   ;;  %v10831_v47 = vld [vmem:[#allocation4 + $0xc2c] ss:$16 sps:$4 sm:$0xff]  }
 0x49b   :  { %v4513_v42 = vpack.c.bf16 %v11796_v33, %v11800_v56 }
 0x49d   :  { %5227 = vmatpush1.bf16.msra.mxu0 %v10760_v35  ;;  %5313 = vmatpush1.bf16.msra.mxu1 %v10763_v20  ;;  %v10826_v35 = vld [vmem:[#allocation4 + $0xc20] ss:$16 sps:$4 sm:$0xff]   ;;  %v10829_v20 = vld [vmem:[#allocation4 + $0xc28] ss:$16 sps:$4 sm:$0xff]  }
 0x49e   :  { %5228 = vmatprep.subr.bf16.mxu0 %v10768_v36  ;;  %5314 = vmatprep.subr.bf16.mxu1 %v10771_v46  ;;  %v10832_v36 = vld [vmem:[#allocation4 + $0xc40] ss:$16 sps:$4 sm:$0xff]   ;;  %v10835_v46 = vld [vmem:[#allocation4 + $0xc48] ss:$16 sps:$4 sm:$0xff]  }
 0x4a1   :  { %5229 = vmatpush1.bf16.msra.mxu0 %v10766_v53  ;;  %5315 = vmatpush1.bf16.msra.mxu1 %v10769_v39  ;;  %v10840_v53 = vld [vmem:[#allocation4 + $0xc64] ss:$16 sps:$4 sm:$0xff]   ;;  %v10843_v39 = vld [vmem:[#allocation4 + $0xc6c] ss:$16 sps:$4 sm:$0xff]  }
 0x4a2   :  { %5230 = vmatprep.subr.bf16.mxu0 %v10774_v40  ;;  %5316 = vmatprep.subr.bf16.mxu1 %v10777_v43  ;;  %v10838_v40 = vld [vmem:[#allocation4 + $0xc60] ss:$16 sps:$4 sm:$0xff]   ;;  %v10841_v43 = vld [vmem:[#allocation4 + $0xc68] ss:$16 sps:$4 sm:$0xff]  }
 0x4a5   :  { %5231 = vmatpush1.bf16.msra.mxu0 %v10772_v51  ;;  %5317 = vmatpush1.bf16.msra.mxu1 %v10775_v52  ;;  %v10846_v51 = vld [vmem:[#allocation4 + $0xc84] ss:$16 sps:$4 sm:$0xff]   ;;  %v10849_v52 = vld [vmem:[#allocation4 + $0xc8c] ss:$16 sps:$4 sm:$0xff]  }
 0x4a6   :  { %5232 = vmatprep.subr.bf16.mxu0 %v10780_v54  ;;  %5318 = vmatprep.subr.bf16.mxu1 %v10783_v55  ;;  %v10844_v54 = vld [vmem:[#allocation4 + $0xc80] ss:$16 sps:$4 sm:$0xff]   ;;  %v10847_v55 = vld [vmem:[#allocation4 + $0xc88] ss:$16 sps:$4 sm:$0xff]  }
 0x4a9   :  { %5233 = vmatpush1.bf16.msra.mxu0 %v10778_v58  ;;  %5319 = vmatpush1.bf16.msra.mxu1 %v10781_v62  ;;  %v10852_v58 = vld [vmem:[#allocation4 + $0xca4] ss:$16 sps:$4 sm:$0xff]   ;;  %v10855_v62 = vld [vmem:[#allocation4 + $0xcac] ss:$16 sps:$4 sm:$0xff]  }
 0x4aa   :  { %5234 = vmatprep.subr.bf16.mxu0 %v10786_v63  ;;  %5320 = vmatprep.subr.bf16.mxu1 %v10789_v6  ;;  %v10850_v63 = vld [vmem:[#allocation4 + $0xca0] ss:$16 sps:$4 sm:$0xff]   ;;  %v10853_v6 = vld [vmem:[#allocation4 + $0xca8] ss:$16 sps:$4 sm:$0xff]  }
 0x4ad   :  { %5235 = vmatpush1.bf16.msra.mxu0 %v10784_v7  ;;  %5321 = vmatpush1.bf16.msra.mxu1 %v10787_v10  ;;  %v10858_v7 = vld [vmem:[#allocation4 + $0xcc4] ss:$16 sps:$4 sm:$0xff]   ;;  %v10861_v10 = vld [vmem:[#allocation4 + $0xccc] ss:$16 sps:$4 sm:$0xff]  }
 0x4ae   :  { %5236 = vmatprep.subr.bf16.mxu0 %v10792_v11  ;;  %5322 = vmatprep.subr.bf16.mxu1 %v10795_v61  ;;  %v10856_v11 = vld [vmem:[#allocation4 + $0xcc0] ss:$16 sps:$4 sm:$0xff]   ;;  %v10859_v61 = vld [vmem:[#allocation4 + $0xcc8] ss:$16 sps:$4 sm:$0xff]  }
 0x4b1   :  { %5237 = vmatpush1.bf16.msra.mxu0 %v10790_v3  ;;  %5323 = vmatpush1.bf16.msra.mxu1 %v10793_v18  ;;  %v10864_v3 = vld [vmem:[#allocation4 + $0xce4] ss:$16 sps:$4 sm:$0xff]   ;;  %v10867_v18 = vld [vmem:[#allocation4 + $0xcec] ss:$16 sps:$4 sm:$0xff]  }
 0x4b2   :  { %5238 = vmatprep.subr.bf16.mxu0 %v10798_v0  ;;  %5324 = vmatprep.subr.bf16.mxu1 %v10801_v60  ;;  %v10862_v0 = vld [vmem:[#allocation4 + $0xce0] ss:$16 sps:$4 sm:$0xff]   ;;  %v10865_v60 = vld [vmem:[#allocation4 + $0xce8] ss:$16 sps:$4 sm:$0xff]  }
 0x4b5   :  { %5239 = vmatpush1.bf16.msra.mxu0 %v10796_v4  ;;  %5325 = vmatpush1.bf16.msra.mxu1 %v10799_v1  ;;  %v10870_v4 = vld [vmem:[#allocation4 + $0xd04] ss:$16 sps:$4 sm:$0xff]   ;;  %v10873_v1 = vld [vmem:[#allocation4 + $0xd0c] ss:$16 sps:$4 sm:$0xff]  }
 0x4b6   :  { %5240 = vmatprep.subr.bf16.mxu0 %v10804_v5  ;;  %5326 = vmatprep.subr.bf16.mxu1 %v10807_v8  ;;  %v10868_v5 = vld [vmem:[#allocation4 + $0xd00] ss:$16 sps:$4 sm:$0xff]   ;;  %v10871_v8 = vld [vmem:[#allocation4 + $0xd08] ss:$16 sps:$4 sm:$0xff]  }
 0x4b9   :  { %5241 = vmatpush1.bf16.msra.mxu0 %v10802_v2  ;;  %5327 = vmatpush1.bf16.msra.mxu1 %v10805_v9  ;;  %v10876_v2 = vld [vmem:[#allocation4 + $0xd24] ss:$16 sps:$4 sm:$0xff]   ;;  %v10879_v9 = vld [vmem:[#allocation4 + $0xd2c] ss:$16 sps:$4 sm:$0xff]  }
 0x4ba   :  { %5242 = vmatprep.subr.bf16.mxu0 %v10810_v13  ;;  %5328 = vmatprep.subr.bf16.mxu1 %v10813_v19  ;;  %v10874_v13 = vld [vmem:[#allocation4 + $0xd20] ss:$16 sps:$4 sm:$0xff]   ;;  %v10877_v19 = vld [vmem:[#allocation4 + $0xd28] ss:$16 sps:$4 sm:$0xff]  }
 0x4bd   :  { %5243 = vmatpush1.bf16.msra.mxu0 %v10808_v23  ;;  %5329 = vmatpush1.bf16.msra.mxu1 %v10811_v24  ;;  %v10885_v23 = vld [vmem:[#allocation4 + $0xd4c] ss:$16 sps:$4 sm:$0xff]   ;;  %v10880_v24 = vld [vmem:[#allocation4 + $0xd40] ss:$16 sps:$4 sm:$0xff]  }
 0x4be   :  { %5244 = vmatprep.subr.bf16.mxu0 %v10816_v26  ;;  %5330 = vmatprep.subr.bf16.mxu1 %v10819_v27  ;;  %v10888_v26 = vld [vmem:[#allocation4 + $0xd64] ss:$16 sps:$4 sm:$0xff]   ;;  %v10891_v27 = vld [vmem:[#allocation4 + $0xd6c] ss:$16 sps:$4 sm:$0xff]  }
 0x4c1   :  { %5245 = vmatpush1.bf16.msra.mxu0 %v10814_v30  ;;  %5331 = vmatpush1.bf16.msra.mxu1 %v10817_v32  ;;  %v10889_v30 = vld [vmem:[#allocation4 + $0xd68] ss:$16 sps:$4 sm:$0xff]   ;;  %v10894_v32 = vld [vmem:[#allocation4 + $0xd84] ss:$16 sps:$4 sm:$0xff]  }
 0x4c2   :  { %6011 = vmatprep.subr.bf16.mxu0 %v10822_v37  ;;  %6097 = vmatprep.subr.bf16.mxu1 %v10825_v34  ;;  %v10897_v37 = vld [vmem:[#allocation4 + $0xd8c] ss:$16 sps:$4 sm:$0xff]   ;;  %v10892_v34 = vld [vmem:[#allocation4 + $0xd80] ss:$16 sps:$4 sm:$0xff]  }
 0x4c4   :  { %5247 = vmatmul.mubr.bf16.vlgmr.msra.gmra.mrb[12].mxu0 %v4513_v42  ;;  %5333 = vmatmul.mubr.bf16.vlgmr.msra.gmra.mrb[12].mxu1 %v4513_v42  ;;  %v10903_v42 = vld [vmem:[#allocation4 + $0xdac] ss:$16 sps:$4 sm:$0xff]  }
 0x4c5   :  { %6012 = vmatpush1.bf16.msra.mxu0 %v10820_v48  ;;  %6098 = vmatpush1.bf16.msra.mxu1 %v10823_v41  ;;  %v10895_v48 = vld [vmem:[#allocation4 + $0xd88] ss:$16 sps:$4 sm:$0xff]   ;;  %v10900_v41 = vld [vmem:[#allocation4 + $0xda4] ss:$16 sps:$4 sm:$0xff]  }
 0x4c6   :  { %6013 = vmatprep.subr.bf16.mxu0 %v10828_v28  ;;  %6099 = vmatprep.subr.bf16.mxu1 %v10831_v47  ;;  %v10898_v28 = vld [vmem:[#allocation4 + $0xda0] ss:$16 sps:$4 sm:$0xff]   ;;  %v10901_v47 = vld [vmem:[#allocation4 + $0xda8] ss:$16 sps:$4 sm:$0xff]  }
 0x4c9   :  { %6014 = vmatpush1.bf16.msra.mxu0 %v10826_v35  ;;  %6100 = vmatpush1.bf16.msra.mxu1 %v10829_v20  ;;  %v10906_v35 = vld [vmem:[#allocation4 + $0xdc4] ss:$16 sps:$4 sm:$0xff]   ;;  %v10909_v20 = vld [vmem:[#allocation4 + $0xdcc] ss:$16 sps:$4 sm:$0xff]  }
 0x4ca   :  { %6015 = vmatprep.subr.bf16.mxu0 %v10834_v31  ;;  %6101 = vmatprep.subr.bf16.mxu1 %v10837_v59  ;;  %v10904_v31 = vld [vmem:[#allocation4 + $0xdc0] ss:$16 sps:$4 sm:$0xff]   ;;  %v10907_v59 = vld [vmem:[#allocation4 + $0xdc8] ss:$16 sps:$4 sm:$0xff]  }
 0x4cd   :  { %6016 = vmatpush1.bf16.msra.mxu0 %v10832_v36  ;;  %6102 = vmatpush1.bf16.msra.mxu1 %v10835_v46  ;;  %v10912_v36 = vld [vmem:[#allocation4 + $0xde4] ss:$16 sps:$4 sm:$0xff]   ;;  %v10915_v46 = vld [vmem:[#allocation4 + $0xdec] ss:$16 sps:$4 sm:$0xff]  }
 0x4ce   :  { %6017 = vmatprep.subr.bf16.mxu0 %v10840_v53  ;;  %6103 = vmatprep.subr.bf16.mxu1 %v10843_v39  ;;  %v10910_v53 = vld [vmem:[#allocation4 + $0xde0] ss:$16 sps:$4 sm:$0xff]   ;;  %v10913_v39 = vld [vmem:[#allocation4 + $0xde8] ss:$16 sps:$4 sm:$0xff]  }
 0x4d1   :  { %6018 = vmatpush1.bf16.msra.mxu0 %v10838_v40  ;;  %6104 = vmatpush1.bf16.msra.mxu1 %v10841_v43  ;;  %v10918_v40 = vld [vmem:[#allocation4 + $0xe04] ss:$16 sps:$4 sm:$0xff]   ;;  %v10921_v43 = vld [vmem:[#allocation4 + $0xe0c] ss:$16 sps:$4 sm:$0xff]  }
 0x4d2   :  { %6019 = vmatprep.subr.bf16.mxu0 %v10846_v51  ;;  %6105 = vmatprep.subr.bf16.mxu1 %v10849_v52  ;;  %v4517_v51 = vsub.s32 3, %v11663_v45 }
 0x4d4   :  { %v4518_v52 = vrot.slane %v11746_v38, %v4517_v51 }
 0x4d5   :  { %6020 = vmatpush1.bf16.msra.mxu0 %v10844_v54  ;;  %6106 = vmatpush1.bf16.msra.mxu1 %v10847_v55  ;;  %v4526_v54 = vrot.slane %v11788_v21, %v4517_v51  ;;  %v4522_v55 = vrot.slane %v11742_v49, %v4517_v51 }
 0x4d6   :  { %6021 = vmatprep.subr.bf16.mxu0 %v10852_v58  ;;  %6107 = vmatprep.subr.bf16.mxu1 %v10855_v62  ;;  %v4530_v58 = vrot.slane %v11752_v50, %v4517_v51  ;;  %v10949_v51 = vld [vmem:[#allocation4 + $0xea8] ss:$16 sps:$4 sm:$0xff]  }
 0x4d9   :  { %6022 = vmatpush1.bf16.msra.mxu0 %v10850_v63  ;;  %6108 = vmatpush1.bf16.msra.mxu1 %v10853_v6 }
 0x4da   :  { %6023 = vmatprep.subr.bf16.mxu0 %v10858_v7  ;;  %6109 = vmatprep.subr.bf16.mxu1 %v10861_v10 }
 0x4dd   :  { %6024 = vmatpush1.bf16.msra.mxu0 %v10856_v11  ;;  %6110 = vmatpush1.bf16.msra.mxu1 %v10859_v61 }
 0x4de   :  { %6025 = vmatprep.subr.bf16.mxu0 %v10864_v3  ;;  %6111 = vmatprep.subr.bf16.mxu1 %v10867_v18 }
 0x4e1   :  { %6026 = vmatpush1.bf16.msra.mxu0 %v10862_v0  ;;  %6112 = vmatpush1.bf16.msra.mxu1 %v10865_v60 }
 0x4e2   :  { %6027 = vmatprep.subr.bf16.mxu0 %v10870_v4  ;;  %6113 = vmatprep.subr.bf16.mxu1 %v10873_v1 }
 0x4e5   :  { %6028 = vmatpush1.bf16.msra.mxu0 %v10868_v5  ;;  %6114 = vmatpush1.bf16.msra.mxu1 %v10871_v8 }
 0x4e6   :  { %6029 = vmatprep.subr.bf16.mxu0 %v10876_v2  ;;  %6115 = vmatprep.subr.bf16.mxu1 %v10879_v9 }
 0x4e9   :  { %6030 = vmatpush1.bf16.msra.mxu0 %v10874_v13  ;;  %6116 = vmatpush1.bf16.msra.mxu1 %v10877_v19 }
 0x4ea   :  { %6031 = vmatprep.subr.bf16.mxu0 %v10882_v22  ;;  %6117 = vmatprep.subr.bf16.mxu1 %v10885_v23 }
 0x4ed   :  { %6032 = vmatpush1.bf16.msra.mxu0 %v10880_v24  ;;  %6118 = vmatpush1.bf16.msra.mxu1 %v10883_v25 }
 0x4ee   :  { %6033 = vmatprep.subr.bf16.mxu0 %v10888_v26  ;;  %6119 = vmatprep.subr.bf16.mxu1 %v10891_v27  ;;  %v10916_v27 = vld [vmem:[#allocation4 + $0xe00] ss:$16 sps:$4 sm:$0xff]  }
 0x4f1   :  { %6034 = vmatpush1.bf16.msra.mxu0 %v10886_v29  ;;  %6120 = vmatpush1.bf16.msra.mxu1 %v10889_v30  ;;  %v10919_v29 = vld [vmem:[#allocation4 + $0xe08] ss:$16 sps:$4 sm:$0xff]   ;;  %v10924_v30 = vld [vmem:[#allocation4 + $0xe24] ss:$16 sps:$4 sm:$0xff]  }
 0x4f2   :  { %6035 = vmatprep.subr.bf16.mxu0 %v10894_v32  ;;  %6121 = vmatprep.subr.bf16.mxu1 %v10897_v37  ;;  %v10927_v32 = vld [vmem:[#allocation4 + $0xe2c] ss:$16 sps:$4 sm:$0xff]   ;;  %v10922_v37 = vld [vmem:[#allocation4 + $0xe20] ss:$16 sps:$4 sm:$0xff]  }
 0x4f5   :  { %6036 = vmatpush1.bf16.msra.mxu0 %v10892_v34  ;;  %6122 = vmatpush1.bf16.msra.mxu1 %v10895_v48  ;;  %v10925_v34 = vld [vmem:[#allocation4 + $0xe28] ss:$16 sps:$4 sm:$0xff]   ;;  %v10930_v48 = vld [vmem:[#allocation4 + $0xe44] ss:$16 sps:$4 sm:$0xff]  }
 0x4f6   :  { %6037 = vmatprep.subr.bf16.mxu0 %v10900_v41  ;;  %6123 = vmatprep.subr.bf16.mxu1 %v10903_v42  ;;  %v10933_v41 = vld [vmem:[#allocation4 + $0xe4c] ss:$16 sps:$4 sm:$0xff]   ;;  %v10928_v42 = vld [vmem:[#allocation4 + $0xe40] ss:$16 sps:$4 sm:$0xff]  }
 0x4f9   :  { %6038 = vmatpush1.bf16.msra.mxu0 %v10898_v28  ;;  %6124 = vmatpush1.bf16.msra.mxu1 %v10901_v47  ;;  %v10931_v28 = vld [vmem:[#allocation4 + $0xe48] ss:$16 sps:$4 sm:$0xff]   ;;  %v10936_v47 = vld [vmem:[#allocation4 + $0xe64] ss:$16 sps:$4 sm:$0xff]  }
 0x4fa   :  { %6039 = vmatprep.subr.bf16.mxu0 %v10906_v35  ;;  %6125 = vmatprep.subr.bf16.mxu1 %v10909_v20  ;;  %v10939_v35 = vld [vmem:[#allocation4 + $0xe6c] ss:$16 sps:$4 sm:$0xff]   ;;  %v10934_v20 = vld [vmem:[#allocation4 + $0xe60] ss:$16 sps:$4 sm:$0xff]  }
 0x4fd   :  { %6040 = vmatpush1.bf16.msra.mxu0 %v10904_v31  ;;  %6126 = vmatpush1.bf16.msra.mxu1 %v10907_v59  ;;  %v10937_v31 = vld [vmem:[#allocation4 + $0xe68] ss:$16 sps:$4 sm:$0xff]   ;;  %v10942_v59 = vld [vmem:[#allocation4 + $0xe84] ss:$16 sps:$4 sm:$0xff]  }
 0x4fe   :  { %6041 = vmatprep.subr.bf16.mxu0 %v10912_v36  ;;  %6127 = vmatprep.subr.bf16.mxu1 %v10915_v46  ;;  %v10945_v36 = vld [vmem:[#allocation4 + $0xe8c] ss:$16 sps:$4 sm:$0xff]   ;;  %v10940_v46 = vld [vmem:[#allocation4 + $0xe80] ss:$16 sps:$4 sm:$0xff]  }
 0x501   :  { %6042 = vmatpush1.bf16.msra.mxu0 %v10910_v53  ;;  %6128 = vmatpush1.bf16.msra.mxu1 %v10913_v39  ;;  %v10943_v53 = vld [vmem:[#allocation4 + $0xe88] ss:$16 sps:$4 sm:$0xff]   ;;  %v10948_v39 = vld [vmem:[#allocation4 + $0xea4] ss:$16 sps:$4 sm:$0xff]  }
 0x502   :  { %6054 = vmatprep.subr.bf16.mxu0 %v10918_v40  ;;  %6140 = vmatprep.subr.bf16.mxu1 %v10921_v43  ;;  %v10951_v40 = vld [vmem:[#allocation4 + $0xeac] ss:$16 sps:$4 sm:$0xff]   ;;  %v10946_v43 = vld [vmem:[#allocation4 + $0xea0] ss:$16 sps:$4 sm:$0xff]  }
 0x597   :  { %v5248_v62 = vpop.f32.mrb[12].mxu0  ;;  %v5334_v63 = vpop.f32.mrb[12].mxu1 }
 0x598   :  { %v9678_v6 = vadd.f32 %v5248_v62, %v4518_v52  ;;  %v9682_v7 = vadd.f32 %v5334_v63, %v4526_v54  ;;  %v5250_v10 = vpop.f32.mrb[13].mxu0  ;;  %v5336_v11 = vpop.f32.mrb[13].mxu1  ;;  %v10960_v62 = vld [vmem:[#allocation4 + $0xee4] ss:$16 sps:$4 sm:$0xff]   ;;  %v10963_v63 = vld [vmem:[#allocation4 + $0xeec] ss:$16 sps:$4 sm:$0xff]  }
 0x599   :  { %v9679_v61 = vadd.f32 %v5250_v10, %v4522_v55  ;;  %v9683_v3 = vadd.f32 %v5336_v11, %v4530_v58  ;;  %v5252_v18 = vpop.f32.mrb[14].mxu0  ;;  %v5338_v0 = vpop.f32.mrb[14].mxu1  ;;  %v10966_v10 = vld [vmem:[#allocation4 + $0xf04] ss:$16 sps:$4 sm:$0xff]   ;;  %v10969_v11 = vld [vmem:[#allocation4 + $0xf0c] ss:$16 sps:$4 sm:$0xff]  }
 0x59a   :  { %v9680_v60 = vadd.f32 %v5252_v18, %v4518_v52  ;;  %v9684_v4 = vadd.f32 %v5338_v0, %v4526_v54  ;;  %v5254_v1 = vpop.f32.mrb[15].mxu0  ;;  %v5340_v38 = vpop.f32.mrb[15].mxu1  ;;  %v5343_v8 = vmax.f32 %v9678_v6, 0.0  ;;  %v5345_v49 = vmax.f32 %v9682_v7, 0.0  ;;  %v10954_v52 = vld [vmem:[#allocation4 + $0xec4] ss:$16 sps:$4 sm:$0xff]  }
 0x59b   :  { %v9681_v5 = vadd.f32 %v5254_v1, %v4522_v55  ;;  %v9685_v21 = vadd.f32 %v5340_v38, %v4530_v58  ;;  %v5344_v9 = vmax.f32 %v9679_v61, 0.0  ;;  %v5346_v13 = vmax.f32 %v9683_v3, 0.0  ;;  %v10957_v54 = vld [vmem:[#allocation4 + $0xecc] ss:$16 sps:$4 sm:$0xff]   ;;  %v10952_v55 = vld [vmem:[#allocation4 + $0xec0] ss:$16 sps:$4 sm:$0xff]  }
 0x59c   :  { %v5347_v2 = vmax.f32 %v9680_v60, 0.0  ;;  %v5349_v50 = vmax.f32 %v9684_v4, 0.0  ;;  %v10955_v58 = vld [vmem:[#allocation4 + $0xec8] ss:$16 sps:$4 sm:$0xff]   ;;  %v10958_v6 = vld [vmem:[#allocation4 + $0xee0] ss:$16 sps:$4 sm:$0xff]  }
 0x59d   :  { %v5348_v19 = vmax.f32 %v9681_v5, 0.0  ;;  %v5350_v22 = vmax.f32 %v9685_v21, 0.0  ;;  %v10961_v7 = vld [vmem:[#allocation4 + $0xee8] ss:$16 sps:$4 sm:$0xff]   ;;  %v10964_v61 = vld [vmem:[#allocation4 + $0xf00] ss:$16 sps:$4 sm:$0xff]  }
 0x59e   :  { %v5351_v23 = vpack.c.bf16 %v5347_v2, %v5343_v8  ;;  %v11809_v24 = vpack.c.bf16 %v5349_v50, %v5345_v49  ;;  %v10967_v3 = vld [vmem:[#allocation4 + $0xf08] ss:$16 sps:$4 sm:$0xff]   ;;  %v10972_v18 = vld [vmem:[#allocation4 + $0xf24] ss:$16 sps:$4 sm:$0xff]   ;;  %v10975_v0 = vld [vmem:[#allocation4 + $0xf2c] ss:$16 sps:$4 sm:$0xff]  }
 0x59f   :  { %v5352_v25 = vpack.c.bf16 %v5348_v19, %v5344_v9  ;;  %v5354_v26 = vpack.c.bf16 %v5350_v22, %v5346_v13  ;;  %v10970_v60 = vld [vmem:[#allocation4 + $0xf20] ss:$16 sps:$4 sm:$0xff]   ;;  %v10973_v4 = vld [vmem:[#allocation4 + $0xf28] ss:$16 sps:$4 sm:$0xff]   ;;  %v10978_v1 = vld [vmem:[#allocation4 + $0xf44] ss:$16 sps:$4 sm:$0xff]  }
 0x5a0   :  { %v10981_v38 = vld [vmem:[#allocation4 + $0xf4c] ss:$16 sps:$4 sm:$0xff]   ;;  %v10976_v5 = vld [vmem:[#allocation4 + $0xf40] ss:$16 sps:$4 sm:$0xff]   ;;  %v10979_v21 = vld [vmem:[#allocation4 + $0xf48] ss:$16 sps:$4 sm:$0xff]  }
 0x5a1   :  { %6043 = vmatprep.mubr.bf16.mxu0 %v5352_v25  ;;  %6129 = vmatprep.mubr.bf16.mxu1 %v5352_v25  ;;  %v10984_v8 = vld [vmem:[#allocation4 + $0xf64] ss:$16 sps:$4 sm:$0xff]   ;;  %v10987_v49 = vld [vmem:[#allocation4 + $0xf6c] ss:$16 sps:$4 sm:$0xff]   ;;  %v10982_v2 = vld [vmem:[#allocation4 + $0xf60] ss:$16 sps:$4 sm:$0xff]  }
 0x5a2   :  { %6044 = vmatmul.mubr.bf16.vlgmr.msra.gmra.mrb[16].mxu0 %v5351_v23  ;;  %6130 = vmatmul.mubr.bf16.vlgmr.msra.gmra.mrb[16].mxu1 %v5351_v23  ;;  %v10985_v50 = vld [vmem:[#allocation4 + $0xf68] ss:$16 sps:$4 sm:$0xff]   ;;  %v10990_v9 = vld [vmem:[#allocation4 + $0xf84] ss:$16 sps:$4 sm:$0xff]   ;;  %v10993_v13 = vld [vmem:[#allocation4 + $0xf8c] ss:$16 sps:$4 sm:$0xff]  }
 0x5a3   :  { %6055 = vmatpush1.bf16.msra.mxu0 %v10916_v27  ;;  %6141 = vmatpush1.bf16.msra.mxu1 %v10919_v29  ;;  %v10988_v19 = vld [vmem:[#allocation4 + $0xf80] ss:$16 sps:$4 sm:$0xff]   ;;  %v10991_v22 = vld [vmem:[#allocation4 + $0xf88] ss:$16 sps:$4 sm:$0xff]   ;;  %v10996_v23 = vld [vmem:[#allocation4 + $0xfa4] ss:$16 sps:$4 sm:$0xff]  }
 0x5a4   :  { %6086 = vmatprep.mubr.bf16.mxu0 %v5354_v26  ;;  %6172 = vmatprep.mubr.bf16.mxu1 %v5354_v26  ;;  %v10999_v25 = vld [vmem:[#allocation4 + $0xfac] ss:$16 sps:$4 sm:$0xff]   ;;  %v10994_v26 = vld [vmem:[#allocation4 + $0xfa0] ss:$16 sps:$4 sm:$0xff]   ;;  %v10997_v27 = vld [vmem:[#allocation4 + $0xfa8] ss:$16 sps:$4 sm:$0xff]  }
 0x5a5   :  { %6056 = vmatprep.subr.bf16.mxu0 %v10924_v30  ;;  %6142 = vmatprep.subr.bf16.mxu1 %v10927_v32  ;;  %v11002_v29 = vld [vmem:[#allocation4 + $0xfc4] ss:$16 sps:$4 sm:$0xff]   ;;  %v11005_v30 = vld [vmem:[#allocation4 + $0xfcc] ss:$16 sps:$4 sm:$0xff]   ;;  %v11000_v32 = vld [vmem:[#allocation4 + $0xfc0] ss:$16 sps:$4 sm:$0xff]  }
 0x5a7   :  { %6057 = vmatpush1.bf16.msra.mxu0 %v10922_v37  ;;  %6143 = vmatpush1.bf16.msra.mxu1 %v10925_v34  ;;  %v11003_v37 = vld [vmem:[#allocation4 + $0xfc8] ss:$16 sps:$4 sm:$0xff]   ;;  %v11008_v34 = vld [vmem:[#allocation4 + $0xfe4] ss:$16 sps:$4 sm:$0xff]  }
 0x5a8   :  { %6058 = vmatprep.subr.bf16.mxu0 %v10930_v48  ;;  %6144 = vmatprep.subr.bf16.mxu1 %v10933_v41  ;;  %v11011_v48 = vld [vmem:[#allocation4 + $0xfec] ss:$16 sps:$4 sm:$0xff]   ;;  %v11006_v41 = vld [vmem:[#allocation4 + $0xfe0] ss:$16 sps:$4 sm:$0xff]  }
 0x5ab   :  { %6059 = vmatpush1.bf16.msra.mxu0 %v10928_v42  ;;  %6145 = vmatpush1.bf16.msra.mxu1 %v10931_v28  ;;  %v11009_v42 = vld [vmem:[#allocation4 + $0xfe8] ss:$16 sps:$4 sm:$0xff]   ;;  %v11014_v28 = vld [vmem:[#allocation4 + $0x1004] ss:$16 sps:$4 sm:$0xff]  }
 0x5ac   :  { %6060 = vmatprep.subr.bf16.mxu0 %v10936_v47  ;;  %6146 = vmatprep.subr.bf16.mxu1 %v10939_v35  ;;  %v11017_v47 = vld [vmem:[#allocation4 + $0x100c] ss:$16 sps:$4 sm:$0xff]   ;;  %v11012_v35 = vld [vmem:[#allocation4 + $0x1000] ss:$16 sps:$4 sm:$0xff]  }
 0x5af   :  { %6061 = vmatpush1.bf16.msra.mxu0 %v10934_v20  ;;  %6147 = vmatpush1.bf16.msra.mxu1 %v10937_v31  ;;  %v11015_v20 = vld [vmem:[#allocation4 + $0x1008] ss:$16 sps:$4 sm:$0xff]   ;;  %v11020_v31 = vld [vmem:[#allocation4 + $0x1024] ss:$16 sps:$4 sm:$0xff]  }
 0x5b0   :  { %6062 = vmatprep.subr.bf16.mxu0 %v10942_v59  ;;  %6148 = vmatprep.subr.bf16.mxu1 %v10945_v36  ;;  %v11023_v59 = vld [vmem:[#allocation4 + $0x102c] ss:$16 sps:$4 sm:$0xff]   ;;  %v11018_v36 = vld [vmem:[#allocation4 + $0x1020] ss:$16 sps:$4 sm:$0xff]  }
 0x5b3   :  { %6063 = vmatpush1.bf16.msra.mxu0 %v10940_v46  ;;  %6149 = vmatpush1.bf16.msra.mxu1 %v10943_v53  ;;  %v11021_v46 = vld [vmem:[#allocation4 + $0x1028] ss:$16 sps:$4 sm:$0xff]   ;;  %v11026_v53 = vld [vmem:[#allocation4 + $0x1044] ss:$16 sps:$4 sm:$0xff]  }
 0x5b4   :  { %6064 = vmatprep.subr.bf16.mxu0 %v10948_v39  ;;  %6150 = vmatprep.subr.bf16.mxu1 %v10951_v40  ;;  %v11029_v39 = vld [vmem:[#allocation4 + $0x104c] ss:$16 sps:$4 sm:$0xff]   ;;  %v11024_v40 = vld [vmem:[#allocation4 + $0x1040] ss:$16 sps:$4 sm:$0xff]  }
 0x5b7   :  { %6065 = vmatpush1.bf16.msra.mxu0 %v10946_v43  ;;  %6151 = vmatpush1.bf16.msra.mxu1 %v10949_v51  ;;  %v11027_v43 = vld [vmem:[#allocation4 + $0x1048] ss:$16 sps:$4 sm:$0xff]   ;;  %v11032_v51 = vld [vmem:[#allocation4 + $0x1064] ss:$16 sps:$4 sm:$0xff]  }
 0x5b8   :  { %6066 = vmatprep.subr.bf16.mxu0 %v10954_v52  ;;  %6152 = vmatprep.subr.bf16.mxu1 %v10957_v54  ;;  %v11035_v52 = vld [vmem:[#allocation4 + $0x106c] ss:$16 sps:$4 sm:$0xff]   ;;  %v11030_v54 = vld [vmem:[#allocation4 + $0x1060] ss:$16 sps:$4 sm:$0xff]  }
 0x5bb   :  { %6067 = vmatpush1.bf16.msra.mxu0 %v10952_v55  ;;  %6153 = vmatpush1.bf16.msra.mxu1 %v10955_v58  ;;  %v11038_v55 = vld [vmem:[#allocation4 + $0x1084] ss:$16 sps:$4 sm:$0xff]   ;;  %v11041_v58 = vld [vmem:[#allocation4 + $0x108c] ss:$16 sps:$4 sm:$0xff]  }
 0x5bc   :  { %6068 = vmatprep.subr.bf16.mxu0 %v10960_v62  ;;  %6154 = vmatprep.subr.bf16.mxu1 %v10963_v63  ;;  %v11036_v62 = vld [vmem:[#allocation4 + $0x1080] ss:$16 sps:$4 sm:$0xff]   ;;  %v11039_v63 = vld [vmem:[#allocation4 + $0x1088] ss:$16 sps:$4 sm:$0xff]  }
 0x5bf   :  { %6069 = vmatpush1.bf16.msra.mxu0 %v10958_v6  ;;  %6155 = vmatpush1.bf16.msra.mxu1 %v10961_v7  ;;  %v11044_v6 = vld [vmem:[#allocation4 + $0x10a4] ss:$16 sps:$4 sm:$0xff]   ;;  %v11047_v7 = vld [vmem:[#allocation4 + $0x10ac] ss:$16 sps:$4 sm:$0xff]  }
 0x5c0   :  { %6070 = vmatprep.subr.bf16.mxu0 %v10966_v10  ;;  %6156 = vmatprep.subr.bf16.mxu1 %v10969_v11  ;;  %v11042_v10 = vld [vmem:[#allocation4 + $0x10a0] ss:$16 sps:$4 sm:$0xff]   ;;  %v11045_v11 = vld [vmem:[#allocation4 + $0x10a8] ss:$16 sps:$4 sm:$0xff]  }
 0x5c3   :  { %6071 = vmatpush1.bf16.msra.mxu0 %v10964_v61  ;;  %6157 = vmatpush1.bf16.msra.mxu1 %v10967_v3  ;;  %v11050_v61 = vld [vmem:[#allocation4 + $0x10c4] ss:$16 sps:$4 sm:$0xff]   ;;  %v11053_v3 = vld [vmem:[#allocation4 + $0x10cc] ss:$16 sps:$4 sm:$0xff]  }
 0x5c4   :  { %6072 = vmatprep.subr.bf16.mxu0 %v10972_v18  ;;  %6158 = vmatprep.subr.bf16.mxu1 %v10975_v0  ;;  %v11048_v18 = vld [vmem:[#allocation4 + $0x10c0] ss:$16 sps:$4 sm:$0xff]   ;;  %v11051_v0 = vld [vmem:[#allocation4 + $0x10c8] ss:$16 sps:$4 sm:$0xff]  }
 0x5c7   :  { %6073 = vmatpush1.bf16.msra.mxu0 %v10970_v60  ;;  %6159 = vmatpush1.bf16.msra.mxu1 %v10973_v4  ;;  %v11056_v60 = vld [vmem:[#allocation4 + $0x10e4] ss:$16 sps:$4 sm:$0xff]   ;;  %v11059_v4 = vld [vmem:[#allocation4 + $0x10ec] ss:$16 sps:$4 sm:$0xff]  }
 0x5c8   :  { %6074 = vmatprep.subr.bf16.mxu0 %v10978_v1  ;;  %6160 = vmatprep.subr.bf16.mxu1 %v10981_v38  ;;  %v11054_v1 = vld [vmem:[#allocation4 + $0x10e0] ss:$16 sps:$4 sm:$0xff]   ;;  %v11057_v38 = vld [vmem:[#allocation4 + $0x10e8] ss:$16 sps:$4 sm:$0xff]  }
 0x5cb   :  { %6075 = vmatpush1.bf16.msra.mxu0 %v10976_v5  ;;  %6161 = vmatpush1.bf16.msra.mxu1 %v10979_v21  ;;  %v11062_v5 = vld [vmem:[#allocation4 + $0x1104] ss:$16 sps:$4 sm:$0xff]   ;;  %v11065_v21 = vld [vmem:[#allocation4 + $0x110c] ss:$16 sps:$4 sm:$0xff]  }
 0x5cc   :  { %6076 = vmatprep.subr.bf16.mxu0 %v10984_v8  ;;  %6162 = vmatprep.subr.bf16.mxu1 %v10987_v49  ;;  %v11060_v8 = vld [vmem:[#allocation4 + $0x1100] ss:$16 sps:$4 sm:$0xff]   ;;  %v11063_v49 = vld [vmem:[#allocation4 + $0x1108] ss:$16 sps:$4 sm:$0xff]  }
 0x5cf   :  { %6077 = vmatpush1.bf16.msra.mxu0 %v10982_v2  ;;  %6163 = vmatpush1.bf16.msra.mxu1 %v10985_v50  ;;  %v11068_v2 = vld [vmem:[#allocation4 + $0x1124] ss:$16 sps:$4 sm:$0xff]   ;;  %v11071_v50 = vld [vmem:[#allocation4 + $0x112c] ss:$16 sps:$4 sm:$0xff]  }
 0x5d0   :  { %6078 = vmatprep.subr.bf16.mxu0 %v10990_v9  ;;  %6164 = vmatprep.subr.bf16.mxu1 %v10993_v13  ;;  %v11066_v9 = vld [vmem:[#allocation4 + $0x1120] ss:$16 sps:$4 sm:$0xff]   ;;  %v11069_v13 = vld [vmem:[#allocation4 + $0x1128] ss:$16 sps:$4 sm:$0xff]  }
 0x5d3   :  { %6079 = vmatpush1.bf16.msra.mxu0 %v10988_v19  ;;  %6165 = vmatpush1.bf16.msra.mxu1 %v10991_v22  ;;  %v11074_v19 = vld [vmem:[#allocation4 + $0x1144] ss:$16 sps:$4 sm:$0xff]   ;;  %v11077_v22 = vld [vmem:[#allocation4 + $0x114c] ss:$16 sps:$4 sm:$0xff]  }
 0x5d4   :  { %6080 = vmatprep.subr.bf16.mxu0 %v10996_v23  ;;  %6166 = vmatprep.subr.bf16.mxu1 %v10999_v25  ;;  %v11072_v23 = vld [vmem:[#allocation4 + $0x1140] ss:$16 sps:$4 sm:$0xff]   ;;  %v11075_v25 = vld [vmem:[#allocation4 + $0x1148] ss:$16 sps:$4 sm:$0xff]  }
 0x5d7   :  { %6081 = vmatpush1.bf16.msra.mxu0 %v10994_v26  ;;  %6167 = vmatpush1.bf16.msra.mxu1 %v10997_v27  ;;  %v11080_v26 = vld [vmem:[#allocation4 + $0x1164] ss:$16 sps:$4 sm:$0xff]   ;;  %v11083_v27 = vld [vmem:[#allocation4 + $0x116c] ss:$16 sps:$4 sm:$0xff]  }
 0x5d8   :  { %6082 = vmatprep.subr.bf16.mxu0 %v11002_v29  ;;  %6168 = vmatprep.subr.bf16.mxu1 %v11005_v30  ;;  %v11078_v29 = vld [vmem:[#allocation4 + $0x1160] ss:$16 sps:$4 sm:$0xff]   ;;  %v11081_v30 = vld [vmem:[#allocation4 + $0x1168] ss:$16 sps:$4 sm:$0xff]  }
 0x5db   :  { %6083 = vmatpush1.bf16.msra.mxu0 %v11000_v32  ;;  %6169 = vmatpush1.bf16.msra.mxu1 %v11003_v37  ;;  %v11086_v32 = vld [vmem:[#allocation4 + $0x1184] ss:$16 sps:$4 sm:$0xff]   ;;  %v11089_v37 = vld [vmem:[#allocation4 + $0x118c] ss:$16 sps:$4 sm:$0xff]  }
 0x5dc   :  { %6084 = vmatprep.subr.bf16.mxu0 %v11008_v34  ;;  %6170 = vmatprep.subr.bf16.mxu1 %v11011_v48  ;;  %v11084_v34 = vld [vmem:[#allocation4 + $0x1180] ss:$16 sps:$4 sm:$0xff]   ;;  %v11087_v48 = vld [vmem:[#allocation4 + $0x1188] ss:$16 sps:$4 sm:$0xff]  }
 0x5df   :  { %6085 = vmatpush1.bf16.msra.mxu0 %v11006_v41  ;;  %6171 = vmatpush1.bf16.msra.mxu1 %v11009_v42  ;;  %v11092_v41 = vld [vmem:[#allocation4 + $0x11a4] ss:$16 sps:$4 sm:$0xff]   ;;  %v11095_v42 = vld [vmem:[#allocation4 + $0x11ac] ss:$16 sps:$4 sm:$0xff]  }
 0x5e0   :  { %7109 = vmatprep.subr.bf16.mxu0 %v11014_v28  ;;  %7195 = vmatprep.subr.bf16.mxu1 %v11017_v47  ;;  %v11090_v28 = vld [vmem:[#allocation4 + $0x11a0] ss:$16 sps:$4 sm:$0xff]   ;;  %v11093_v47 = vld [vmem:[#allocation4 + $0x11a8] ss:$16 sps:$4 sm:$0xff]  }
 0x5e2   :  { %6087 = vmatmul.mubr.bf16.vlgmr.msra.gmra.mrb[16].mxu0 %v11809_v24  ;;  %6173 = vmatmul.mubr.bf16.vlgmr.msra.gmra.mrb[16].mxu1 %v11809_v24  ;;  %v11033_v24 = vld [vmem:[#allocation4 + $0x1068] ss:$16 sps:$4 sm:$0xff]  }
 0x5e3   :  { %7110 = vmatpush1.bf16.msra.mxu0 %v11012_v35  ;;  %7196 = vmatpush1.bf16.msra.mxu1 %v11015_v20  ;;  %v11098_v35 = vld [vmem:[#allocation4 + $0x11c4] ss:$16 sps:$4 sm:$0xff]   ;;  %v11101_v20 = vld [vmem:[#allocation4 + $0x11cc] ss:$16 sps:$4 sm:$0xff]  }
 0x5e4   :  { %7111 = vmatprep.subr.bf16.mxu0 %v11020_v31  ;;  %7197 = vmatprep.subr.bf16.mxu1 %v11023_v59  ;;  %v11096_v31 = vld [vmem:[#allocation4 + $0x11c0] ss:$16 sps:$4 sm:$0xff]   ;;  %v11099_v59 = vld [vmem:[#allocation4 + $0x11c8] ss:$16 sps:$4 sm:$0xff]  }
 0x5e7   :  { %7112 = vmatpush1.bf16.msra.mxu0 %v11018_v36  ;;  %7198 = vmatpush1.bf16.msra.mxu1 %v11021_v46  ;;  %v11104_v36 = vld [vmem:[#allocation4 + $0x11e4] ss:$16 sps:$4 sm:$0xff]   ;;  %v11107_v46 = vld [vmem:[#allocation4 + $0x11ec] ss:$16 sps:$4 sm:$0xff]  }
 0x5e8   :  { %7113 = vmatprep.subr.bf16.mxu0 %v11026_v53  ;;  %7199 = vmatprep.subr.bf16.mxu1 %v11029_v39  ;;  %v11102_v53 = vld [vmem:[#allocation4 + $0x11e0] ss:$16 sps:$4 sm:$0xff]   ;;  %v11105_v39 = vld [vmem:[#allocation4 + $0x11e8] ss:$16 sps:$4 sm:$0xff]  }
 0x5eb   :  { %7114 = vmatpush1.bf16.msra.mxu0 %v11024_v40  ;;  %7200 = vmatpush1.bf16.msra.mxu1 %v11027_v43  ;;  %v11110_v40 = vld [vmem:[#allocation4 + $0x1204] ss:$16 sps:$4 sm:$0xff]   ;;  %v11113_v43 = vld [vmem:[#allocation4 + $0x120c] ss:$16 sps:$4 sm:$0xff]  }
 0x5ec   :  { %7115 = vmatprep.subr.bf16.mxu0 %v11032_v51  ;;  %7201 = vmatprep.subr.bf16.mxu1 %v11035_v52  ;;  %v11814_v51 = vsub.s32 4, %v11663_v45  ;;  %v11816_v52 = vld [vmem:[#allocation7 + $0x8] sm:$0xff] }
 0x5ef   :  { %7116 = vmatpush1.bf16.msra.mxu0 %v11030_v54  ;;  %7202 = vmatpush1.bf16.msra.mxu1 %v11033_v24  ;;  %v5362_v54 = vrot.slane %v11816_v52, %v11814_v51  ;;  %v11820_v24 = vld [vmem:[#allocation7] sm:$0xff] }
 0x5f0   :  { %7117 = vmatprep.subr.bf16.mxu0 %v11038_v55  ;;  %7203 = vmatprep.subr.bf16.mxu1 %v11041_v58  ;;  %v5358_v55 = vrot.slane %v11820_v24, %v11814_v51 }
 0x5f3   :  { %7118 = vmatpush1.bf16.msra.mxu0 %v11036_v62  ;;  %7204 = vmatpush1.bf16.msra.mxu1 %v11039_v63 }
 0x5f4   :  { %7119 = vmatprep.subr.bf16.mxu0 %v11044_v6  ;;  %7205 = vmatprep.subr.bf16.mxu1 %v11047_v7  ;;  %v11826_v6 = vld [vmem:[#allocation7 + $0x18] sm:$0xff] }
 0x5f5   :  { %v5370_v7 = vrot.slane %v11826_v6, %v11814_v51 }
 0x5f7   :  { %7120 = vmatpush1.bf16.msra.mxu0 %v11042_v10  ;;  %7206 = vmatpush1.bf16.msra.mxu1 %v11045_v11 }
 0x5f8   :  { %7121 = vmatprep.subr.bf16.mxu0 %v11050_v61  ;;  %7207 = vmatprep.subr.bf16.mxu1 %v11053_v3 }
 0x5fb   :  { %7122 = vmatpush1.bf16.msra.mxu0 %v11048_v18  ;;  %7208 = vmatpush1.bf16.msra.mxu1 %v11051_v0 }
 0x5fc   :  { %7123 = vmatprep.subr.bf16.mxu0 %v11056_v60  ;;  %7209 = vmatprep.subr.bf16.mxu1 %v11059_v4 }
 0x5ff   :  { %7124 = vmatpush1.bf16.msra.mxu0 %v11054_v1  ;;  %7210 = vmatpush1.bf16.msra.mxu1 %v11057_v38 }
 0x600   :  { %7125 = vmatprep.subr.bf16.mxu0 %v11062_v5  ;;  %7211 = vmatprep.subr.bf16.mxu1 %v11065_v21 }
 0x603   :  { %7126 = vmatpush1.bf16.msra.mxu0 %v11060_v8  ;;  %7212 = vmatpush1.bf16.msra.mxu1 %v11063_v49 }
 0x604   :  { %7127 = vmatprep.subr.bf16.mxu0 %v11068_v2  ;;  %7213 = vmatprep.subr.bf16.mxu1 %v11071_v50 }
 0x607   :  { %7128 = vmatpush1.bf16.msra.mxu0 %v11066_v9  ;;  %7214 = vmatpush1.bf16.msra.mxu1 %v11069_v13  ;;  %v11108_v13 = vld [vmem:[#allocation4 + $0x1200] ss:$16 sps:$4 sm:$0xff]  }
 0x608   :  { %7129 = vmatprep.subr.bf16.mxu0 %v11074_v19  ;;  %7215 = vmatprep.subr.bf16.mxu1 %v11077_v22  ;;  %v11111_v19 = vld [vmem:[#allocation4 + $0x1208] ss:$16 sps:$4 sm:$0xff]   ;;  %v11119_v22 = vld [vmem:[#allocation4 + $0x122c] ss:$16 sps:$4 sm:$0xff]  }
 0x60b   :  { %7130 = vmatpush1.bf16.msra.mxu0 %v11072_v23  ;;  %7216 = vmatpush1.bf16.msra.mxu1 %v11075_v25  ;;  %v11117_v23 = vld [vmem:[#allocation4 + $0x1228] ss:$16 sps:$4 sm:$0xff]   ;;  %v11125_v25 = vld [vmem:[#allocation4 + $0x124c] ss:$16 sps:$4 sm:$0xff]  }
 0x60c   :  { %7131 = vmatprep.subr.bf16.mxu0 %v11080_v26  ;;  %7217 = vmatprep.subr.bf16.mxu1 %v11083_v27  ;;  %v11120_v26 = vld [vmem:[#allocation4 + $0x1240] ss:$16 sps:$4 sm:$0xff]   ;;  %v11123_v27 = vld [vmem:[#allocation4 + $0x1248] ss:$16 sps:$4 sm:$0xff]  }
 0x60f   :  { %7132 = vmatpush1.bf16.msra.mxu0 %v11078_v29  ;;  %7218 = vmatpush1.bf16.msra.mxu1 %v11081_v30  ;;  %v11128_v29 = vld [vmem:[#allocation4 + $0x1264] ss:$16 sps:$4 sm:$0xff]   ;;  %v11131_v30 = vld [vmem:[#allocation4 + $0x126c] ss:$16 sps:$4 sm:$0xff]  }
 0x610   :  { %7133 = vmatprep.subr.bf16.mxu0 %v11086_v32  ;;  %7219 = vmatprep.subr.bf16.mxu1 %v11089_v37  ;;  %v11126_v32 = vld [vmem:[#allocation4 + $0x1260] ss:$16 sps:$4 sm:$0xff]   ;;  %v11129_v37 = vld [vmem:[#allocation4 + $0x1268] ss:$16 sps:$4 sm:$0xff]  }
 0x613   :  { %7134 = vmatpush1.bf16.msra.mxu0 %v11084_v34  ;;  %7220 = vmatpush1.bf16.msra.mxu1 %v11087_v48  ;;  %v11134_v34 = vld [vmem:[#allocation4 + $0x1284] ss:$16 sps:$4 sm:$0xff]   ;;  %v11137_v48 = vld [vmem:[#allocation4 + $0x128c] ss:$16 sps:$4 sm:$0xff]  }
 0x614   :  { %7135 = vmatprep.subr.bf16.mxu0 %v11092_v41  ;;  %7221 = vmatprep.subr.bf16.mxu1 %v11095_v42  ;;  %v11132_v41 = vld [vmem:[#allocation4 + $0x1280] ss:$16 sps:$4 sm:$0xff]   ;;  %v11135_v42 = vld [vmem:[#allocation4 + $0x1288] ss:$16 sps:$4 sm:$0xff]  }
 0x617   :  { %7136 = vmatpush1.bf16.msra.mxu0 %v11090_v28  ;;  %7222 = vmatpush1.bf16.msra.mxu1 %v11093_v47  ;;  %v11140_v28 = vld [vmem:[#allocation4 + $0x12a4] ss:$16 sps:$4 sm:$0xff]   ;;  %v11143_v47 = vld [vmem:[#allocation4 + $0x12ac] ss:$16 sps:$4 sm:$0xff]  }
 0x618   :  { %7137 = vmatprep.subr.bf16.mxu0 %v11098_v35  ;;  %7223 = vmatprep.subr.bf16.mxu1 %v11101_v20  ;;  %v11138_v35 = vld [vmem:[#allocation4 + $0x12a0] ss:$16 sps:$4 sm:$0xff]   ;;  %v11141_v20 = vld [vmem:[#allocation4 + $0x12a8] ss:$16 sps:$4 sm:$0xff]  }
 0x61b   :  { %7138 = vmatpush1.bf16.msra.mxu0 %v11096_v31  ;;  %7224 = vmatpush1.bf16.msra.mxu1 %v11099_v59  ;;  %v11146_v31 = vld [vmem:[#allocation4 + $0x12c4] ss:$16 sps:$4 sm:$0xff]   ;;  %v11149_v59 = vld [vmem:[#allocation4 + $0x12cc] ss:$16 sps:$4 sm:$0xff]  }
 0x61c   :  { %7139 = vmatprep.subr.bf16.mxu0 %v11104_v36  ;;  %7225 = vmatprep.subr.bf16.mxu1 %v11107_v46  ;;  %v11144_v36 = vld [vmem:[#allocation4 + $0x12c0] ss:$16 sps:$4 sm:$0xff]   ;;  %v11147_v46 = vld [vmem:[#allocation4 + $0x12c8] ss:$16 sps:$4 sm:$0xff]  }
 0x61f   :  { %7140 = vmatpush1.bf16.msra.mxu0 %v11102_v53  ;;  %7226 = vmatpush1.bf16.msra.mxu1 %v11105_v39  ;;  %v11152_v53 = vld [vmem:[#allocation4 + $0x12e4] ss:$16 sps:$4 sm:$0xff]   ;;  %v11155_v39 = vld [vmem:[#allocation4 + $0x12ec] ss:$16 sps:$4 sm:$0xff]  }
 0x620   :  { %7152 = vmatprep.subr.bf16.mxu0 %v11110_v40  ;;  %7238 = vmatprep.subr.bf16.mxu1 %v11113_v43  ;;  %v11150_v40 = vld [vmem:[#allocation4 + $0x12e0] ss:$16 sps:$4 sm:$0xff]   ;;  %v11153_v43 = vld [vmem:[#allocation4 + $0x12e8] ss:$16 sps:$4 sm:$0xff]  }
 0x6b5   :  { %v6088_v58 = vpop.f32.mrb[16].mxu0  ;;  %v11824_v62 = vpop.f32.mrb[16].mxu1 }
 0x6b6   :  { %v6090_v63 = vpop.f32.mrb[17].mxu0  ;;  %v6176_v10 = vpop.f32.mrb[17].mxu1  ;;  %v9686_v18 = vadd.f32 %v6088_v58, %v5358_v55  ;;  %v11156_v58 = vld [vmem:[#allocation4 + $0x1300] ss:$16 sps:$4 sm:$0xff]  }
 0x6b7   :  { %v9687_v11 = vadd.f32 %v6090_v63, %v5362_v54  ;;  %v6092_v61 = vpop.f32.mrb[18].mxu0  ;;  %v11830_v3 = vpop.f32.mrb[18].mxu1  ;;  %v9691_v5 = vadd.f32 %v6176_v10, %v5370_v7  ;;  %v11159_v63 = vld [vmem:[#allocation4 + $0x1308] ss:$16 sps:$4 sm:$0xff]   ;;  %v11167_v10 = vld [vmem:[#allocation4 + $0x132c] ss:$16 sps:$4 sm:$0xff]  }
 0x6b8   :  { %v9688_v0 = vadd.f32 %v6092_v61, %v5358_v55  ;;  %v6094_v60 = vpop.f32.mrb[19].mxu0  ;;  %v6180_v4 = vpop.f32.mrb[19].mxu1  ;;  %v11842_v2 = vadd.f32 %v9686_v18, %v11772_v16  ;;  %v11161_v55 = vld [vmem:[#allocation4 + $0x130c] ss:$16 sps:$4 sm:$0xff]   ;;  %v11165_v61 = vld [vmem:[#allocation4 + $0x1328] ss:$16 sps:$4 sm:$0xff]  }
 0x6b9   :  { %v9689_v1 = vadd.f32 %v6094_v60, %v5362_v54  ;;  %v9693_v38 = vadd.f32 %v6180_v4, %v5370_v7  ;;  %v11836_v8 = vadd.f32 %v9687_v11, %v11764_v14  ;;  %v11158_v54 = vld [vmem:[#allocation4 + $0x1304] ss:$16 sps:$4 sm:$0xff]   ;;  %v11162_v11 = vld [vmem:[#allocation4 + $0x1320] ss:$16 sps:$4 sm:$0xff]   ;;  %v11171_v4 = vld [vmem:[#allocation4 + $0x1348] ss:$16 sps:$4 sm:$0xff]  }
 0x6ba   :  { %v11833_v21 = vadd.f32 %v9688_v0, %v11760_v12  ;;  %v11850_v12 = vadd.f32 %v9691_v5, %v11782_v57  ;;  %v11122_v57 = vld [vmem:[#allocation4 + $0x1244] ss:$16 sps:$4 sm:$0xff]   ;;  %v11173_v0 = vld [vmem:[#allocation4 + $0x134c] ss:$16 sps:$4 sm:$0xff]   ;;  %v11168_v60 = vld [vmem:[#allocation4 + $0x1340] ss:$16 sps:$4 sm:$0xff]  }
 0x6bb   :  { %v11839_v49 = vadd.f32 %v9689_v1, %v11768_v15  ;;  %v11845_v50 = vadd.f32 %v9693_v38, %v11776_v17  ;;  %v11116_v15 = vld [vmem:[#allocation4 + $0x1224] ss:$16 sps:$4 sm:$0xff]   ;;  %v11114_v17 = vld [vmem:[#allocation4 + $0x1220] ss:$16 sps:$4 sm:$0xff]   ;;  %v11179_v38 = vld [vmem:[#allocation4 + $0x136c] ss:$16 sps:$4 sm:$0xff]  }
 0x6bc   :  { %v6449_v14 = vpack.c.bf16 %v11833_v21, %v11842_v2  ;;  %v11164_v7 = vld [vmem:[#allocation4 + $0x1324] ss:$16 sps:$4 sm:$0xff]   ;;  %v11174_v5 = vld [vmem:[#allocation4 + $0x1360] ss:$16 sps:$4 sm:$0xff]  }
 0x6bd   :  { %v6450_v9 = vpack.c.bf16 %v11839_v49, %v11836_v8  ;;  %v6452_v16 = vpack.c.bf16 %v11845_v50, %v11850_v12  ;;  %v11170_v18 = vld [vmem:[#allocation4 + $0x1344] ss:$16 sps:$4 sm:$0xff]  }
 0x6be   :  { %v11176_v1 = vld [vmem:[#allocation4 + $0x1364] ss:$16 sps:$4 sm:$0xff]  }
 0x6bf   :  { %7141 = vmatprep.mubr.bf16.mxu0 %v6450_v9  ;;  %7227 = vmatprep.mubr.bf16.mxu1 %v6450_v9  ;;  %v11177_v9 = vld [vmem:[#allocation4 + $0x1368] ss:$16 sps:$4 sm:$0xff]  }
 0x6c0   :  { %7142 = vmatmul.mubr.bf16.vlgmr.msra.gmra.mrb[20].mxu0 %v6449_v14  ;;  %7228 = vmatmul.mubr.bf16.vlgmr.msra.gmra.mrb[20].mxu1 %v6449_v14  ;;  %v11180_v14 = vld [vmem:[#allocation4 + $0x1380] ss:$16 sps:$4 sm:$0xff]  }
 0x6c1   :  { %7153 = vmatpush1.bf16.msra.mxu0 %v11108_v13  ;;  %7239 = vmatpush1.bf16.msra.mxu1 %v11111_v19  ;;  %v11182_v13 = vld [vmem:[#allocation4 + $0x1384] ss:$16 sps:$4 sm:$0xff]   ;;  %v11185_v19 = vld [vmem:[#allocation4 + $0x138c] ss:$16 sps:$4 sm:$0xff]  }
 0x6c2   :  { %7184 = vmatprep.mubr.bf16.mxu0 %v6452_v16  ;;  %7270 = vmatprep.mubr.bf16.mxu1 %v6452_v16  ;;  %v11191_v16 = vld [vmem:[#allocation4 + $0x13ac] ss:$16 sps:$4 sm:$0xff]  }
 0x6c3   :  { %7154 = vmatprep.subr.bf16.mxu0 %v11116_v15  ;;  %7240 = vmatprep.subr.bf16.mxu1 %v11119_v22  ;;  %v11183_v15 = vld [vmem:[#allocation4 + $0x1388] ss:$16 sps:$4 sm:$0xff]   ;;  %v11188_v22 = vld [vmem:[#allocation4 + $0x13a4] ss:$16 sps:$4 sm:$0xff]  }
 0x6c5   :  { %7155 = vmatpush1.bf16.msra.mxu0 %v11114_v17  ;;  %7241 = vmatpush1.bf16.msra.mxu1 %v11117_v23  ;;  %v11186_v17 = vld [vmem:[#allocation4 + $0x13a0] ss:$16 sps:$4 sm:$0xff]   ;;  %v11189_v23 = vld [vmem:[#allocation4 + $0x13a8] ss:$16 sps:$4 sm:$0xff]  }
 0x6c6   :  { %7156 = vmatprep.subr.bf16.mxu0 %v11122_v57  ;;  %7242 = vmatprep.subr.bf16.mxu1 %v11125_v25  ;;  %v11194_v57 = vld [vmem:[#allocation4 + $0x13c4] ss:$16 sps:$4 sm:$0xff]   ;;  %v11197_v25 = vld [vmem:[#allocation4 + $0x13cc] ss:$16 sps:$4 sm:$0xff]  }
 0x6c9   :  { %7157 = vmatpush1.bf16.msra.mxu0 %v11120_v26  ;;  %7243 = vmatpush1.bf16.msra.mxu1 %v11123_v27  ;;  %v11856_v26 = vld [vmem:[#allocation7 + $0x10] sm:$0xff] }
 0x6ca   :  { %7158 = vmatprep.subr.bf16.mxu0 %v11128_v29  ;;  %7244 = vmatprep.subr.bf16.mxu1 %v11131_v30  ;;  %v5366_v27 = vrot.slane %v11856_v26, %v11814_v51  ;;  %v11192_v29 = vld [vmem:[#allocation4 + $0x13c0] ss:$16 sps:$4 sm:$0xff]   ;;  %v11195_v30 = vld [vmem:[#allocation4 + $0x13c8] ss:$16 sps:$4 sm:$0xff]   ;;  %v11206_v51 = vld [vmem:[#allocation4 + $0x1404] ss:$16 sps:$4 sm:$0xff]  }
 0x6cd   :  { %7159 = vmatpush1.bf16.msra.mxu0 %v11126_v32  ;;  %7245 = vmatpush1.bf16.msra.mxu1 %v11129_v37  ;;  %v9692_v32 = vadd.f32 %v11830_v3, %v5366_v27  ;;  %v11200_v37 = vld [vmem:[#allocation4 + $0x13e4] ss:$16 sps:$4 sm:$0xff]   ;;  %v11204_v3 = vld [vmem:[#allocation4 + $0x1400] ss:$16 sps:$4 sm:$0xff]  }
 0x6ce   :  { %7160 = vmatprep.subr.bf16.mxu0 %v11134_v34  ;;  %7246 = vmatprep.subr.bf16.mxu1 %v11137_v48  ;;  %v11203_v34 = vld [vmem:[#allocation4 + $0x13ec] ss:$16 sps:$4 sm:$0xff]   ;;  %v9690_v48 = vadd.f32 %v11824_v62, %v5366_v27  ;;  %v11266_v27 = vld [vmem:[#allocation4 + $0x1544] ss:$16 sps:$4 sm:$0xff]  }
 0x6d1   :  { %7161 = vmatpush1.bf16.msra.mxu0 %v11132_v41  ;;  %7247 = vmatpush1.bf16.msra.mxu1 %v11135_v42  ;;  %v11198_v41 = vld [vmem:[#allocation4 + $0x13e0] ss:$16 sps:$4 sm:$0xff]   ;;  %v11201_v42 = vld [vmem:[#allocation4 + $0x13e8] ss:$16 sps:$4 sm:$0xff]  }
 0x6d2   :  { %7162 = vmatprep.subr.bf16.mxu0 %v11140_v28  ;;  %7248 = vmatprep.subr.bf16.mxu1 %v11143_v47  ;;  %v11863_v28 = vadd.f32 %v9692_v32, %v11796_v33  ;;  %v11209_v47 = vld [vmem:[#allocation4 + $0x140c] ss:$16 sps:$4 sm:$0xff]   ;;  %v11210_v33 = vld [vmem:[#allocation4 + $0x1420] ss:$16 sps:$4 sm:$0xff]   ;;  %v11267_v32 = vld [vmem:[#allocation4 + $0x1548] ss:$16 sps:$4 sm:$0xff]  }
 0x6d5   :  { %7163 = vmatpush1.bf16.msra.mxu0 %v11138_v35  ;;  %7249 = vmatpush1.bf16.msra.mxu1 %v11141_v20  ;;  %v11866_v35 = vadd.f32 %v9690_v48, %v11800_v56  ;;  %v11207_v20 = vld [vmem:[#allocation4 + $0x1408] ss:$16 sps:$4 sm:$0xff]   ;;  %v11218_v56 = vld [vmem:[#allocation4 + $0x1444] ss:$16 sps:$4 sm:$0xff]   ;;  %v11270_v48 = vld [vmem:[#allocation4 + $0x1560] ss:$16 sps:$4 sm:$0xff]  }
 0x6d6   :  { %7164 = vmatprep.subr.bf16.mxu0 %v11146_v31  ;;  %7250 = vmatprep.subr.bf16.mxu1 %v11149_v59  ;;  %v11212_v31 = vld [vmem:[#allocation4 + $0x1424] ss:$16 sps:$4 sm:$0xff]   ;;  %v11215_v59 = vld [vmem:[#allocation4 + $0x142c] ss:$16 sps:$4 sm:$0xff]  }
 0x6d7   :  { %v6451_v62 = vpack.c.bf16 %v11863_v28, %v11866_v35 }
 0x6d9   :  { %7165 = vmatpush1.bf16.msra.mxu0 %v11144_v36  ;;  %7251 = vmatpush1.bf16.msra.mxu1 %v11147_v46  ;;  %v11213_v36 = vld [vmem:[#allocation4 + $0x1428] ss:$16 sps:$4 sm:$0xff]   ;;  %v11221_v46 = vld [vmem:[#allocation4 + $0x144c] ss:$16 sps:$4 sm:$0xff]  }
 0x6da   :  { %7166 = vmatprep.subr.bf16.mxu0 %v11152_v53  ;;  %7252 = vmatprep.subr.bf16.mxu1 %v11155_v39  ;;  %v11216_v53 = vld [vmem:[#allocation4 + $0x1440] ss:$16 sps:$4 sm:$0xff]   ;;  %v11219_v39 = vld [vmem:[#allocation4 + $0x1448] ss:$16 sps:$4 sm:$0xff]  }
 0x6dd   :  { %7167 = vmatpush1.bf16.msra.mxu0 %v11150_v40  ;;  %7253 = vmatpush1.bf16.msra.mxu1 %v11153_v43  ;;  %v11224_v40 = vld [vmem:[#allocation4 + $0x1464] ss:$16 sps:$4 sm:$0xff]   ;;  %v11227_v43 = vld [vmem:[#allocation4 + $0x146c] ss:$16 sps:$4 sm:$0xff]  }
 0x6de   :  { %7168 = vmatprep.subr.bf16.mxu0 %v11158_v54  ;;  %7254 = vmatprep.subr.bf16.mxu1 %v11161_v55  ;;  %v11222_v54 = vld [vmem:[#allocation4 + $0x1460] ss:$16 sps:$4 sm:$0xff]   ;;  %v11225_v55 = vld [vmem:[#allocation4 + $0x1468] ss:$16 sps:$4 sm:$0xff]  }
 0x6e1   :  { %7169 = vmatpush1.bf16.msra.mxu0 %v11156_v58  ;;  %7255 = vmatpush1.bf16.msra.mxu1 %v11159_v63  ;;  %v11230_v58 = vld [vmem:[#allocation4 + $0x1484] ss:$16 sps:$4 sm:$0xff]   ;;  %v11233_v63 = vld [vmem:[#allocation4 + $0x148c] ss:$16 sps:$4 sm:$0xff]  }
 0x6e2   :  { %7170 = vmatprep.subr.bf16.mxu0 %v11164_v7  ;;  %7256 = vmatprep.subr.bf16.mxu1 %v11167_v10  ;;  %v11228_v7 = vld [vmem:[#allocation4 + $0x1480] ss:$16 sps:$4 sm:$0xff]   ;;  %v11231_v10 = vld [vmem:[#allocation4 + $0x1488] ss:$16 sps:$4 sm:$0xff]  }
 0x6e5   :  { %7171 = vmatpush1.bf16.msra.mxu0 %v11162_v11  ;;  %7257 = vmatpush1.bf16.msra.mxu1 %v11165_v61  ;;  %v11236_v11 = vld [vmem:[#allocation4 + $0x14a4] ss:$16 sps:$4 sm:$0xff]   ;;  %v11239_v61 = vld [vmem:[#allocation4 + $0x14ac] ss:$16 sps:$4 sm:$0xff]  }
 0x6e6   :  { %7172 = vmatprep.subr.bf16.mxu0 %v11170_v18  ;;  %7258 = vmatprep.subr.bf16.mxu1 %v11173_v0  ;;  %v11234_v18 = vld [vmem:[#allocation4 + $0x14a0] ss:$16 sps:$4 sm:$0xff]   ;;  %v11237_v0 = vld [vmem:[#allocation4 + $0x14a8] ss:$16 sps:$4 sm:$0xff]  }
 0x6e9   :  { %7173 = vmatpush1.bf16.msra.mxu0 %v11168_v60  ;;  %7259 = vmatpush1.bf16.msra.mxu1 %v11171_v4  ;;  %v11242_v60 = vld [vmem:[#allocation4 + $0x14c4] ss:$16 sps:$4 sm:$0xff]   ;;  %v11245_v4 = vld [vmem:[#allocation4 + $0x14cc] ss:$16 sps:$4 sm:$0xff]  }
 0x6ea   :  { %7174 = vmatprep.subr.bf16.mxu0 %v11176_v1  ;;  %7260 = vmatprep.subr.bf16.mxu1 %v11179_v38  ;;  %v11240_v1 = vld [vmem:[#allocation4 + $0x14c0] ss:$16 sps:$4 sm:$0xff]   ;;  %v11243_v38 = vld [vmem:[#allocation4 + $0x14c8] ss:$16 sps:$4 sm:$0xff]  }
 0x6ed   :  { %7175 = vmatpush1.bf16.msra.mxu0 %v11174_v5  ;;  %7261 = vmatpush1.bf16.msra.mxu1 %v11177_v9  ;;  %v11248_v5 = vld [vmem:[#allocation4 + $0x14e4] ss:$16 sps:$4 sm:$0xff]   ;;  %v11251_v9 = vld [vmem:[#allocation4 + $0x14ec] ss:$16 sps:$4 sm:$0xff]  }
 0x6ee   :  { %7176 = vmatprep.subr.bf16.mxu0 %v11182_v13  ;;  %7262 = vmatprep.subr.bf16.mxu1 %v11185_v19  ;;  %v11246_v13 = vld [vmem:[#allocation4 + $0x14e0] ss:$16 sps:$4 sm:$0xff]   ;;  %v11249_v19 = vld [vmem:[#allocation4 + $0x14e8] ss:$16 sps:$4 sm:$0xff]  }
 0x6f1   :  { %7177 = vmatpush1.bf16.msra.mxu0 %v11180_v14  ;;  %7263 = vmatpush1.bf16.msra.mxu1 %v11183_v15  ;;  %v11254_v14 = vld [vmem:[#allocation4 + $0x1504] ss:$16 sps:$4 sm:$0xff]   ;;  %v11257_v15 = vld [vmem:[#allocation4 + $0x150c] ss:$16 sps:$4 sm:$0xff]  }
 0x6f2   :  { %7178 = vmatprep.subr.bf16.mxu0 %v11188_v22  ;;  %7264 = vmatprep.subr.bf16.mxu1 %v11191_v16  ;;  %v11252_v22 = vld [vmem:[#allocation4 + $0x1500] ss:$16 sps:$4 sm:$0xff]   ;;  %v11255_v16 = vld [vmem:[#allocation4 + $0x1508] ss:$16 sps:$4 sm:$0xff]  }
 0x6f5   :  { %7179 = vmatpush1.bf16.msra.mxu0 %v11186_v17  ;;  %7265 = vmatpush1.bf16.msra.mxu1 %v11189_v23  ;;  %v11260_v17 = vld [vmem:[#allocation4 + $0x1524] ss:$16 sps:$4 sm:$0xff]   ;;  %v11263_v23 = vld [vmem:[#allocation4 + $0x152c] ss:$16 sps:$4 sm:$0xff]  }
 0x6f6   :  { %7180 = vmatprep.subr.bf16.mxu0 %v11194_v57  ;;  %7266 = vmatprep.subr.bf16.mxu1 %v11197_v25  ;;  %v11258_v57 = vld [vmem:[#allocation4 + $0x1520] ss:$16 sps:$4 sm:$0xff]   ;;  %v11261_v25 = vld [vmem:[#allocation4 + $0x1528] ss:$16 sps:$4 sm:$0xff]  }
 0x6f9   :  { %7181 = vmatpush1.bf16.msra.mxu0 %v11192_v29  ;;  %7267 = vmatpush1.bf16.msra.mxu1 %v11195_v30  ;;  %v11269_v29 = vld [vmem:[#allocation4 + $0x154c] ss:$16 sps:$4 sm:$0xff]   ;;  %v11264_v30 = vld [vmem:[#allocation4 + $0x1540] ss:$16 sps:$4 sm:$0xff]  }
 0x6fa   :  { %7182 = vmatprep.subr.bf16.mxu0 %v11200_v37  ;;  %7268 = vmatprep.subr.bf16.mxu1 %v11203_v34  ;;  %v11272_v37 = vld [vmem:[#allocation4 + $0x1564] ss:$16 sps:$4 sm:$0xff]   ;;  %v11275_v34 = vld [vmem:[#allocation4 + $0x156c] ss:$16 sps:$4 sm:$0xff]  }
 0x6fd   :  { %7183 = vmatpush1.bf16.msra.mxu0 %v11198_v41  ;;  %7269 = vmatpush1.bf16.msra.mxu1 %v11201_v42  ;;  %v11273_v41 = vld [vmem:[#allocation4 + $0x1568] ss:$16 sps:$4 sm:$0xff]   ;;  %v11278_v42 = vld [vmem:[#allocation4 + $0x1584] ss:$16 sps:$4 sm:$0xff]  }
 0x6fe   :  { %7949 = vmatprep.subr.bf16.mxu0 %v11206_v51  ;;  %8035 = vmatprep.subr.bf16.mxu1 %v11209_v47  ;;  %v11281_v51 = vld [vmem:[#allocation4 + $0x158c] ss:$16 sps:$4 sm:$0xff]   ;;  %v11276_v47 = vld [vmem:[#allocation4 + $0x1580] ss:$16 sps:$4 sm:$0xff]  }
 0x700   :  { %7185 = vmatmul.mubr.bf16.vlgmr.msra.gmra.mrb[20].mxu0 %v6451_v62  ;;  %7271 = vmatmul.mubr.bf16.vlgmr.msra.gmra.mrb[20].mxu1 %v6451_v62  ;;  %v11287_v62 = vld [vmem:[#allocation4 + $0x15ac] ss:$16 sps:$4 sm:$0xff]  }
 0x701   :  { %7950 = vmatpush1.bf16.msra.mxu0 %v11204_v3  ;;  %8036 = vmatpush1.bf16.msra.mxu1 %v11207_v20  ;;  %v11279_v3 = vld [vmem:[#allocation4 + $0x1588] ss:$16 sps:$4 sm:$0xff]   ;;  %v11284_v20 = vld [vmem:[#allocation4 + $0x15a4] ss:$16 sps:$4 sm:$0xff]  }
 0x702   :  { %7951 = vmatprep.subr.bf16.mxu0 %v11212_v31  ;;  %8037 = vmatprep.subr.bf16.mxu1 %v11215_v59  ;;  %v11282_v31 = vld [vmem:[#allocation4 + $0x15a0] ss:$16 sps:$4 sm:$0xff]   ;;  %v11285_v59 = vld [vmem:[#allocation4 + $0x15a8] ss:$16 sps:$4 sm:$0xff]  }
 0x705   :  { %7952 = vmatpush1.bf16.msra.mxu0 %v11210_v33  ;;  %8038 = vmatpush1.bf16.msra.mxu1 %v11213_v36  ;;  %v11290_v33 = vld [vmem:[#allocation4 + $0x15c4] ss:$16 sps:$4 sm:$0xff]   ;;  %v11293_v36 = vld [vmem:[#allocation4 + $0x15cc] ss:$16 sps:$4 sm:$0xff]  }
 0x706   :  { %7953 = vmatprep.subr.bf16.mxu0 %v11218_v56  ;;  %8039 = vmatprep.subr.bf16.mxu1 %v11221_v46  ;;  %v11288_v56 = vld [vmem:[#allocation4 + $0x15c0] ss:$16 sps:$4 sm:$0xff]   ;;  %v11291_v46 = vld [vmem:[#allocation4 + $0x15c8] ss:$16 sps:$4 sm:$0xff]  }
 0x709   :  { %7954 = vmatpush1.bf16.msra.mxu0 %v11216_v53  ;;  %8040 = vmatpush1.bf16.msra.mxu1 %v11219_v39  ;;  %v11296_v53 = vld [vmem:[#allocation4 + $0x15e4] ss:$16 sps:$4 sm:$0xff]   ;;  %v11299_v39 = vld [vmem:[#allocation4 + $0x15ec] ss:$16 sps:$4 sm:$0xff]  }
 0x70a   :  { %7955 = vmatprep.subr.bf16.mxu0 %v11224_v40  ;;  %8041 = vmatprep.subr.bf16.mxu1 %v11227_v43  ;;  %v11294_v40 = vld [vmem:[#allocation4 + $0x15e0] ss:$16 sps:$4 sm:$0xff]   ;;  %v11297_v43 = vld [vmem:[#allocation4 + $0x15e8] ss:$16 sps:$4 sm:$0xff]  }
 0x70d   :  { %7956 = vmatpush1.bf16.msra.mxu0 %v11222_v54  ;;  %8042 = vmatpush1.bf16.msra.mxu1 %v11225_v55  ;;  %v11302_v54 = vld [vmem:[#allocation4 + $0x1604] ss:$16 sps:$4 sm:$0xff]   ;;  %v11305_v55 = vld [vmem:[#allocation4 + $0x160c] ss:$16 sps:$4 sm:$0xff]  }
 0x70e   :  { %7957 = vmatprep.subr.bf16.mxu0 %v11230_v58  ;;  %8043 = vmatprep.subr.bf16.mxu1 %v11233_v63  ;;  %v6455_v58 = vsub.s32 5, %v11663_v45 }
 0x710   :  { %v6456_v63 = vrot.slane %v11820_v24, %v6455_v58 }
 0x711   :  { %7958 = vmatpush1.bf16.msra.mxu0 %v11228_v7  ;;  %8044 = vmatpush1.bf16.msra.mxu1 %v11231_v10  ;;  %v6464_v7 = vrot.slane %v11856_v26, %v6455_v58  ;;  %v6460_v10 = vrot.slane %v11816_v52, %v6455_v58 }
 0x712   :  { %7959 = vmatprep.subr.bf16.mxu0 %v11236_v11  ;;  %8045 = vmatprep.subr.bf16.mxu1 %v11239_v61  ;;  %v6468_v11 = vrot.slane %v11826_v6, %v6455_v58  ;;  %v11330_v58 = vld [vmem:[#allocation4 + $0x16a0] ss:$16 sps:$4 sm:$0xff]  }
 0x715   :  { %7960 = vmatpush1.bf16.msra.mxu0 %v11234_v18  ;;  %8046 = vmatpush1.bf16.msra.mxu1 %v11237_v0 }
 0x716   :  { %7961 = vmatprep.subr.bf16.mxu0 %v11242_v60  ;;  %8047 = vmatprep.subr.bf16.mxu1 %v11245_v4 }
 0x719   :  { %7962 = vmatpush1.bf16.msra.mxu0 %v11240_v1  ;;  %8048 = vmatpush1.bf16.msra.mxu1 %v11243_v38 }
 0x71a   :  { %7963 = vmatprep.subr.bf16.mxu0 %v11248_v5  ;;  %8049 = vmatprep.subr.bf16.mxu1 %v11251_v9 }
 0x71d   :  { %7964 = vmatpush1.bf16.msra.mxu0 %v11246_v13  ;;  %8050 = vmatpush1.bf16.msra.mxu1 %v11249_v19 }
 0x71e   :  { %7965 = vmatprep.subr.bf16.mxu0 %v11254_v14  ;;  %8051 = vmatprep.subr.bf16.mxu1 %v11257_v15 }
 0x721   :  { %7966 = vmatpush1.bf16.msra.mxu0 %v11252_v22  ;;  %8052 = vmatpush1.bf16.msra.mxu1 %v11255_v16 }
 0x722   :  { %7967 = vmatprep.subr.bf16.mxu0 %v11260_v17  ;;  %8053 = vmatprep.subr.bf16.mxu1 %v11263_v23 }
 0x725   :  { %7968 = vmatpush1.bf16.msra.mxu0 %v11258_v57  ;;  %8054 = vmatpush1.bf16.msra.mxu1 %v11261_v25 }
 0x726   :  { %7969 = vmatprep.subr.bf16.mxu0 %v11266_v27  ;;  %8055 = vmatprep.subr.bf16.mxu1 %v11269_v29 }
 0x729   :  { %7970 = vmatpush1.bf16.msra.mxu0 %v11264_v30  ;;  %8056 = vmatpush1.bf16.msra.mxu1 %v11267_v32 }
 0x72a   :  { %7971 = vmatprep.subr.bf16.mxu0 %v11272_v37  ;;  %8057 = vmatprep.subr.bf16.mxu1 %v11275_v34 }
 0x72d   :  { %7972 = vmatpush1.bf16.msra.mxu0 %v11270_v48  ;;  %8058 = vmatpush1.bf16.msra.mxu1 %v11273_v41  ;;  %v11300_v48 = vld [vmem:[#allocation4 + $0x1600] ss:$16 sps:$4 sm:$0xff]   ;;  %v11303_v41 = vld [vmem:[#allocation4 + $0x1608] ss:$16 sps:$4 sm:$0xff]  }
 0x72e   :  { %7973 = vmatprep.subr.bf16.mxu0 %v11278_v42  ;;  %8059 = vmatprep.subr.bf16.mxu1 %v11281_v51  ;;  %v11308_v42 = vld [vmem:[#allocation4 + $0x1624] ss:$16 sps:$4 sm:$0xff]   ;;  %v11311_v51 = vld [vmem:[#allocation4 + $0x162c] ss:$16 sps:$4 sm:$0xff]  }
 0x731   :  { %7974 = vmatpush1.bf16.msra.mxu0 %v11276_v47  ;;  %8060 = vmatpush1.bf16.msra.mxu1 %v11279_v3  ;;  %v11306_v47 = vld [vmem:[#allocation4 + $0x1620] ss:$16 sps:$4 sm:$0xff]   ;;  %v11309_v3 = vld [vmem:[#allocation4 + $0x1628] ss:$16 sps:$4 sm:$0xff]  }
 0x732   :  { %7975 = vmatprep.subr.bf16.mxu0 %v11284_v20  ;;  %8061 = vmatprep.subr.bf16.mxu1 %v11287_v62  ;;  %v11314_v20 = vld [vmem:[#allocation4 + $0x1644] ss:$16 sps:$4 sm:$0xff]   ;;  %v11317_v62 = vld [vmem:[#allocation4 + $0x164c] ss:$16 sps:$4 sm:$0xff]  }
 0x735   :  { %7976 = vmatpush1.bf16.msra.mxu0 %v11282_v31  ;;  %8062 = vmatpush1.bf16.msra.mxu1 %v11285_v59  ;;  %v11312_v31 = vld [vmem:[#allocation4 + $0x1640] ss:$16 sps:$4 sm:$0xff]   ;;  %v11315_v59 = vld [vmem:[#allocation4 + $0x1648] ss:$16 sps:$4 sm:$0xff]  }
 0x736   :  { %7977 = vmatprep.subr.bf16.mxu0 %v11290_v33  ;;  %8063 = vmatprep.subr.bf16.mxu1 %v11293_v36  ;;  %v11320_v33 = vld [vmem:[#allocation4 + $0x1664] ss:$16 sps:$4 sm:$0xff]   ;;  %v11323_v36 = vld [vmem:[#allocation4 + $0x166c] ss:$16 sps:$4 sm:$0xff]  }
 0x739   :  { %7978 = vmatpush1.bf16.msra.mxu0 %v11288_v56  ;;  %8064 = vmatpush1.bf16.msra.mxu1 %v11291_v46  ;;  %v11318_v56 = vld [vmem:[#allocation4 + $0x1660] ss:$16 sps:$4 sm:$0xff]   ;;  %v11321_v46 = vld [vmem:[#allocation4 + $0x1668] ss:$16 sps:$4 sm:$0xff]  }
 0x73a   :  { %7979 = vmatprep.subr.bf16.mxu0 %v11296_v53  ;;  %8065 = vmatprep.subr.bf16.mxu1 %v11299_v39  ;;  %v11326_v53 = vld [vmem:[#allocation4 + $0x1684] ss:$16 sps:$4 sm:$0xff]   ;;  %v11329_v39 = vld [vmem:[#allocation4 + $0x168c] ss:$16 sps:$4 sm:$0xff]  }
 0x73d   :  { %7980 = vmatpush1.bf16.msra.mxu0 %v11294_v40  ;;  %8066 = vmatpush1.bf16.msra.mxu1 %v11297_v43  ;;  %v11324_v40 = vld [vmem:[#allocation4 + $0x1680] ss:$16 sps:$4 sm:$0xff]   ;;  %v11327_v43 = vld [vmem:[#allocation4 + $0x1688] ss:$16 sps:$4 sm:$0xff]  }
 0x73e   :  { %7992 = vmatprep.subr.bf16.mxu0 %v11302_v54  ;;  %8078 = vmatprep.subr.bf16.mxu1 %v11305_v55  ;;  %v11332_v54 = vld [vmem:[#allocation4 + $0x16a4] ss:$16 sps:$4 sm:$0xff]   ;;  %v11335_v55 = vld [vmem:[#allocation4 + $0x16ac] ss:$16 sps:$4 sm:$0xff]  }
 0x7d3   :  { %v7186_v61 = vpop.f32.mrb[20].mxu0  ;;  %v7272_v18 = vpop.f32.mrb[20].mxu1 }
 0x7d4   :  { %v9694_v0 = vadd.f32 %v7186_v61, %v6456_v63  ;;  %v9698_v60 = vadd.f32 %v7272_v18, %v6464_v7  ;;  %v7188_v4 = vpop.f32.mrb[21].mxu0  ;;  %v7274_v1 = vpop.f32.mrb[21].mxu1  ;;  %v11339_v61 = vld [vmem:[#allocation4 + $0x16c8] ss:$16 sps:$4 sm:$0xff]   ;;  %v11344_v18 = vld [vmem:[#allocation4 + $0x16e4] ss:$16 sps:$4 sm:$0xff]  }
 0x7d5   :  { %v9695_v38 = vadd.f32 %v7188_v4, %v6460_v10  ;;  %v9699_v5 = vadd.f32 %v7274_v1, %v6468_v11  ;;  %v7190_v9 = vpop.f32.mrb[22].mxu0  ;;  %v7276_v13 = vpop.f32.mrb[22].mxu1  ;;  %v11345_v4 = vld [vmem:[#allocation4 + $0x16e8] ss:$16 sps:$4 sm:$0xff]   ;;  %v11350_v1 = vld [vmem:[#allocation4 + $0x1704] ss:$16 sps:$4 sm:$0xff]  }
 0x7d6   :  { %v9696_v19 = vadd.f32 %v7190_v9, %v6456_v63  ;;  %v9700_v14 = vadd.f32 %v7276_v13, %v6464_v7  ;;  %v7192_v15 = vpop.f32.mrb[23].mxu0  ;;  %v7278_v24 = vpop.f32.mrb[23].mxu1  ;;  %v7281_v17 = vmax.f32 %v9694_v0, 0.0  ;;  %v7283_v52 = vmax.f32 %v9698_v60, 0.0  ;;  %v11333_v63 = vld [vmem:[#allocation4 + $0x16a8] ss:$16 sps:$4 sm:$0xff]  }
 0x7d7   :  { %v9697_v22 = vadd.f32 %v7192_v15, %v6460_v10  ;;  %v9701_v16 = vadd.f32 %v7278_v24, %v6468_v11  ;;  %v7282_v57 = vmax.f32 %v9695_v38, 0.0  ;;  %v7284_v25 = vmax.f32 %v9699_v5, 0.0  ;;  %v11338_v7 = vld [vmem:[#allocation4 + $0x16c4] ss:$16 sps:$4 sm:$0xff]   ;;  %v11341_v10 = vld [vmem:[#allocation4 + $0x16cc] ss:$16 sps:$4 sm:$0xff]  }
 0x7d8   :  { %v7285_v23 = vmax.f32 %v9696_v19, 0.0  ;;  %v7287_v6 = vmax.f32 %v9700_v14, 0.0  ;;  %v11336_v11 = vld [vmem:[#allocation4 + $0x16c0] ss:$16 sps:$4 sm:$0xff]   ;;  %v11347_v0 = vld [vmem:[#allocation4 + $0x16ec] ss:$16 sps:$4 sm:$0xff]  }
 0x7d9   :  { %v7286_v27 = vmax.f32 %v9697_v22, 0.0  ;;  %v7288_v29 = vmax.f32 %v9701_v16, 0.0  ;;  %v11342_v60 = vld [vmem:[#allocation4 + $0x16e0] ss:$16 sps:$4 sm:$0xff]   ;;  %v11353_v38 = vld [vmem:[#allocation4 + $0x170c] ss:$16 sps:$4 sm:$0xff]  }
 0x7da   :  { %v7289_v30 = vpack.c.bf16 %v7285_v23, %v7281_v17  ;;  %v11875_v32 = vpack.c.bf16 %v7287_v6, %v7283_v52  ;;  %v11348_v5 = vld [vmem:[#allocation4 + $0x1700] ss:$16 sps:$4 sm:$0xff]   ;;  %v11351_v9 = vld [vmem:[#allocation4 + $0x1708] ss:$16 sps:$4 sm:$0xff]   ;;  %v11356_v13 = vld [vmem:[#allocation4 + $0x1724] ss:$16 sps:$4 sm:$0xff]  }
 0x7db   :  { %v7290_v37 = vpack.c.bf16 %v7286_v27, %v7282_v57  ;;  %v7292_v34 = vpack.c.bf16 %v7288_v29, %v7284_v25  ;;  %v11359_v19 = vld [vmem:[#allocation4 + $0x172c] ss:$16 sps:$4 sm:$0xff]   ;;  %v11354_v14 = vld [vmem:[#allocation4 + $0x1720] ss:$16 sps:$4 sm:$0xff]   ;;  %v11357_v15 = vld [vmem:[#allocation4 + $0x1728] ss:$16 sps:$4 sm:$0xff]  }
 0x7dc   :  { %v11362_v24 = vld [vmem:[#allocation4 + $0x1744] ss:$16 sps:$4 sm:$0xff]   ;;  %v11365_v22 = vld [vmem:[#allocation4 + $0x174c] ss:$16 sps:$4 sm:$0xff]   ;;  %v11360_v16 = vld [vmem:[#allocation4 + $0x1740] ss:$16 sps:$4 sm:$0xff]  }
 0x7dd   :  { %7981 = vmatprep.mubr.bf16.mxu0 %v7290_v37  ;;  %8067 = vmatprep.mubr.bf16.mxu1 %v7290_v37  ;;  %v11363_v17 = vld [vmem:[#allocation4 + $0x1748] ss:$16 sps:$4 sm:$0xff]   ;;  %v11368_v52 = vld [vmem:[#allocation4 + $0x1764] ss:$16 sps:$4 sm:$0xff]   ;;  %v11371_v23 = vld [vmem:[#allocation4 + $0x176c] ss:$16 sps:$4 sm:$0xff]  }
 0x7de   :  { %7982 = vmatmul.mubr.bf16.vlgmr.msra.gmra.mrb[24].mxu0 %v7289_v30  ;;  %8068 = vmatmul.mubr.bf16.vlgmr.msra.gmra.mrb[24].mxu1 %v7289_v30  ;;  %v11366_v6 = vld [vmem:[#allocation4 + $0x1760] ss:$16 sps:$4 sm:$0xff]   ;;  %v11369_v57 = vld [vmem:[#allocation4 + $0x1768] ss:$16 sps:$4 sm:$0xff]   ;;  %v11374_v25 = vld [vmem:[#allocation4 + $0x1784] ss:$16 sps:$4 sm:$0xff]  }
 0x7df   :  { %7993 = vmatpush1.bf16.msra.mxu0 %v11300_v48  ;;  %8079 = vmatpush1.bf16.msra.mxu1 %v11303_v41  ;;  %v11377_v27 = vld [vmem:[#allocation4 + $0x178c] ss:$16 sps:$4 sm:$0xff]   ;;  %v11372_v29 = vld [vmem:[#allocation4 + $0x1780] ss:$16 sps:$4 sm:$0xff]   ;;  %v11375_v30 = vld [vmem:[#allocation4 + $0x1788] ss:$16 sps:$4 sm:$0xff]  }
 0x7e0   :  { %8024 = vmatprep.mubr.bf16.mxu0 %v7292_v34  ;;  %8110 = vmatprep.mubr.bf16.mxu1 %v7292_v34  ;;  %v11380_v37 = vld [vmem:[#allocation4 + $0x17a4] ss:$16 sps:$4 sm:$0xff]   ;;  %v11383_v34 = vld [vmem:[#allocation4 + $0x17ac] ss:$16 sps:$4 sm:$0xff]   ;;  %v11378_v48 = vld [vmem:[#allocation4 + $0x17a0] ss:$16 sps:$4 sm:$0xff]  }
 0x7e1   :  { %7994 = vmatprep.subr.bf16.mxu0 %v11308_v42  ;;  %8080 = vmatprep.subr.bf16.mxu1 %v11311_v51  ;;  %v11381_v41 = vld [vmem:[#allocation4 + $0x17a8] ss:$16 sps:$4 sm:$0xff]   ;;  %v11386_v42 = vld [vmem:[#allocation4 + $0x17c4] ss:$16 sps:$4 sm:$0xff]   ;;  %v11389_v51 = vld [vmem:[#allocation4 + $0x17cc] ss:$16 sps:$4 sm:$0xff]  }
 0x7e3   :  { %7995 = vmatpush1.bf16.msra.mxu0 %v11306_v47  ;;  %8081 = vmatpush1.bf16.msra.mxu1 %v11309_v3  ;;  %v11384_v47 = vld [vmem:[#allocation4 + $0x17c0] ss:$16 sps:$4 sm:$0xff]   ;;  %v11387_v3 = vld [vmem:[#allocation4 + $0x17c8] ss:$16 sps:$4 sm:$0xff]  }
 0x7e4   :  { %7996 = vmatprep.subr.bf16.mxu0 %v11314_v20  ;;  %8082 = vmatprep.subr.bf16.mxu1 %v11317_v62  ;;  %v11392_v20 = vld [vmem:[#allocation4 + $0x17e4] ss:$16 sps:$4 sm:$0xff]   ;;  %v11395_v62 = vld [vmem:[#allocation4 + $0x17ec] ss:$16 sps:$4 sm:$0xff]  }
 0x7e7   :  { %7997 = vmatpush1.bf16.msra.mxu0 %v11312_v31  ;;  %8083 = vmatpush1.bf16.msra.mxu1 %v11315_v59  ;;  %v11390_v31 = vld [vmem:[#allocation4 + $0x17e0] ss:$16 sps:$4 sm:$0xff]   ;;  %v11393_v59 = vld [vmem:[#allocation4 + $0x17e8] ss:$16 sps:$4 sm:$0xff]  }
 0x7e8   :  { %7998 = vmatprep.subr.bf16.mxu0 %v11320_v33  ;;  %8084 = vmatprep.subr.bf16.mxu1 %v11323_v36  ;;  %v11396_v33 = vld [vmem:[#allocation6 + $0x40] sm:$0xff]  }
 0x7e9   :  { %v11397_v36 = vld [vmem:[#allocation6 + $0xc0] sm:$0xff]  }
 0x7eb   :  { %7999 = vmatpush1.bf16.msra.mxu0 %v11318_v56  ;;  %8085 = vmatpush1.bf16.msra.mxu1 %v11321_v46  ;;  %v11398_v56 = vld [vmem:[#allocation6] sm:$0xff]  }
 0x7ec   :  { %8000 = vmatprep.subr.bf16.mxu0 %v11326_v53  ;;  %8086 = vmatprep.subr.bf16.mxu1 %v11329_v39  ;;  %v11399_v46 = vld [vmem:[#allocation6 + $0x80] sm:$0xff]   ;;  %v11400_v53 = vld [vmem:[#allocation6 + $0x48] sm:$0xff]  }
 0x7ed   :  { %v11401_v39 = vld [vmem:[#allocation6 + $0xc8] sm:$0xff]  }
 0x7ef   :  { %8001 = vmatpush1.bf16.msra.mxu0 %v11324_v40  ;;  %8087 = vmatpush1.bf16.msra.mxu1 %v11327_v43  ;;  %v11402_v40 = vld [vmem:[#allocation6 + $0x8] sm:$0xff]  }
 0x7f0   :  { %8002 = vmatprep.subr.bf16.mxu0 %v11332_v54  ;;  %8088 = vmatprep.subr.bf16.mxu1 %v11335_v55  ;;  %v11403_v43 = vld [vmem:[#allocation6 + $0x88] sm:$0xff]   ;;  %v11404_v54 = vld [vmem:[#allocation6 + $0x50] sm:$0xff]  }
 0x7f1   :  { %v11405_v55 = vld [vmem:[#allocation6 + $0xd0] sm:$0xff]  }
 0x7f3   :  { %8003 = vmatpush1.bf16.msra.mxu0 %v11330_v58  ;;  %8089 = vmatpush1.bf16.msra.mxu1 %v11333_v63  ;;  %v11406_v58 = vld [vmem:[#allocation6 + $0x10] sm:$0xff]  }
 0x7f4   :  { %8004 = vmatprep.subr.bf16.mxu0 %v11338_v7  ;;  %8090 = vmatprep.subr.bf16.mxu1 %v11341_v10  ;;  %v11407_v63 = vld [vmem:[#allocation6 + $0x90] sm:$0xff]   ;;  %v11408_v7 = vld [vmem:[#allocation6 + $0x58] sm:$0xff]  }
 0x7f5   :  { %v11409_v10 = vld [vmem:[#allocation6 + $0xd8] sm:$0xff]  }
 0x7f7   :  { %8005 = vmatpush1.bf16.msra.mxu0 %v11336_v11  ;;  %8091 = vmatpush1.bf16.msra.mxu1 %v11339_v61  ;;  %v11410_v11 = vld [vmem:[#allocation6 + $0x18] sm:$0xff]   ;;  %v11412_v61 = vld [vmem:[#allocation6 + $0x60] sm:$0xff]  }
 0x7f8   :  { %8006 = vmatprep.subr.bf16.mxu0 %v11344_v18  ;;  %8092 = vmatprep.subr.bf16.mxu1 %v11347_v0  ;;  %v11413_v18 = vld [vmem:[#allocation6 + $0xe0] sm:$0xff]  }
 0x7f9   :  { %v11414_v0 = vld [vmem:[#allocation6 + $0x20] sm:$0xff]  }
 0x7fb   :  { %8007 = vmatpush1.bf16.msra.mxu0 %v11342_v60  ;;  %8093 = vmatpush1.bf16.msra.mxu1 %v11345_v4  ;;  %v11415_v60 = vld [vmem:[#allocation6 + $0xa0] sm:$0xff]   ;;  %v11416_v4 = vld [vmem:[#allocation6 + $0x68] sm:$0xff]  }
 0x7fc   :  { %8008 = vmatprep.subr.bf16.mxu0 %v11350_v1  ;;  %8094 = vmatprep.subr.bf16.mxu1 %v11353_v38  ;;  %v11417_v1 = vld [vmem:[#allocation6 + $0xe8] sm:$0xff]  }
 0x7fd   :  { %v11418_v38 = vld [vmem:[#allocation6 + $0x28] sm:$0xff]  }
 0x7ff   :  { %8009 = vmatpush1.bf16.msra.mxu0 %v11348_v5  ;;  %8095 = vmatpush1.bf16.msra.mxu1 %v11351_v9  ;;  %v11419_v5 = vld [vmem:[#allocation6 + $0xa8] sm:$0xff]   ;;  %v11420_v9 = vld [vmem:[#allocation6 + $0x70] sm:$0xff]  }
 0x800   :  { %8010 = vmatprep.subr.bf16.mxu0 %v11356_v13  ;;  %8096 = vmatprep.subr.bf16.mxu1 %v11359_v19  ;;  %v11421_v13 = vld [vmem:[#allocation6 + $0xf0] sm:$0xff]  }
 0x801   :  { %v11422_v19 = vld [vmem:[#allocation6 + $0x30] sm:$0xff]  }
 0x803   :  { %8011 = vmatpush1.bf16.msra.mxu0 %v11354_v14  ;;  %8097 = vmatpush1.bf16.msra.mxu1 %v11357_v15  ;;  %v11423_v14 = vld [vmem:[#allocation6 + $0xb0] sm:$0xff]   ;;  %v11424_v15 = vld [vmem:[#allocation6 + $0x78] sm:$0xff]  }
 0x804   :  { %8012 = vmatprep.subr.bf16.mxu0 %v11362_v24  ;;  %8098 = vmatprep.subr.bf16.mxu1 %v11365_v22  ;;  %v11425_v24 = vld [vmem:[#allocation6 + $0xf8] sm:$0xff]  }
 0x805   :  { %v11426_v22 = vld [vmem:[#allocation6 + $0x38] sm:$0xff]  }
 0x807   :  { %8013 = vmatpush1.bf16.msra.mxu0 %v11360_v16  ;;  %8099 = vmatpush1.bf16.msra.mxu1 %v11363_v17  ;;  %v11427_v16 = vld [vmem:[#allocation6 + $0xb8] sm:$0xff]   ;;  %v7295_v17 = vsub.s32 6, %v11663_v45 }
 0x808   :  { %8014 = vmatprep.subr.bf16.mxu0 %v11368_v52  ;;  %8100 = vmatprep.subr.bf16.mxu1 %v11371_v23  ;;  %v11444_v52 = vld [vmem:[#allocation7] sm:$0xff] }
 0x809   :  { %v7296_v23 = vrot.slane %v11444_v52, %v7295_v17 }
 0x80b   :  { %8015 = vmatpush1.bf16.msra.mxu0 %v11366_v6  ;;  %8101 = vmatpush1.bf16.msra.mxu1 %v11369_v57  ;;  %v7304_v6 = vrot.slane %v11856_v26, %v7295_v17  ;;  %v11445_v57 = vld [vmem:[#allocation7 + $0x8] sm:$0xff] }
 0x80c   :  { %8016 = vmatprep.subr.bf16.mxu0 %v11374_v25  ;;  %8102 = vmatprep.subr.bf16.mxu1 %v11377_v27  ;;  %v7300_v25 = vrot.slane %v11445_v57, %v7295_v17  ;;  %v11446_v27 = vld [vmem:[#allocation7 + $0x18] sm:$0xff] }
 0x80f   :  { %8017 = vmatpush1.bf16.msra.mxu0 %v11372_v29  ;;  %8103 = vmatpush1.bf16.msra.mxu1 %v11375_v30  ;;  %v7308_v29 = vrot.slane %v11446_v27, %v7295_v17 }
 0x810   :  { %8018 = vmatprep.subr.bf16.mxu0 %v11380_v37  ;;  %8104 = vmatprep.subr.bf16.mxu1 %v11383_v34 }
 0x813   :  { %8019 = vmatpush1.bf16.msra.mxu0 %v11378_v48  ;;  %8105 = vmatpush1.bf16.msra.mxu1 %v11381_v41 }
 0x814   :  { %8020 = vmatprep.subr.bf16.mxu0 %v11386_v42  ;;  %8106 = vmatprep.subr.bf16.mxu1 %v11389_v51 }
 0x817   :  { %8021 = vmatpush1.bf16.msra.mxu0 %v11384_v47  ;;  %8107 = vmatpush1.bf16.msra.mxu1 %v11387_v3 }
 0x818   :  { %8022 = vmatprep.subr.bf16.mxu0 %v11392_v20  ;;  %8108 = vmatprep.subr.bf16.mxu1 %v11395_v62 }
 0x81b   :  { %8023 = vmatpush1.bf16.msra.mxu0 %v11390_v31  ;;  %8109 = vmatpush1.bf16.msra.mxu1 %v11393_v59 }
 0x81c   :  { %9610 = vmatprep.subr.bf16.mxu0 %v11396_v33  ;;  %9632 = vmatprep.subr.bf16.mxu1 %v11397_v36 }
 0x81e   :  { %8025 = vmatmul.mubr.bf16.vlgmr.msra.gmra.mrb[24].mxu0 %v11875_v32  ;;  %8111 = vmatmul.mubr.bf16.vlgmr.msra.gmra.mrb[24].mxu1 %v11875_v32  ;;  %v11411_v32 = vld [vmem:[#allocation6 + $0x98] sm:$0xff]  }
 0x81f   :  { %9611 = vmatpush3.bf16.msra.mxu0 %v11398_v56  ;;  %9633 = vmatpush3.bf16.msra.mxu1 %v11399_v46 }
 0x820   :  { %9612 = vmatprep.subr.bf16.mxu0 %v11400_v53  ;;  %9634 = vmatprep.subr.bf16.mxu1 %v11401_v39 }
 0x823   :  { %9613 = vmatpush3.bf16.msra.mxu0 %v11402_v40  ;;  %9635 = vmatpush3.bf16.msra.mxu1 %v11403_v43 }
 0x824   :  { %9614 = vmatprep.subr.bf16.mxu0 %v11404_v54  ;;  %9636 = vmatprep.subr.bf16.mxu1 %v11405_v55 }
 0x827   :  { %9615 = vmatpush3.bf16.msra.mxu0 %v11406_v58  ;;  %9637 = vmatpush3.bf16.msra.mxu1 %v11407_v63 }
 0x828   :  { %9616 = vmatprep.subr.bf16.mxu0 %v11408_v7  ;;  %9638 = vmatprep.subr.bf16.mxu1 %v11409_v10 }
 0x82b   :  { %9617 = vmatpush3.bf16.msra.mxu0 %v11410_v11  ;;  %9639 = vmatpush3.bf16.msra.mxu1 %v11411_v32 }
 0x82c   :  { %9618 = vmatprep.subr.bf16.mxu0 %v11412_v61  ;;  %9640 = vmatprep.subr.bf16.mxu1 %v11413_v18 }
 0x82f   :  { %9619 = vmatpush3.bf16.msra.mxu0 %v11414_v0  ;;  %9641 = vmatpush3.bf16.msra.mxu1 %v11415_v60 }
 0x830   :  { %9620 = vmatprep.subr.bf16.mxu0 %v11416_v4  ;;  %9642 = vmatprep.subr.bf16.mxu1 %v11417_v1 }
 0x833   :  { %9621 = vmatpush3.bf16.msra.mxu0 %v11418_v38  ;;  %9643 = vmatpush3.bf16.msra.mxu1 %v11419_v5 }
 0x834   :  { %9622 = vmatprep.subr.bf16.mxu0 %v11420_v9  ;;  %9644 = vmatprep.subr.bf16.mxu1 %v11421_v13 }
 0x837   :  { %9623 = vmatpush3.bf16.msra.mxu0 %v11422_v19  ;;  %9645 = vmatpush3.bf16.msra.mxu1 %v11423_v14 }
 0x838   :  { %9624 = vmatprep.subr.bf16.mxu0 %v11424_v15  ;;  %9646 = vmatprep.subr.bf16.mxu1 %v11425_v24 }
 0x83b   :  { %9625 = vmatpush3.bf16.msra.mxu0 %v11426_v22  ;;  %9647 = vmatpush3.bf16.msra.mxu1 %v11427_v16 }
 0x8f1   :  { %v8026_v30 = vpop.f32.mrb[24].mxu0  ;;  %v8112_v37 = vpop.f32.mrb[24].mxu1 }
 0x8f2   :  { %v9702_v34 = vadd.f32 %v8026_v30, %v7296_v23  ;;  %v9706_v48 = vadd.f32 %v8112_v37, %v7304_v6  ;;  %v8028_v41 = vpop.f32.mrb[25].mxu0  ;;  %v8114_v42 = vpop.f32.mrb[25].mxu1 }
 0x8f3   :  { %v9703_v51 = vadd.f32 %v8028_v41, %v7300_v25  ;;  %v9707_v47 = vadd.f32 %v8114_v42, %v7308_v29  ;;  %v8030_v3 = vpop.f32.mrb[26].mxu0  ;;  %v8116_v20 = vpop.f32.mrb[26].mxu1 }
 0x8f4   :  { %v9704_v62 = vadd.f32 %v8030_v3, %v7296_v23  ;;  %v9708_v31 = vadd.f32 %v8116_v20, %v7304_v6  ;;  %v8032_v59 = vpop.f32.mrb[27].mxu0  ;;  %v8118_v33 = vpop.f32.mrb[27].mxu1  ;;  %v8121_v56 = vadd.f32 %v9702_v34, %v11842_v2  ;;  %v8123_v46 = vadd.f32 %v9706_v48, %v11866_v35 }
 0x8f5   :  { %v9705_v36 = vadd.f32 %v8032_v59, %v7300_v25  ;;  %v9709_v26 = vadd.f32 %v8118_v33, %v7308_v29  ;;  %v8122_v40 = vadd.f32 %v9703_v51, %v11836_v8  ;;  %v8124_v43 = vadd.f32 %v9707_v47, %v11850_v12 }
 0x8f6   :  { %v8125_v53 = vadd.f32 %v9704_v62, %v11833_v21  ;;  %v8127_v39 = vadd.f32 %v9708_v31, %v11863_v28  ;;  %v8199_v21 = vsub.s32 7, %v11663_v45  ;;  %v8476_v12 = vand.u32 127, %v376_v44 }
 0x8f7   :  { %v8126_v54 = vadd.f32 %v9705_v36, %v11839_v49  ;;  %v8128_v55 = vadd.f32 %v9709_v26, %v11845_v50 }
 0x8f8   :  { %v8129_v58 = vpack.c.bf16 %v8125_v53, %v8121_v56  ;;  %v8131_v63 = vpack.c.bf16 %v8127_v39, %v8123_v46  ;;  %v8200_v35 = vrot.slane %v11444_v52, %v8199_v21  ;;  %vm8477_vm0 = vcmp.lt.s32.totalorder %v8476_v12, 43 }
 0x8f9   :  { %v8130_v7 = vpack.c.bf16 %v8126_v54, %v8122_v40  ;;  %v8132_v10 = vpack.c.bf16 %v8128_v55, %v8124_v43 }
 0x8fb   :  { %8425 = vmatprep.mubr.bf16.mxu0 %v8130_v7  ;;  %8466 = vmatprep.mubr.bf16.mxu1 %v8132_v10 }
 0x8fc   :  { %8426 = vmatmul.mubr.bf16.vlgmr.msra.gmra.mrb[28].mxu0 %v8129_v58  ;;  %8467 = vmatmul.mubr.bf16.vlgmr.msra.gmra.mrb[28].mxu1 %v8131_v63 }
 0x9cf   :  { %v9626_v2 = vpop.f32.mrb[28].mxu0  ;;  %v9648_v28 = vpop.f32.mrb[28].mxu1 }
 0x9d0   :  { %v9627_v8 = vpop.f32.mrb[29].mxu0  ;;  %v9649_v11 = vpop.f32.mrb[29].mxu1 }
 0x9d1   :  { %v9628_v49 = vadd.f32 %v9627_v8, %v9626_v2  ;;  %v9650_v32 = vadd.f32 %v9649_v11, %v9648_v28  ;;  %v9629_v50 = vpop.f32.mrb[30].mxu0  ;;  %v9651_v61 = vpop.f32.mrb[30].mxu1 }
 0x9d2   :  { %v9630_v18 = vpop.f32.mrb[31].mxu0  ;;  %v9652_v0 = vpop.f32.mrb[31].mxu1 }
 0x9d3   :  { %v8428_v60 = vadd.f32 %v9628_v49, %v8200_v35  ;;  %v9631_v4 = vadd.f32 %v9630_v18, %v9629_v50  ;;  %v9653_v1 = vadd.f32 %v9652_v0, %v9651_v61 }
 0x9d5   :  { %v8431_v38 = vadd.f32 %v9631_v4, %v8200_v35  ;;  %v8469_v5 = vadd.f32 %v9650_v32, %v8428_v60 }
 0x9d7   :  { %v8478_v45 = vsel %vm8477_vm0, %v8469_v5, -inf  ;;  %v8472_v9 = vadd.f32 %v9653_v1, %v8431_v38 }
 0x9d8   :  { %8480 = vmax.xlane.f32.xlu0 %v8478_v45 }
 0x9d9   :  { %v8479_v13 = vsel %vm8477_vm0, %v8472_v9, -inf }
 0x9dc   :  { %8482 = vmax.xlane.f32.xlu0 %v8479_v13 }
 0xa65   :  { %v8481_v19 = vpop.xlane.xlu0 %8480 }
 0xa66   :  { %v8484_v14 = vsub.f32 %v8478_v45, %v8481_v19 }
 0xa68   :  { %v8486_v44 = vmul.f32 1.442695, %v8484_v14 }
 0xa69   :  { %v8483_v15 = vpop.xlane.xlu0 %8482 }
 0xa6a   :  { %11428 = vpow2.f32 %v8486_v44  ;;  %v8485_v24 = vsub.f32 %v8479_v13, %v8483_v15 }
 0xa6c   :  { %v8488_v22 = vmul.f32 1.442695, %v8485_v24 }
 0xa6e   :  { %11430 = vpow2.f32 %v8488_v22 }
 0xa74   :  { %v11429_v16 = vpop.eup %11428 }
 0xa75   :  { %8490 = vadd.xlane.f32.xlu1 %v11429_v16 }
 0xa78   :  { %v11431_v17 = vpop.eup %11430 }
 0xa79   :  { %8492 = vadd.xlane.f32.xlu1 %v11431_v17 }
 0xb02   :  { %v8491_v52 = vpop.xlane.xlu1 %8490 }
 0xb03   :  { %11432 = vrcp.f32 %v8491_v52 }
 0xb06   :  { %v8493_v23 = vpop.xlane.xlu1 %8492 }
 0xb07   :  { %11434 = vrcp.f32 %v8493_v23 }
 0xb0d   :  { %v11433_v6 = vpop.eup %11432 }
 0xb0e   :  { %v8496_v57 = vmul.f32 %v11433_v6, %v8491_v52 }
 0xb10   :  { %v8498_v25 = vsub.f32 2.0, %v8496_v57 }
 0xb11   :  { %v11435_v27 = vpop.eup %11434 }
 0xb12   :  { %v8500_v29 = vmul.f32 %v11433_v6, %v8498_v25  ;;  %v8497_v30 = vmul.f32 %v11435_v27, %v8493_v23 }
 0xb14   :  { %v8502_v37 = vmul.f32 %v11429_v16, %v8500_v29  ;;  %v8499_v34 = vsub.f32 2.0, %v8497_v30 }
 0xb16   :  { %8504 = vst [vmem:[%s11902_s5] sm:$0xff] %v8502_v37  ;;  %v8501_v48 = vmul.f32 %v11435_v27, %v8499_v34 }
 0xb18   :  { %v8503_v41 = vmul.f32 %v11431_v17, %v8501_v48 }
 0xb1a   :  { %8505 = vst [vmem:[%s11902_s5 + $0x8] sm:$0xff] %v8503_v41 }
 0xb1b   :  { %8510 = vsyncpa [#allocation3], 1 }
 0xb1c   :  { %8511 = vsyncpa [#allocation5], 1 }
 0xb1d   :  { %8512 = vsyncpa [#allocation8], 1 }

</bundles_post_ra>
